<compile_context>
chip_gen: v5e
topology: v5e:2x2
jax: 0.10.0
libtpu: 0.0.40
codegen_flags: <defaults>
</compile_context>

<pallas_src>
import jax
import jax.numpy as jnp
from jax.experimental import pallas as pl
from jax.experimental.pallas import tpu as pltpu


def _round_up(x, m):
    return ((x + m - 1) // m) * m


def _pick_tile_b(batch):
    """Batch tile: >=128 everywhere; 256 when there are still >=2 grid steps."""
    return 256 if batch >= 512 else 128


def _fused_mlp_kernel(x_ref,
                      w1_ref, b1_ref,
                      w2_ref, b2_ref,
                      w3_ref, b3_ref,
                      out_ref):
    """(backbone ∘ Linear) + ReLU + Linear + ReLU + Linear on one batch tile."""
    x = x_ref[...]                                               # (TB, Fp) bf16

    # fused backbone-projection + Linear(1000, 512), then ReLU (f32 math)
    h1 = jnp.dot(x, w1_ref[...], preferred_element_type=jnp.float32)
    h1 = jnp.maximum(h1 + b1_ref[...], 0.0)                      # (TB, 512)

    # Linear(512, 512) + ReLU
    h2 = jnp.dot(h1.astype(jnp.bfloat16), w2_ref[...],
                 preferred_element_type=jnp.float32)
    h2 = jnp.maximum(h2 + b2_ref[...], 0.0)                      # (TB, 512)

    # Linear(512, num_classes) padded to a lane-dense 128-wide store
    logits = jnp.dot(h2.astype(jnp.bfloat16), w3_ref[...],
                     preferred_element_type=jnp.float32)
    out_ref[...] = (logits + b3_ref[...]).astype(out_ref.dtype)  # (TB, Np)


def make_params(key, in_features, num_classes):
    """Deterministic init mirroring the module's layer shapes (f32)."""
    ks = jax.random.split(key, 8)

    def lin(kw, kb, fan_in, fan_out):
        scale = 1.0 / jnp.sqrt(jnp.float32(fan_in))
        w = jax.random.uniform(kw, (fan_in, fan_out), jnp.float32, -scale, scale)
        b = jax.random.uniform(kb, (1, fan_out), jnp.float32, -scale, scale)
        return w, b

    wb, bb = lin(ks[0], ks[1], in_features, 1000)   # backbone stand-in
    w1, b1 = lin(ks[2], ks[3], 1000, 512)           # nn.Linear(1000, 512)
    w2, b2 = lin(ks[4], ks[5], 512, 512)            # nn.Linear(512, 512)
    w3, b3 = lin(ks[6], ks[7], 512, num_classes)    # nn.Linear(512, num_classes)
    return (wb, bb, w1, b1, w2, b2, w3, b3)


def fuse_and_pad_params(params, in_features, num_classes):
    """Host-side algebra: fold backbone into w1, lane-pad, cast weights bf16."""
    wb, bb, w1, b1, w2, b2, w3, b3 = params

    # No nonlinearity between backbone and first classifier Linear -> compose.
    w_eff = jnp.dot(wb, w1)                  # (F, 512) f32
    b_eff = jnp.dot(bb, w1) + b1             # (1, 512) f32

    f_pad = _round_up(in_features, 128)
    n_pad = _round_up(max(num_classes, 128), 128)

    w_eff = jnp.pad(w_eff, ((0, f_pad - in_features), (0, 0)))
    w3p = jnp.pad(w3, ((0, 0), (0, n_pad - num_classes)))
    b3p = jnp.pad(b3, ((0, 0), (0, n_pad - num_classes)))

    fused = (w_eff.astype(jnp.bfloat16), b_eff,
             w2.astype(jnp.bfloat16), b2,
             w3p.astype(jnp.bfloat16), b3p)
    return fused, f_pad, n_pad


def model_forward(x_nchw, fused_params, f_pad, n_pad, num_classes):
    B = x_nchw.shape[0]
    in_features = x_nchw.shape[1] * x_nchw.shape[2] * x_nchw.shape[3]

    tile_b = _pick_tile_b(B)
    b_pad = _round_up(max(B, tile_b), tile_b)

    # Flatten + cast to bf16 on the host (the pad materializes a copy anyway)
    # -> halves the per-tile streaming input DMA; matmul runs in bf16 either way.
    x_flat = x_nchw.reshape(B, -1).astype(jnp.bfloat16)
    x_flat = jnp.pad(x_flat, ((0, b_pad - B), (0, f_pad - in_features)))

    w1, b1, w2, b2, w3, b3 = fused_params
    h1 = w1.shape[1]
    h2 = w2.shape[1]

    grid = (b_pad // tile_b,)
    const = lambda i: (0, 0)     # weights/biases stay VMEM-resident across tiles

    flops = 2 * b_pad * (f_pad * h1 + h1 * h2 + h2 * n_pad)
    bytes_accessed = (x_flat.size * x_flat.dtype.itemsize
                      + sum(int(p.size) * p.dtype.itemsize for p in fused_params)
                      + b_pad * n_pad * 4)

    out = pl.pallas_call(
        _fused_mlp_kernel,
        out_shape=jax.ShapeDtypeStruct((b_pad, n_pad), jnp.float32),
        grid=grid,
        in_specs=[
            pl.BlockSpec((tile_b, f_pad), lambda i: (i, 0)),    # x tile (bf16)
            pl.BlockSpec((f_pad, h1), const),                   # W_eff (bf16)
            pl.BlockSpec((1, h1), const),                       # b_eff (f32)
            pl.BlockSpec((h1, h2), const),                      # W2 (bf16)
            pl.BlockSpec((1, h2), const),                       # b2 (f32)
            pl.BlockSpec((h2, n_pad), const),                   # W3 padded (bf16)
            pl.BlockSpec((1, n_pad), const),                    # b3 padded (f32)
        ],
        out_specs=pl.BlockSpec((tile_b, n_pad), lambda i: (i, 0)),
        compiler_params=pltpu.CompilerParams(
            dimension_semantics=("parallel",),
        ),
        cost_estimate=pl.CostEstimate(
            flops=flops, transcendentals=0, bytes_accessed=bytes_accessed),
    )(x_flat, *fused_params)

    return out[:B, :num_classes]


if __name__ == "__main__":
    # Small shapes consistent with the forward: image batch -> 1000-d feature
    # (stand-in backbone) -> classifier MLP -> num_classes logits.
    B, C, H, W = 2, 3, 16, 16
    NUM_CLASSES = 10
    IN_FEATURES = C * H * W

    key = jax.random.PRNGKey(0)
    kx, kp = jax.random.split(key)
    x = jax.random.normal(kx, (B, C, H, W), dtype=jnp.float32)

    raw_params = make_params(kp, IN_FEATURES, NUM_CLASSES)
    fused_params, F_PAD, N_PAD = fuse_and_pad_params(
        raw_params, IN_FEATURES, NUM_CLASSES)

    logits = model_forward(x, fused_params, F_PAD, N_PAD, NUM_CLASSES)
    jax.block_until_ready(logits)

    assert logits.shape == (B, NUM_CLASSES)
    assert logits.dtype == jnp.float32
    assert bool(jnp.all(jnp.isfinite(logits)))
    print("KERNEL_OK")
</pallas_src>

<mosaic_0001>
module attributes {stable_mosaic.version = 11 : i64} {
  func.func @_fused_mlp_kernel(%arg0: i32, %arg1: memref<128x768xbf16, #tpu.memory_space<vmem>>, %arg2: memref<768x512xbf16, #tpu.memory_space<vmem>>, %arg3: memref<1x512xf32, #tpu.memory_space<vmem>>, %arg4: memref<512x512xbf16, #tpu.memory_space<vmem>>, %arg5: memref<1x512xf32, #tpu.memory_space<vmem>>, %arg6: memref<512x128xbf16, #tpu.memory_space<vmem>>, %arg7: memref<1x128xf32, #tpu.memory_space<vmem>>, %arg8: memref<128x128xf32, #tpu.memory_space<vmem>>) attributes {dimension_semantics = [#tpu.dimension_semantics<parallel>], iteration_bounds = array<i64: 1>, scalar_prefetch = 0 : i64, scratch_operands = 0 : i64, tpu.core_type = #tpu.core_type<tc>, window_params = [{transform_indices = @transform_0, window_bounds = array<i64: 128, 768>}, {pipeline_mode = #tpu.pipeline_mode<synchronous>, transform_indices = @transform_1, window_bounds = array<i64: 768, 512>}, {pipeline_mode = #tpu.pipeline_mode<synchronous>, transform_indices = @transform_2, window_bounds = array<i64: 1, 512>}, {pipeline_mode = #tpu.pipeline_mode<synchronous>, transform_indices = @transform_3, window_bounds = array<i64: 512, 512>}, {pipeline_mode = #tpu.pipeline_mode<synchronous>, transform_indices = @transform_4, window_bounds = array<i64: 1, 512>}, {pipeline_mode = #tpu.pipeline_mode<synchronous>, transform_indices = @transform_5, window_bounds = array<i64: 512, 128>}, {pipeline_mode = #tpu.pipeline_mode<synchronous>, transform_indices = @transform_6, window_bounds = array<i64: 1, 128>}, {transform_indices = @transform_7, window_bounds = array<i64: 128, 128>}]} {
    %c0 = arith.constant 0 : index
    %c0_0 = arith.constant 0 : index
    %0 = vector.load %arg1[%c0, %c0_0] : memref<128x768xbf16, #tpu.memory_space<vmem>>, vector<128x768xbf16>
    %c0_1 = arith.constant 0 : index
    %c0_2 = arith.constant 0 : index
    %1 = vector.load %arg2[%c0_1, %c0_2] : memref<768x512xbf16, #tpu.memory_space<vmem>>, vector<768x512xbf16>
    %cst = arith.constant dense<0.000000e+00> : vector<128x512xf32>
    %2 = tpu.matmul %0, %1, %cst {dimension_numbers = #tpu.dot_dimension_numbers<[1], [0], [0], [1], [0, 0, 1, 1], [], []>} : vector<128x768xbf16>, vector<768x512xbf16>, vector<128x512xf32> -> vector<128x512xf32>
    %c0_3 = arith.constant 0 : index
    %c0_4 = arith.constant 0 : index
    %3 = vector.load %arg3[%c0_3, %c0_4] : memref<1x512xf32, #tpu.memory_space<vmem>>, vector<1x512xf32>
    %4 = vector.broadcast %3 : vector<1x512xf32> to vector<128x512xf32>
    %5 = arith.addf %2, %4 : vector<128x512xf32>
    %cst_5 = arith.constant 0.000000e+00 : f32
    %6 = vector.broadcast %cst_5 : f32 to vector<128x512xf32>
    %7 = arith.maximumf %5, %6 : vector<128x512xf32>
    %8 = arith.truncf %7 : vector<128x512xf32> to vector<128x512xbf16>
    %c0_6 = arith.constant 0 : index
    %c0_7 = arith.constant 0 : index
    %9 = vector.load %arg4[%c0_6, %c0_7] : memref<512x512xbf16, #tpu.memory_space<vmem>>, vector<512x512xbf16>
    %cst_8 = arith.constant dense<0.000000e+00> : vector<128x512xf32>
    %10 = tpu.matmul %8, %9, %cst_8 {dimension_numbers = #tpu.dot_dimension_numbers<[1], [0], [0], [1], [0, 0, 1, 1], [], []>} : vector<128x512xbf16>, vector<512x512xbf16>, vector<128x512xf32> -> vector<128x512xf32>
    %c0_9 = arith.constant 0 : index
    %c0_10 = arith.constant 0 : index
    %11 = vector.load %arg5[%c0_9, %c0_10] : memref<1x512xf32, #tpu.memory_space<vmem>>, vector<1x512xf32>
    %12 = vector.broadcast %11 : vector<1x512xf32> to vector<128x512xf32>
    %13 = arith.addf %10, %12 : vector<128x512xf32>
    %cst_11 = arith.constant 0.000000e+00 : f32
    %14 = vector.broadcast %cst_11 : f32 to vector<128x512xf32>
    %15 = arith.maximumf %13, %14 : vector<128x512xf32>
    %16 = arith.truncf %15 : vector<128x512xf32> to vector<128x512xbf16>
    %c0_12 = arith.constant 0 : index
    %c0_13 = arith.constant 0 : index
    %17 = vector.load %arg6[%c0_12, %c0_13] : memref<512x128xbf16, #tpu.memory_space<vmem>>, vector<512x128xbf16>
    %cst_14 = arith.constant dense<0.000000e+00> : vector<128x128xf32>
    %18 = tpu.matmul %16, %17, %cst_14 {dimension_numbers = #tpu.dot_dimension_numbers<[1], [0], [0], [1], [0, 0, 1, 1], [], []>} : vector<128x512xbf16>, vector<512x128xbf16>, vector<128x128xf32> -> vector<128x128xf32>
    %c0_15 = arith.constant 0 : index
    %c0_16 = arith.constant 0 : index
    %19 = vector.load %arg7[%c0_15, %c0_16] : memref<1x128xf32, #tpu.memory_space<vmem>>, vector<1x128xf32>
    %20 = vector.broadcast %19 : vector<1x128xf32> to vector<128x128xf32>
    %21 = arith.addf %18, %20 : vector<128x128xf32>
    %c0_17 = arith.constant 0 : index
    %c0_18 = arith.constant 0 : index
    %22 = vector.load %arg8[%c0_17, %c0_18] : memref<128x128xf32, #tpu.memory_space<vmem>>, vector<128x128xf32>
    tpu.vector_store %arg8[%c0_17, %c0_18], %21 {strides = array<i32>} : memref<128x128xf32, #tpu.memory_space<vmem>>, vector<128x128xf32>,
    return
  }
  func.func @transform_0(%arg0: i32) -> (i32, i32) {
    %c0_i32 = arith.constant 0 : i32
    %c0_i32_0 = arith.constant 0 : i32
    return %arg0, %c0_i32 : i32, i32
  }
  func.func @transform_1(%arg0: i32) -> (i32, i32) {
    %c0_i32 = arith.constant 0 : i32
    %c0_i32_0 = arith.constant 0 : i32
    %c0_i32_1 = arith.constant 0 : i32
    return %c0_i32, %c0_i32_0 : i32, i32
  }
  func.func @transform_2(%arg0: i32) -> (i32, i32) {
    %c0_i32 = arith.constant 0 : i32
    %c0_i32_0 = arith.constant 0 : i32
    %c0_i32_1 = arith.constant 0 : i32
    return %c0_i32, %c0_i32_0 : i32, i32
  }
  func.func @transform_3(%arg0: i32) -> (i32, i32) {
    %c0_i32 = arith.constant 0 : i32
    %c0_i32_0 = arith.constant 0 : i32
    %c0_i32_1 = arith.constant 0 : i32
    return %c0_i32, %c0_i32_0 : i32, i32
  }
  func.func @transform_4(%arg0: i32) -> (i32, i32) {
    %c0_i32 = arith.constant 0 : i32
    %c0_i32_0 = arith.constant 0 : i32
    %c0_i32_1 = arith.constant 0 : i32
    return %c0_i32, %c0_i32_0 : i32, i32
  }
  func.func @transform_5(%arg0: i32) -> (i32, i32) {
    %c0_i32 = arith.constant 0 : i32
    %c0_i32_0 = arith.constant 0 : i32
    %c0_i32_1 = arith.constant 0 : i32
    return %c0_i32, %c0_i32_0 : i32, i32
  }
  func.func @transform_6(%arg0: i32) -> (i32, i32) {
    %c0_i32 = arith.constant 0 : i32
    %c0_i32_0 = arith.constant 0 : i32
    %c0_i32_1 = arith.constant 0 : i32
    return %c0_i32, %c0_i32_0 : i32, i32
  }
  func.func @transform_7(%arg0: i32) -> (i32, i32) {
    %c0_i32 = arith.constant 0 : i32
    %c0_i32_0 = arith.constant 0 : i32
    return %arg0, %c0_i32 : i32, i32
  }
}

</mosaic_0001>

<bundles_post_ra>
// kernel: tpu_custom_call.1
= control target key start
LH: loop header
LB: loop body
LE: loop exit
PB: predicated region body
PF: predicated region fallthrough
CT: control target
= control target key end

     0   :  { %12 = vsyncpa [#allocation3], 0  ;;  %s8200_s0 = inlined_call_operand.hbm [shape: bf16[128,768], index: 0, kind: input, shape index: {}]   ;;  %s8201_s1 = inlined_call_operand.hbm [shape: bf16[768,512], index: 1, kind: input, shape index: {}]   ;;  %s8202_s2 = inlined_call_operand.hbm [shape: f32[1,512], index: 2, kind: input, shape index: {}]   ;;  %s8203_s3 = inlined_call_operand.hbm [shape: bf16[512,512], index: 3, kind: input, shape index: {}]   ;;  %s8204_s4 = inlined_call_operand.hbm [shape: f32[1,512], index: 4, kind: input, shape index: {}]   ;;  %s8205_s5 = inlined_call_operand.hbm [shape: bf16[512,128], index: 5, kind: input, shape index: {}]   ;;  %s8206_s6 = inlined_call_operand.vmem [shape: f32[1,128], index: 6, kind: input, shape index: {}]   ;;  %s8207_s7 = inlined_call_operand.hbm [shape: f32[128,128], index: 7, kind: output, shape index: {}]  }
   0x1   :  { %13 = vsyncpa [#allocation6], 0 }
   0x2   :  { %14 = vsyncpa [#allocation9], 0 }
   0x3   :  { %15 = vsyncpa [#allocation12], 0  ;;  %s34_s26 = sshll.u32 %s8201_s1, 4  ;;  %s35_s26 = int_to_ptr.hbm [resolvable:$true] %s34_s26 }
   0x4   :  { %16 = vsyncpa [#allocation4], 0  ;;  %s7187_s27 = smov [#allocation5]   ;;  %s58_s8 = sshll.u32 %s8203_s3, 4  ;;  %s59_s8 = int_to_ptr.hbm [resolvable:$true] %s58_s8 }
   0x5   :  { %s36_s28 = sshll.u32 %s7187_s27, 4  ;;  %s7188_s9 = smov 256   ;;  %s37_s28 = int_to_ptr.vmem [resolvable:$true] %s36_s28 }
   0x6   :  { %s7189_s10 = smov 16   ;;  %s7190_s11 = smov [#allocation8]  }
   0x7   :  { %42 = dma.hbm_to_vmem [thread:$0]  %s35_s26, 24576, %s37_s28, [#allocation6], %s7188_s9, %s7188_s9, %s7189_s10  }
   0x8   :  { %s60_s12 = sshll.u32 %s7190_s11, 4  ;;  %s21_s15 = sshll.u32 %s8200_s0, 4  ;;  %s61_s12 = int_to_ptr.vmem [resolvable:$true] %s60_s12  ;;  %s22_s15 = int_to_ptr.hbm [resolvable:$true] %s21_s15 }
   0x9   :  { %66 = dma.hbm_to_vmem [thread:$0]  %s59_s8, 16384, %s61_s12, [#allocation9], %s7188_s9, %s7188_s9, %s7189_s10  }
   0xa   :  { %s7191_s1 = smov [#allocation2]   ;;  %s48_s3 = sshll.u32 %s8202_s2, 4  ;;  %s49_s3 = int_to_ptr.hbm [resolvable:$true] %s48_s3 }
   0xb   :  { %s23_s16 = sshll.u32 %s7191_s1, 4  ;;  %s7192_s19 = smov 384   ;;  %s24_s16 = int_to_ptr.vmem [resolvable:$true] %s23_s16 }
   0xc   :  { %s7193_s20 = smov 24   ;;  %s7194_s21 = smov [#allocation7]  }
   0xd   :  { %29 = dma.hbm_to_vmem [thread:$0]  %s22_s15, 6144, %s24_s16, [#allocation3], %s7192_s19, %s7192_s19, %s7193_s20  }
   0xe   :  { %s50_s22 = sshll.u32 %s7194_s21, 4  ;;  %s72_s0 = sshll.u32 %s8204_s4, 4  ;;  %s51_s22 = int_to_ptr.vmem [resolvable:$true] %s50_s22  ;;  %s73_s0 = int_to_ptr.hbm [resolvable:$true] %s72_s0 }
   0xf   :  { %53 = dma.hbm_to_vmem [thread:$0]  %s49_s3, 64, %s51_s22, [#allocation6]  }
  0x10   :  { %s82_s27 = sshll.u32 %s8205_s5, 4  ;;  %s7195_s28 = smov [#allocation10]   ;;  %s83_s27 = int_to_ptr.hbm [resolvable:$true] %s82_s27 }
  0x11   :  { %s74_s29 = sshll.u32 %s7195_s28, 4  ;;  %s7196_s2 = smov [#allocation11]   ;;  %s75_s29 = int_to_ptr.vmem [resolvable:$true] %s74_s29 }
  0x12   :  { %77 = dma.hbm_to_vmem [thread:$0]  %s73_s0, 64, %s75_s29, [#allocation9]  }
  0x13   :  { %s84_s30 = sshll.u32 %s7196_s2, 4  ;;  %s7197_s8 = smov 64   ;;  %s85_s30 = int_to_ptr.vmem [resolvable:$true] %s84_s30 }
  0x14   :  { %s7198_s9 = smov 4  }
  0x15   :  { %90 = dma.hbm_to_vmem [thread:$0]  %s83_s27, 4096, %s85_s30, [#allocation12], %s7197_s8, %s7197_s8, %s7198_s9  }
  0x16   :  { %7177 = dma.done.wait [#allocation3], 6144  }
  0x17   :  { %7178 = vsyncadd [#allocation3], 4294961152 }
  0x18   :  { %7179 = dma.done.wait [#allocation6], 24640  }
  0x19   :  { %7180 = vsyncadd [#allocation6], 4294942656 }
  0x1a   :  { %7181 = dma.done.wait [#allocation9], 16448  }
  0x1b   :  { %7182 = vsyncadd [#allocation9], 4294950848 }
  0x1c   :  { %7183 = dma.done.wait [#allocation12], 4096  }
  0x1d   :  { %7184 = vsyncadd [#allocation12], 4294963200  ;;  %v5297_v0 = vld [vmem:[#allocation5 + $0xe0] sm:$0xf]  ;;  %v6669_v1 = vld [vmem:[#allocation5 + $0xec] sm:$0xf0] }
  0x1e   :  { %v5425_v2 = vld [vmem:[#allocation5 + $0x1e0] sm:$0xf]  ;;  %v5298_v3 = vor.u32 %v6669_v1, %v5297_v0  ;;  %v6701_v4 = vld [vmem:[#allocation5 + $0x1ec] sm:$0xf0]  ;;  %s4975_s13 = sshll.u32 %s8207_s7, 4  ;;  %s7200_s14 = smov 128   ;;  %s4976_s13 = int_to_ptr.hbm [resolvable:$true] %s4975_s13 }
  0x1f   :  { %v5553_v5 = vld [vmem:[#allocation5 + $0x2e0] sm:$0xf]  ;;  %v6733_v6 = vld [vmem:[#allocation5 + $0x2ec] sm:$0xf0]  ;;  %v5426_v7 = vor.u32 %v6701_v4, %v5425_v2  ;;  %s7201_s15 = smov 8  }
  0x20   :  { %v5554_v8 = vor.u32 %v6733_v6, %v5553_v5  ;;  %v5681_v9 = vld [vmem:[#allocation5 + $0x3e0] sm:$0xf]  ;;  %v6765_v10 = vld [vmem:[#allocation5 + $0x3ec] sm:$0xf0]  ;;  %1567 = vmatpush.bf16.msra.mxu0 %v5298_v3 }
  0x21   :  { %v5281_v11 = vld [vmem:[#allocation5 + $0xc0] sm:$0xf]  ;;  %v5682_v12 = vor.u32 %v6765_v10, %v5681_v9  ;;  %v6665_v13 = vld [vmem:[#allocation5 + $0xcc] sm:$0xf0]  ;;  %1616 = vmatpush.bf16.msra.mxu1 %v5426_v7 }
  0x22   :  { %v5409_v14 = vld [vmem:[#allocation5 + $0x1c0] sm:$0xf]  ;;  %v6697_v15 = vld [vmem:[#allocation5 + $0x1cc] sm:$0xf0]  ;;  %1665 = vmatpush.bf16.msra.mxu2 %v5554_v8  ;;  %v5282_v16 = vor.u32 %v6665_v13, %v5281_v11 }
  0x23   :  { %v5410_v17 = vor.u32 %v6697_v15, %v5409_v14  ;;  %v5537_v18 = vld [vmem:[#allocation5 + $0x2c0] sm:$0xf]  ;;  %v6729_v19 = vld [vmem:[#allocation5 + $0x2cc] sm:$0xf0]  ;;  %1714 = vmatpush.bf16.msra.mxu3 %v5682_v12 }
  0x24   :  { %v5665_v20 = vld [vmem:[#allocation5 + $0x3c0] sm:$0xf]  ;;  %v5538_v21 = vor.u32 %v6729_v19, %v5537_v18  ;;  %v6761_v22 = vld [vmem:[#allocation5 + $0x3cc] sm:$0xf0]  ;;  %1568 = vmatpush.bf16.msra.mxu0 %v5282_v16 }
  0x25   :  { %v5265_v23 = vld [vmem:[#allocation5 + $0xa0] sm:$0xf]  ;;  %v6661_v24 = vld [vmem:[#allocation5 + $0xac] sm:$0xf0]  ;;  %v5666_v25 = vor.u32 %v6761_v22, %v5665_v20  ;;  %1617 = vmatpush.bf16.msra.mxu1 %v5410_v17 }
  0x26   :  { %v5393_v26 = vld [vmem:[#allocation5 + $0x1a0] sm:$0xf]  ;;  %v6693_v27 = vld [vmem:[#allocation5 + $0x1ac] sm:$0xf0]  ;;  %v5266_v29 = vor.u32 %v6661_v24, %v5265_v23  ;;  %1666 = vmatpush.bf16.msra.mxu2 %v5538_v21 }
  0x27   :  { %v5521_v28 = vld [vmem:[#allocation5 + $0x2a0] sm:$0xf]  ;;  %v6725_v30 = vld [vmem:[#allocation5 + $0x2ac] sm:$0xf0]  ;;  %v5394_v33 = vor.u32 %v6693_v27, %v5393_v26  ;;  %1715 = vmatpush.bf16.msra.mxu3 %v5666_v25 }
  0x28   :  { %v5649_v31 = vld [vmem:[#allocation5 + $0x3a0] sm:$0xf]  ;;  %v6757_v32 = vld [vmem:[#allocation5 + $0x3ac] sm:$0xf0]  ;;  %v5522_v34 = vor.u32 %v6725_v30, %v5521_v28  ;;  %1569 = vmatpush.bf16.msra.mxu0 %v5266_v29  ;;  %v6594_v29 = vld [vmem:[#allocation2 + $0x14] sm:$0xf0] }
  0x29   :  { %v5249_v35 = vld [vmem:[#allocation5 + $0x80] sm:$0xf]  ;;  %v6657_v36 = vld [vmem:[#allocation5 + $0x8c] sm:$0xf0]  ;;  %v5650_v38 = vor.u32 %v6757_v32, %v5649_v31  ;;  %1618 = vmatpush.bf16.msra.mxu1 %v5394_v33  ;;  %v6591_v30 = vld [vmem:[#allocation2 + $0x4] sm:$0xf] }
  0x2a   :  { %v5377_v37 = vld [vmem:[#allocation5 + $0x180] sm:$0xf]  ;;  %v6689_v39 = vld [vmem:[#allocation5 + $0x18c] sm:$0xf0]  ;;  %v5250_v44 = vor.u32 %v6657_v36, %v5249_v35  ;;  %1667 = vmatpush.bf16.msra.mxu2 %v5522_v34  ;;  %v4995_v31 = vld [vmem:[#allocation2 + $0x18] sm:$0xf0] }
  0x2b   :  { %v5505_v40 = vld [vmem:[#allocation5 + $0x280] sm:$0xf]  ;;  %v6721_v41 = vld [vmem:[#allocation5 + $0x28c] sm:$0xf0]  ;;  %v5378_v45 = vor.u32 %v6689_v39, %v5377_v37  ;;  %1716 = vmatpush.bf16.msra.mxu3 %v5650_v38  ;;  %v6667_v32 = vld [vmem:[#allocation5 + $0xe4] sm:$0xf] }
  0x2c   :  { %v5633_v42 = vld [vmem:[#allocation5 + $0x380] sm:$0xf]  ;;  %v6753_v43 = vld [vmem:[#allocation5 + $0x38c] sm:$0xf0]  ;;  %v5506_v46 = vor.u32 %v6721_v41, %v5505_v40  ;;  %1570 = vmatpush.bf16.msra.mxu0 %v5250_v44  ;;  %v5299_v33 = vld [vmem:[#allocation5 + $0xf0] sm:$0xf0] }
  0x2d   :  { %v5233_v47 = vld [vmem:[#allocation5 + $0x60] sm:$0xf]  ;;  %v6653_v48 = vld [vmem:[#allocation5 + $0x6c] sm:$0xf0]  ;;  %v5634_v50 = vor.u32 %v6753_v43, %v5633_v42  ;;  %1619 = vmatpush.bf16.msra.mxu1 %v5378_v45  ;;  %v5001_v35 = vld [vmem:[#allocation2 + $0x8] sm:$0xf]  ;;  %v5302_v44 = vor.u32 %v6667_v32, %v5299_v33 }
  0x2e   :  { %v5361_v49 = vld [vmem:[#allocation5 + $0x160] sm:$0xf]  ;;  %v6685_v51 = vld [vmem:[#allocation5 + $0x16c] sm:$0xf0]  ;;  %v5234_v56 = vor.u32 %v6653_v48, %v5233_v47  ;;  %1668 = vmatpush.bf16.msra.mxu2 %v5506_v46  ;;  %v6699_v36 = vld [vmem:[#allocation5 + $0x1e4] sm:$0xf] }
  0x2f   :  { %v5489_v52 = vld [vmem:[#allocation5 + $0x260] sm:$0xf]  ;;  %v6717_v53 = vld [vmem:[#allocation5 + $0x26c] sm:$0xf0]  ;;  %v5362_v57 = vor.u32 %v6685_v51, %v5361_v49  ;;  %1717 = vmatpush.bf16.msra.mxu3 %v5634_v50  ;;  %v5427_v37 = vld [vmem:[#allocation5 + $0x1f0] sm:$0xf0] }
  0x30   :  { %v5617_v54 = vld [vmem:[#allocation5 + $0x360] sm:$0xf]  ;;  %v6749_v55 = vld [vmem:[#allocation5 + $0x36c] sm:$0xf0]  ;;  %v5490_v58 = vor.u32 %v6717_v53, %v5489_v52  ;;  %1571 = vmatpush.bf16.msra.mxu0 %v5234_v56  ;;  %v6592_v41 = vld [vmem:[#allocation2 + $0xc] sm:$0xf]  ;;  %v5430_v49 = vor.u32 %v6699_v36, %v5427_v37  ;;  %v7262_v53 = vor.u32 %v6591_v30, %v4995_v31 }
  0x31   :  { %v5217_v59 = vld [vmem:[#allocation5 + $0x40] sm:$0xf]  ;;  %v6649_v60 = vld [vmem:[#allocation5 + $0x4c] sm:$0xf0]  ;;  %v5618_v62 = vor.u32 %v6749_v55, %v5617_v54  ;;  %1620 = vmatpush.bf16.msra.mxu1 %v5362_v57  ;;  %v5003_v42 = vld [vmem:[#allocation2 + $0x20] sm:$0xf0] }
  0x32   :  { %v5345_v61 = vld [vmem:[#allocation5 + $0x140] sm:$0xf]  ;;  %v6681_v63 = vld [vmem:[#allocation5 + $0x14c] sm:$0xf0]  ;;  %v5218_v4 = vor.u32 %v6649_v60, %v5217_v59  ;;  %1669 = vmatpush.bf16.msra.mxu2 %v5490_v58  ;;  %v6663_v51 = vld [vmem:[#allocation5 + $0xc4] sm:$0xf]  ;;  %v7266_v57 = vor.u32 %v6592_v41, %v5003_v42 }
  0x33   :  { %v5473_v0 = vld [vmem:[#allocation5 + $0x240] sm:$0xf]  ;;  %v6713_v1 = vld [vmem:[#allocation5 + $0x24c] sm:$0xf0]  ;;  %v5346_v5 = vor.u32 %v6681_v63, %v5345_v61  ;;  %1718 = vmatpush.bf16.msra.mxu3 %v5618_v62  ;;  %v5283_v52 = vld [vmem:[#allocation5 + $0xd0] sm:$0xf0] }
  0x34   :  { %v5601_v2 = vld [vmem:[#allocation5 + $0x340] sm:$0xf]  ;;  %v6745_v3 = vld [vmem:[#allocation5 + $0x34c] sm:$0xf0]  ;;  %v5474_v6 = vor.u32 %v6713_v1, %v5473_v0  ;;  %1572 = vmatpush.bf16.msra.mxu0 %v5218_v4  ;;  %8275 = vst [vmem:[#allocation20_spill] sm:$0xff] %v7262_v53  ;;  %v5286_v60 = vor.u32 %v6663_v51, %v5283_v52 }
  0x35   :  { %v5201_v7 = vld [vmem:[#allocation5 + $0x20] sm:$0xf]  ;;  %v6645_v8 = vld [vmem:[#allocation5 + $0x2c] sm:$0xf0]  ;;  %v5602_v10 = vor.u32 %v6745_v3, %v5601_v2  ;;  %1621 = vmatpush.bf16.msra.mxu1 %v5346_v5  ;;  %v6695_v55 = vld [vmem:[#allocation5 + $0x1c4] sm:$0xf] }
  0x36   :  { %v5329_v9 = vld [vmem:[#allocation5 + $0x120] sm:$0xf]  ;;  %v6677_v11 = vld [vmem:[#allocation5 + $0x12c] sm:$0xf0]  ;;  %v5202_v17 = vor.u32 %v6645_v8, %v5201_v7  ;;  %1670 = vmatpush.bf16.msra.mxu2 %v5474_v6  ;;  %v5411_v56 = vld [vmem:[#allocation5 + $0x1d0] sm:$0xf0] }
  0x37   :  { %v5457_v12 = vld [vmem:[#allocation5 + $0x220] sm:$0xf]  ;;  %v6709_v13 = vld [vmem:[#allocation5 + $0x22c] sm:$0xf0]  ;;  %v5330_v21 = vor.u32 %v6677_v11, %v5329_v9  ;;  %1719 = vmatpush.bf16.msra.mxu3 %v5602_v10  ;;  %8276 = vst [vmem:[#allocation21_spill] sm:$0xff] %v7266_v57  ;;  %v5414_v63 = vor.u32 %v6695_v55, %v5411_v56 }
  0x38   :  { %v5585_v14 = vld [vmem:[#allocation5 + $0x320] sm:$0xf]  ;;  %v6741_v15 = vld [vmem:[#allocation5 + $0x32c] sm:$0xf0]  ;;  %v5458_v22 = vor.u32 %v6709_v13, %v5457_v12  ;;  %1573 = vmatpush.bf16.msra.mxu0 %v5202_v17  ;;  %v6659_v3 = vld [vmem:[#allocation5 + $0xa4] sm:$0xf] }
  0x39   :  { %v5185_v16 = vld [vmem:[#allocation5] sm:$0xf]  ;;  %v6641_v18 = vld [vmem:[#allocation5 + $0xc] sm:$0xf0]  ;;  %v5586_v26 = vor.u32 %v6741_v15, %v5585_v14  ;;  %1622 = vmatpush.bf16.msra.mxu1 %v5330_v21  ;;  %v5267_v4 = vld [vmem:[#allocation5 + $0xb0] sm:$0xf0] }
  0x3a   :  { %v5313_v19 = vld [vmem:[#allocation5 + $0x100] sm:$0xf]  ;;  %v6673_v20 = vld [vmem:[#allocation5 + $0x10c] sm:$0xf0]  ;;  %v5186_v34 = vor.u32 %v6641_v18, %v5185_v16  ;;  %1671 = vmatpush.bf16.msra.mxu2 %v5458_v22  ;;  %v5270_v7 = vor.u32 %v6659_v3, %v5267_v4  ;;  %v6691_v9 = vld [vmem:[#allocation5 + $0x1a4] sm:$0xf] }
  0x3b   :  { %v5441_v23 = vld [vmem:[#allocation5 + $0x200] sm:$0xf]  ;;  %v6705_v24 = vld [vmem:[#allocation5 + $0x20c] sm:$0xf0]  ;;  %v5314_v38 = vor.u32 %v6673_v20, %v5313_v19  ;;  %1720 = vmatpush.bf16.msra.mxu3 %v5586_v26  ;;  %v5395_v10 = vld [vmem:[#allocation5 + $0x1b0] sm:$0xf0] }
  0x3c   :  { %v5569_v25 = vld [vmem:[#allocation5 + $0x300] sm:$0xf]  ;;  %v6737_v27 = vld [vmem:[#allocation5 + $0x30c] sm:$0xf0]  ;;  %v5442_v39 = vor.u32 %v6705_v24, %v5441_v23  ;;  %1574 = vmatpush.bf16.msra.mxu0 %v5186_v34  ;;  %v5398_v11 = vor.u32 %v6691_v9, %v5395_v10  ;;  %v6600_v17 = vld [vmem:[#allocation2 + $0x44] sm:$0xf0] }
  0x3d   :  { %v4993_v28 = vld [vmem:[#allocation2] sm:$0xf]  ;;  %v5570_v43 = vor.u32 %v6737_v27, %v5569_v25  ;;  %v6797_v46 = vld [vmem:[#allocation5 + $0x4ec] sm:$0xf0]  ;;  %1623 = vmatpush.bf16.msra.mxu1 %v5314_v38  ;;  %v6597_v18 = vld [vmem:[#allocation2 + $0x34] sm:$0xf] }
  0x3e   :  { %v6595_v40 = vld [vmem:[#allocation2 + $0x1c] sm:$0xf0]  ;;  %v7260_v48 = vor.u32 %v6594_v29, %v4993_v28  ;;  %v6829_v50 = vld [vmem:[#allocation5 + $0x5ec] sm:$0xf0]  ;;  %1672 = vmatpush.bf16.msra.mxu2 %v5442_v39  ;;  %v5019_v19 = vld [vmem:[#allocation2 + $0x48] sm:$0xf0] }
  0x3f   :  { %v5809_v45 = vld [vmem:[#allocation5 + $0x4e0] sm:$0xf]  ;;  %v7264_v54 = vor.u32 %v6595_v40, %v5001_v35  ;;  %1721 = vmatpush.bf16.msra.mxu3 %v5570_v43  ;;  %v6793_v62 = vld [vmem:[#allocation5 + $0x4cc] sm:$0xf0]  ;;  %v5025_v20 = vld [vmem:[#allocation2 + $0x38] sm:$0xf]  ;;  %v7274_v25 = vor.u32 %v6597_v18, %v5019_v19 }
  0x40   :  { %v5937_v47 = vld [vmem:[#allocation5 + $0x5e0] sm:$0xf]  ;;  %8274 = vst [vmem:[#allocation19_spill] sm:$0xff] %v7260_v48  ;;  %v5810_v58 = vor.u32 %v6797_v46, %v5809_v45  ;;  %1575 = vmatmul.bf16.vlgmr.msra.gmra.mxu0 %v7260_v48  ;;  %v6825_v1 = vld [vmem:[#allocation5 + $0x5cc] sm:$0xf0]  ;;  %1624 = vmatmul.bf16.vlgmr.msra.gmra.mxu1 %v7262_v53 }
  0x41   :  { %v5938_v59 = vor.u32 %v6829_v50, %v5937_v47  ;;  %v5793_v61 = vld [vmem:[#allocation5 + $0x4c0] sm:$0xf]  ;;  %1673 = vmatmul.bf16.vlgmr.msra.gmra.mxu2 %v7264_v54  ;;  %v6789_v8 = vld [vmem:[#allocation5 + $0x4ac] sm:$0xf0]  ;;  %v6598_v22 = vld [vmem:[#allocation2 + $0x3c] sm:$0xf] }
  0x42   :  { %1861 = vmatpush.bf16.msrb.mxu2 %v5302_v44  ;;  %v5921_v0 = vld [vmem:[#allocation5 + $0x5c0] sm:$0xf]  ;;  %1722 = vmatmul.bf16.vlgmr.msra.gmra.mxu3 %v7266_v57  ;;  %v5794_v2 = vor.u32 %v6793_v62, %v5793_v61  ;;  %v6821_v13 = vld [vmem:[#allocation5 + $0x5ac] sm:$0xf0]  ;;  %v5027_v23 = vld [vmem:[#allocation2 + $0x50] sm:$0xf0] }
  0x43   :  { %1910 = vmatpush.bf16.msrb.mxu3 %v5430_v49  ;;  %1763 = vmatpush.bf16.msrb.mxu0 %v5810_v58  ;;  %v5777_v5 = vld [vmem:[#allocation5 + $0x4a0] sm:$0xf]  ;;  %v5922_v6 = vor.u32 %v6825_v1, %v5921_v0  ;;  %v5017_v16 = vld [vmem:[#allocation2 + $0x30] sm:$0xf]  ;;  %8278 = vst [vmem:[#allocation23_spill] sm:$0xff] %v7274_v25  ;;  %v7278_v27 = vor.u32 %v6598_v22, %v5027_v23 }
  0x44   :  { %1812 = vmatpush.bf16.msrb.mxu1 %v5938_v59  ;;  %v5905_v12 = vld [vmem:[#allocation5 + $0x5a0] sm:$0xf]  ;;  %v5778_v14 = vor.u32 %v6789_v8, %v5777_v5  ;;  %v6601_v21 = vld [vmem:[#allocation2 + $0x4c] sm:$0xf0]  ;;  %v7272_v24 = vor.u32 %v6600_v17, %v5017_v16  ;;  %v6655_v28 = vld [vmem:[#allocation5 + $0x84] sm:$0xf] }
  0x45   :  { %v5906_v15 = vor.u32 %v6821_v13, %v5905_v12  ;;  %v7276_v26 = vor.u32 %v6601_v21, %v5025_v20  ;;  %v5251_v29 = vld [vmem:[#allocation5 + $0x90] sm:$0xf0]  ;;  %v5761_v30 = vld [vmem:[#allocation5 + $0x480] sm:$0xf]  ;;  %v6785_v32 = vld [vmem:[#allocation5 + $0x48c] sm:$0xf0] }
  0x46   :  { %1862 = vmatpush.bf16.msrb.mxu2 %v5286_v60  ;;  %8277 = vst [vmem:[#allocation22_spill] sm:$0xff] %v7272_v24  ;;  %v5254_v31 = vor.u32 %v6655_v28, %v5251_v29  ;;  %v6687_v33 = vld [vmem:[#allocation5 + $0x184] sm:$0xf]  ;;  %v5379_v34 = vld [vmem:[#allocation5 + $0x190] sm:$0xf0]  ;;  %v5762_v35 = vor.u32 %v6785_v32, %v5761_v30 }
  0x47   :  { %1911 = vmatpush.bf16.msrb.mxu3 %v5414_v63  ;;  %1764 = vmatpush.bf16.msrb.mxu0 %v5794_v2  ;;  %v5382_v36 = vor.u32 %v6687_v33, %v5379_v34  ;;  %v5889_v37 = vld [vmem:[#allocation5 + $0x580] sm:$0xf]  ;;  %v6817_v38 = vld [vmem:[#allocation5 + $0x58c] sm:$0xf0]  ;;  %v6606_v41 = vld [vmem:[#allocation2 + $0x74] sm:$0xf0] }
  0x48   :  { %1813 = vmatpush.bf16.msrb.mxu1 %v5922_v6  ;;  %v5890_v39 = vor.u32 %v6817_v38, %v5889_v37  ;;  %v5041_v40 = vld [vmem:[#allocation2 + $0x60] sm:$0xf]  ;;  %v6603_v42 = vld [vmem:[#allocation2 + $0x64] sm:$0xf]  ;;  %v5043_v43 = vld [vmem:[#allocation2 + $0x78] sm:$0xf0] }
  0x49   :  { %v5049_v44 = vld [vmem:[#allocation2 + $0x68] sm:$0xf]  ;;  %v6607_v45 = vld [vmem:[#allocation2 + $0x7c] sm:$0xf0]  ;;  %v6604_v46 = vld [vmem:[#allocation2 + $0x6c] sm:$0xf]  ;;  %v7284_v49 = vor.u32 %v6606_v41, %v5041_v40  ;;  %v7286_v50 = vor.u32 %v6603_v42, %v5043_v43 }
  0x4a   :  { %1863 = vmatpush.bf16.msrb.mxu2 %v5270_v7  ;;  %v5051_v47 = vld [vmem:[#allocation2 + $0x80] sm:$0xf0]  ;;  %v7288_v51 = vor.u32 %v6607_v45, %v5049_v44  ;;  %v5235_v56 = vld [vmem:[#allocation5 + $0x70] sm:$0xf0]  ;;  %v5745_v58 = vld [vmem:[#allocation5 + $0x460] sm:$0xf] }
  0x4b   :  { %1912 = vmatpush.bf16.msrb.mxu3 %v5398_v11  ;;  %1765 = vmatpush.bf16.msrb.mxu0 %v5778_v14  ;;  %8279 = vst [vmem:[#allocation24_spill] sm:$0xff] %v7284_v49  ;;  %v7290_v52 = vor.u32 %v6604_v46, %v5051_v47  ;;  %v6651_v55 = vld [vmem:[#allocation5 + $0x64] sm:$0xf]  ;;  %v6781_v60 = vld [vmem:[#allocation5 + $0x46c] sm:$0xf0] }
  0x4c   :  { %1814 = vmatpush.bf16.msrb.mxu1 %v5906_v15  ;;  %8280 = vst [vmem:[#allocation25_spill] sm:$0xff] %v7286_v50  ;;  %v5238_v59 = vor.u32 %v6651_v55, %v5235_v56  ;;  %v6683_v61 = vld [vmem:[#allocation5 + $0x164] sm:$0xf]  ;;  %v5363_v62 = vld [vmem:[#allocation5 + $0x170] sm:$0xf0]  ;;  %v5746_v63 = vor.u32 %v6781_v60, %v5745_v58 }
  0x4d   :  { %v5366_v0 = vor.u32 %v6683_v61, %v5363_v62  ;;  %v5873_v1 = vld [vmem:[#allocation5 + $0x560] sm:$0xf]  ;;  %v6813_v2 = vld [vmem:[#allocation5 + $0x56c] sm:$0xf0]  ;;  %v6612_v5 = vld [vmem:[#allocation2 + $0xa4] sm:$0xf0] }
  0x4e   :  { %1864 = vmatpush.bf16.msrb.mxu2 %v5254_v31  ;;  %v5874_v3 = vor.u32 %v6813_v2, %v5873_v1  ;;  %v5065_v4 = vld [vmem:[#allocation2 + $0x90] sm:$0xf]  ;;  %v6609_v6 = vld [vmem:[#allocation2 + $0x94] sm:$0xf]  ;;  %v5067_v7 = vld [vmem:[#allocation2 + $0xa8] sm:$0xf0] }
  0x4f   :  { %1766 = vmatpush.bf16.msrb.mxu0 %v5762_v35  ;;  %1913 = vmatpush.bf16.msrb.mxu3 %v5382_v36  ;;  %v5073_v8 = vld [vmem:[#allocation2 + $0x98] sm:$0xf]  ;;  %v6613_v9 = vld [vmem:[#allocation2 + $0xac] sm:$0xf0]  ;;  %v6610_v10 = vld [vmem:[#allocation2 + $0x9c] sm:$0xf]  ;;  %v7296_v12 = vor.u32 %v6612_v5, %v5065_v4  ;;  %v7298_v13 = vor.u32 %v6609_v6, %v5067_v7 }
  0x50   :  { %1580 = vmatmul.bf16.gmra.mxu0 %v7272_v24  ;;  %1629 = vmatmul.bf16.gmra.mxu1 %v7274_v25  ;;  %v5075_v11 = vld [vmem:[#allocation2 + $0xb0] sm:$0xf0]  ;;  %v7300_v14 = vor.u32 %v6613_v9, %v5073_v8  ;;  %v6647_v16 = vld [vmem:[#allocation5 + $0x44] sm:$0xf]  ;;  %v5729_v18 = vld [vmem:[#allocation5 + $0x440] sm:$0xf] }
  0x51   :  { %1678 = vmatmul.bf16.gmra.mxu2 %v7276_v26  ;;  %1815 = vmatpush.bf16.msrb.mxu1 %v5890_v39  ;;  %8281 = vst [vmem:[#allocation26_spill] sm:$0xff] %v7296_v12  ;;  %v7302_v15 = vor.u32 %v6610_v10, %v5075_v11  ;;  %v5219_v17 = vld [vmem:[#allocation5 + $0x50] sm:$0xf0]  ;;  %v6777_v20 = vld [vmem:[#allocation5 + $0x44c] sm:$0xf0] }
  0x52   :  { %1727 = vmatmul.bf16.gmra.mxu3 %v7278_v27  ;;  %1865 = vmatpush.bf16.msrb.mxu2 %v5238_v59  ;;  %8282 = vst [vmem:[#allocation27_spill] sm:$0xff] %v7298_v13  ;;  %v5222_v19 = vor.u32 %v6647_v16, %v5219_v17  ;;  %v6679_v21 = vld [vmem:[#allocation5 + $0x144] sm:$0xf]  ;;  %v5347_v22 = vld [vmem:[#allocation5 + $0x150] sm:$0xf0]  ;;  %v5730_v23 = vor.u32 %v6777_v20, %v5729_v18 }
  0x53   :  { %1767 = vmatpush.bf16.msrb.mxu0 %v5746_v63  ;;  %1914 = vmatpush.bf16.msrb.mxu3 %v5366_v0  ;;  %v5350_v28 = vor.u32 %v6679_v21, %v5347_v22  ;;  %v5857_v29 = vld [vmem:[#allocation5 + $0x540] sm:$0xf]  ;;  %v6809_v30 = vld [vmem:[#allocation5 + $0x54c] sm:$0xf0]  ;;  %v6618_v33 = vld [vmem:[#allocation2 + $0xd4] sm:$0xf0] }
  0x54   :  { %v5858_v31 = vor.u32 %v6809_v30, %v5857_v29  ;;  %v5089_v32 = vld [vmem:[#allocation2 + $0xc0] sm:$0xf]  ;;  %v6615_v34 = vld [vmem:[#allocation2 + $0xc4] sm:$0xf]  ;;  %v5091_v35 = vld [vmem:[#allocation2 + $0xd8] sm:$0xf0] }
  0x55   :  { %1816 = vmatpush.bf16.msrb.mxu1 %v5874_v3  ;;  %v5097_v36 = vld [vmem:[#allocation2 + $0xc8] sm:$0xf]  ;;  %v6619_v37 = vld [vmem:[#allocation2 + $0xdc] sm:$0xf0]  ;;  %v6616_v38 = vld [vmem:[#allocation2 + $0xcc] sm:$0xf]  ;;  %v7308_v40 = vor.u32 %v6618_v33, %v5089_v32  ;;  %v7310_v41 = vor.u32 %v6615_v34, %v5091_v35 }
  0x56   :  { %1866 = vmatpush.bf16.msrb.mxu2 %v5222_v19  ;;  %v5099_v39 = vld [vmem:[#allocation2 + $0xe0] sm:$0xf0]  ;;  %v7312_v42 = vor.u32 %v6619_v37, %v5097_v36  ;;  %v5203_v45 = vld [vmem:[#allocation5 + $0x30] sm:$0xf0]  ;;  %v5713_v46 = vld [vmem:[#allocation5 + $0x420] sm:$0xf] }
  0x57   :  { %1768 = vmatpush.bf16.msrb.mxu0 %v5730_v23  ;;  %1915 = vmatpush.bf16.msrb.mxu3 %v5350_v28  ;;  %8283 = vst [vmem:[#allocation28_spill] sm:$0xff] %v7308_v40  ;;  %v7314_v43 = vor.u32 %v6616_v38, %v5099_v39  ;;  %v6643_v44 = vld [vmem:[#allocation5 + $0x24] sm:$0xf]  ;;  %v6773_v55 = vld [vmem:[#allocation5 + $0x42c] sm:$0xf0] }
  0x58   :  { %8284 = vst [vmem:[#allocation29_spill] sm:$0xff] %v7310_v41  ;;  %v5206_v47 = vor.u32 %v6643_v44, %v5203_v45  ;;  %v6675_v56 = vld [vmem:[#allocation5 + $0x124] sm:$0xf]  ;;  %v5331_v58 = vld [vmem:[#allocation5 + $0x130] sm:$0xf0]  ;;  %v5714_v59 = vor.u32 %v6773_v55, %v5713_v46 }
  0x59   :  { %1817 = vmatpush.bf16.msrb.mxu1 %v5858_v31  ;;  %v5334_v60 = vor.u32 %v6675_v56, %v5331_v58  ;;  %v5841_v61 = vld [vmem:[#allocation5 + $0x520] sm:$0xf]  ;;  %v6805_v62 = vld [vmem:[#allocation5 + $0x52c] sm:$0xf0]  ;;  %v6624_v1 = vld [vmem:[#allocation2 + $0x104] sm:$0xf0] }
  0x5a   :  { %1867 = vmatpush.bf16.msrb.mxu2 %v5206_v47  ;;  %v5842_v63 = vor.u32 %v6805_v62, %v5841_v61  ;;  %v5113_v0 = vld [vmem:[#allocation2 + $0xf0] sm:$0xf]  ;;  %v6621_v2 = vld [vmem:[#allocation2 + $0xf4] sm:$0xf]  ;;  %v5115_v3 = vld [vmem:[#allocation2 + $0x108] sm:$0xf0] }
  0x5b   :  { %1769 = vmatpush.bf16.msrb.mxu0 %v5714_v59  ;;  %1916 = vmatpush.bf16.msrb.mxu3 %v5334_v60  ;;  %v5121_v4 = vld [vmem:[#allocation2 + $0xf8] sm:$0xf]  ;;  %v6625_v5 = vld [vmem:[#allocation2 + $0x10c] sm:$0xf0]  ;;  %v6622_v6 = vld [vmem:[#allocation2 + $0xfc] sm:$0xf]  ;;  %v7320_v8 = vor.u32 %v6624_v1, %v5113_v0  ;;  %v7322_v9 = vor.u32 %v6621_v2, %v5115_v3 }
  0x5c   :  { %v5123_v7 = vld [vmem:[#allocation2 + $0x110] sm:$0xf0]  ;;  %v7324_v10 = vor.u32 %v6625_v5, %v5121_v4  ;;  %v6639_v16 = vld [vmem:[#allocation5 + $0x4] sm:$0xf]  ;;  %v5697_v18 = vld [vmem:[#allocation5 + $0x400] sm:$0xf] }
  0x5d   :  { %1818 = vmatpush.bf16.msrb.mxu1 %v5842_v63  ;;  %8285 = vst [vmem:[#allocation30_spill] sm:$0xff] %v7320_v8  ;;  %v7326_v11 = vor.u32 %v6622_v6, %v5123_v7  ;;  %v5187_v17 = vld [vmem:[#allocation5 + $0x10] sm:$0xf0]  ;;  %v6769_v20 = vld [vmem:[#allocation5 + $0x40c] sm:$0xf0] }
  0x5e   :  { %8286 = vst [vmem:[#allocation31_spill] sm:$0xff] %v7322_v9  ;;  %v5190_v19 = vor.u32 %v6639_v16, %v5187_v17  ;;  %v6671_v21 = vld [vmem:[#allocation5 + $0x104] sm:$0xf]  ;;  %v5315_v22 = vld [vmem:[#allocation5 + $0x110] sm:$0xf0]  ;;  %v5698_v23 = vor.u32 %v6769_v20, %v5697_v18 }
  0x5f   :  { %v5318_v28 = vor.u32 %v6671_v21, %v5315_v22  ;;  %v5825_v29 = vld [vmem:[#allocation5 + $0x500] sm:$0xf]  ;;  %v6801_v30 = vld [vmem:[#allocation5 + $0x50c] sm:$0xf0]  ;;  %v6630_v33 = vld [vmem:[#allocation2 + $0x134] sm:$0xf0] }
  0x60   :  { %1585 = vmatmul.bf16.gmra.mxu0 %v7284_v49  ;;  %1634 = vmatmul.bf16.gmra.mxu1 %v7286_v50  ;;  %v5826_v31 = vor.u32 %v6801_v30, %v5825_v29  ;;  %v5137_v32 = vld [vmem:[#allocation2 + $0x120] sm:$0xf]  ;;  %v6627_v34 = vld [vmem:[#allocation2 + $0x124] sm:$0xf]  ;;  %v5139_v35 = vld [vmem:[#allocation2 + $0x138] sm:$0xf0] }
  0x61   :  { %1683 = vmatmul.bf16.gmra.mxu2 %v7288_v51  ;;  %1770 = vmatpush.bf16.msrb.mxu0 %v5698_v23  ;;  %v5145_v36 = vld [vmem:[#allocation2 + $0x128] sm:$0xf]  ;;  %v6631_v37 = vld [vmem:[#allocation2 + $0x13c] sm:$0xf0]  ;;  %v6628_v38 = vld [vmem:[#allocation2 + $0x12c] sm:$0xf]  ;;  %v7332_v44 = vor.u32 %v6630_v33, %v5137_v32  ;;  %v7334_v45 = vor.u32 %v6627_v34, %v5139_v35 }
  0x62   :  { %1732 = vmatmul.bf16.gmra.mxu3 %v7290_v52  ;;  %1868 = vmatpush.bf16.msrb.mxu2 %v5190_v19  ;;  %v5147_v39 = vld [vmem:[#allocation2 + $0x140] sm:$0xf0]  ;;  %v7336_v46 = vor.u32 %v6631_v37, %v5145_v36  ;;  %v5811_v56 = vld [vmem:[#allocation5 + $0x4f0] sm:$0xf0]  ;;  %v5161_v4 = vld [vmem:[#allocation2 + $0x150] sm:$0xf] }
  0x63   :  { %1917 = vmatpush.bf16.msrb.mxu3 %v5318_v28  ;;  %1819 = vmatpush.bf16.msrb.mxu1 %v5826_v31  ;;  %8287 = vst [vmem:[#allocation32_spill] sm:$0xff] %v7332_v44  ;;  %v7338_v47 = vor.u32 %v6628_v38, %v5147_v39  ;;  %v6795_v55 = vld [vmem:[#allocation5 + $0x4e4] sm:$0xf]  ;;  %v5555_v60 = vld [vmem:[#allocation5 + $0x2f0] sm:$0xf0] }
  0x64   :  { %8288 = vst [vmem:[#allocation33_spill] sm:$0xff] %v7334_v45  ;;  %v6731_v58 = vld [vmem:[#allocation5 + $0x2e4] sm:$0xf]  ;;  %v5814_v59 = vor.u32 %v6795_v55, %v5811_v56  ;;  %v5939_v62 = vld [vmem:[#allocation5 + $0x5f0] sm:$0xf0] }
  0x65   :  { %v6827_v61 = vld [vmem:[#allocation5 + $0x5e4] sm:$0xf]  ;;  %v5558_v63 = vor.u32 %v6731_v58, %v5555_v60  ;;  %v5683_v2 = vld [vmem:[#allocation5 + $0x3f0] sm:$0xf0]  ;;  %v6636_v5 = vld [vmem:[#allocation2 + $0x164] sm:$0xf0] }
  0x66   :  { %v5942_v0 = vor.u32 %v6827_v61, %v5939_v62  ;;  %2057 = vmatpush.bf16.msra.mxu2 %v5814_v59  ;;  %v6763_v1 = vld [vmem:[#allocation5 + $0x3e4] sm:$0xf]  ;;  %v6633_v6 = vld [vmem:[#allocation2 + $0x154] sm:$0xf]  ;;  %v5163_v7 = vld [vmem:[#allocation2 + $0x168] sm:$0xf0]  ;;  %v7344_v20 = vor.u32 %v6636_v5, %v5161_v4 }
  0x67   :  { %1959 = vmatpush.bf16.msra.mxu0 %v5558_v63  ;;  %v5686_v3 = vor.u32 %v6763_v1, %v5683_v2  ;;  %v5169_v16 = vld [vmem:[#allocation2 + $0x158] sm:$0xf]  ;;  %v6637_v17 = vld [vmem:[#allocation2 + $0x16c] sm:$0xf0]  ;;  %v6634_v18 = vld [vmem:[#allocation2 + $0x15c] sm:$0xf]  ;;  %v7346_v21 = vor.u32 %v6633_v6, %v5163_v7 }
  0x68   :  { %2106 = vmatpush.bf16.msra.mxu3 %v5942_v0  ;;  %v5171_v19 = vld [vmem:[#allocation2 + $0x170] sm:$0xf0]  ;;  %8289 = vst [vmem:[#allocation34_spill] sm:$0xff] %v7344_v20  ;;  %v7348_v22 = vor.u32 %v6637_v17, %v5169_v16  ;;  %v6791_v28 = vld [vmem:[#allocation5 + $0x4c4] sm:$0xf] }
  0x69   :  { %2008 = vmatpush.bf16.msra.mxu1 %v5686_v3  ;;  %8290 = vst [vmem:[#allocation35_spill] sm:$0xff] %v7346_v21  ;;  %v7350_v23 = vor.u32 %v6634_v18, %v5171_v19  ;;  %v5795_v29 = vld [vmem:[#allocation5 + $0x4d0] sm:$0xf0]  ;;  %v6727_v30 = vld [vmem:[#allocation5 + $0x2c4] sm:$0xf] }
  0x6a   :  { %8291 = vst [vmem:[#allocation36_spill] sm:$0xff] %v7348_v22  ;;  %v5798_v31 = vor.u32 %v6791_v28, %v5795_v29  ;;  %v5539_v32 = vld [vmem:[#allocation5 + $0x2d0] sm:$0xf0]  ;;  %v6823_v33 = vld [vmem:[#allocation5 + $0x5c4] sm:$0xf] }
  0x6b   :  { %8292 = vst [vmem:[#allocation37_spill] sm:$0xff] %v7350_v23  ;;  %v5923_v34 = vld [vmem:[#allocation5 + $0x5d0] sm:$0xf0]  ;;  %v5542_v35 = vor.u32 %v6727_v30, %v5539_v32  ;;  %v7356_v37 = vld [vmem:[#allocation7] sm:$0xf] }
  0x6c   :  { %v5926_v36 = vor.u32 %v6823_v33, %v5923_v34  ;;  %2058 = vmatpush.bf16.msra.mxu2 %v5798_v31  ;;  %v6759_v38 = vld [vmem:[#allocation5 + $0x3c4] sm:$0xf]  ;;  %v5667_v39 = vld [vmem:[#allocation5 + $0x3d0] sm:$0xf0]  ;;  %v5009_v56 = vld [vmem:[#allocation2 + $0x10] sm:$0xf] }
  0x6d   :  { %1960 = vmatpush.bf16.msra.mxu0 %v5542_v35  ;;  %v5670_v55 = vor.u32 %v6759_v38, %v5667_v39  ;;  %v6596_v58 = vld [vmem:[#allocation2 + $0x24] sm:$0xf0]  ;;  %v7359_v59 = vperm.slane %v7356_v37, 0  ;;  %v6593_v60 = vld [vmem:[#allocation2 + $0x14] sm:$0xf] }
  0x6e   :  { %2107 = vmatpush.bf16.msra.mxu3 %v5926_v36  ;;  %v5011_v61 = vld [vmem:[#allocation2 + $0x28] sm:$0xf0]  ;;  %v7361_v62 = vor.u32 %v6596_v58, %v5009_v56  ;;  %v6787_v4 = vld [vmem:[#allocation5 + $0x4a4] sm:$0xf]  ;;  %v5779_v5 = vld [vmem:[#allocation5 + $0x4b0] sm:$0xf0] }
  0x6f   :  { %2009 = vmatpush.bf16.msra.mxu1 %v5670_v55  ;;  %v7363_v0 = vor.u32 %v6593_v60, %v5011_v61  ;;  %v6723_v6 = vld [vmem:[#allocation5 + $0x2a4] sm:$0xf]  ;;  %v5782_v7 = vor.u32 %v6787_v4, %v5779_v5  ;;  %v5523_v16 = vld [vmem:[#allocation5 + $0x2b0] sm:$0xf0]  ;;  %v5033_v56 = vld [vmem:[#allocation2 + $0x40] sm:$0xf] }
  0x70   :  { %1590 = vmatmul.bf16.gmra.mxu0 %v7296_v12  ;;  %1639 = vmatmul.bf16.gmra.mxu1 %v7298_v13  ;;  %v6819_v17 = vld [vmem:[#allocation5 + $0x5a4] sm:$0xf]  ;;  %v5907_v18 = vld [vmem:[#allocation5 + $0x5b0] sm:$0xf0]  ;;  %v5526_v28 = vor.u32 %v6723_v6, %v5523_v16  ;;  %v6602_v58 = vld [vmem:[#allocation2 + $0x54] sm:$0xf0] }
  0x71   :  { %1688 = vmatmul.bf16.gmra.mxu2 %v7300_v14  ;;  %v5910_v29 = vor.u32 %v6819_v17, %v5907_v18  ;;  %v6755_v36 = vld [vmem:[#allocation5 + $0x3a4] sm:$0xf]  ;;  %v5651_v38 = vld [vmem:[#allocation5 + $0x3b0] sm:$0xf0]  ;;  %v5035_v61 = vld [vmem:[#allocation2 + $0x58] sm:$0xf0] }
  0x72   :  { %1737 = vmatmul.bf16.gmra.mxu3 %v7302_v15  ;;  %2059 = vmatpush.bf16.msra.mxu2 %v5782_v7  ;;  %v5654_v55 = vor.u32 %v6755_v36, %v5651_v38  ;;  %v6599_v60 = vld [vmem:[#allocation2 + $0x44] sm:$0xf] }
  0x73   :  { %1961 = vmatpush.bf16.msra.mxu0 %v5526_v28  ;;  %2108 = vmatpush.bf16.msra.mxu3 %v5910_v29  ;;  %v7375_v5 = vor.u32 %v6599_v60, %v5035_v61  ;;  %v6783_v18 = vld [vmem:[#allocation5 + $0x484] sm:$0xf] }
  0x74   :  { %2010 = vmatpush.bf16.msra.mxu1 %v5654_v55  ;;  %v6719_v28 = vld [vmem:[#allocation5 + $0x284] sm:$0xf] }
  0x75   :  { %v6751_v61 = vld [vmem:[#allocation5 + $0x384] sm:$0xf] }
  0x80   :  { %1595 = vmatmul.bf16.gmra.mxu0 %v7308_v40  ;;  %1644 = vmatmul.bf16.gmra.mxu1 %v7310_v41 }
  0x81   :  { %1693 = vmatmul.bf16.gmra.mxu2 %v7312_v42 }
  0x82   :  { %1742 = vmatmul.bf16.gmra.mxu3 %v7314_v43 }
  0x90   :  { %1600 = vmatmul.bf16.gmra.mxu0 %v7320_v8  ;;  %1649 = vmatmul.bf16.gmra.mxu1 %v7322_v9 }
  0x91   :  { %1698 = vmatmul.bf16.gmra.mxu2 %v7324_v10 }
  0x92   :  { %1747 = vmatmul.bf16.gmra.mxu3 %v7326_v11 }
  0xa0   :  { %1605 = vmatmul.bf16.gmra.mxu0 %v7332_v44  ;;  %1654 = vmatmul.bf16.gmra.mxu1 %v7334_v45 }
  0xa1   :  { %1703 = vmatmul.bf16.gmra.mxu2 %v7336_v46 }
  0xa2   :  { %1752 = vmatmul.bf16.gmra.mxu3 %v7338_v47 }
  0xb0   :  { %1610 = vmatmul.bf16.gmra.mxu0 %v7344_v20  ;;  %1659 = vmatmul.bf16.gmra.mxu1 %v7346_v21 }
  0xb1   :  { %1708 = vmatmul.bf16.gmra.mxu2 %v7348_v22  ;;  %v6629_v22 = vld [vmem:[#allocation2 + $0x134] sm:$0xf] }
  0xb2   :  { %1757 = vmatmul.bf16.gmra.mxu3 %v7350_v23  ;;  %v6632_v23 = vld [vmem:[#allocation2 + $0x144] sm:$0xf0] }
  0xbd   :  { %v1576_v63 = vpop.f32.mrf.mxu0  ;;  %v1625_v2 = vpop.f32.mrf.mxu1 }
  0xbe   :  { %v1577_v1 = vadd.f32 %v1576_v63, %v7359_v59 }
  0xc0   :  { %v1626_v3 = vadd.f32 %v1625_v2, %v1577_v1  ;;  %1771 = vmatmul.bf16.vlgmr.msrb.gmra.mxu0 %v7361_v62  ;;  %1820 = vmatmul.bf16.vlgmr.msrb.gmra.mxu1 %v7363_v0  ;;  %v7373_v1 = vor.u32 %v6602_v58, %v5033_v56 }
  0xc1   :  { %1869 = vmatmul.bf16.vlgmr.msrb.gmra.mxu2 %v7260_v48  ;;  %v6623_v48 = vld [vmem:[#allocation2 + $0x104] sm:$0xf] }
  0xc2   :  { %1918 = vmatmul.bf16.vlgmr.msrb.gmra.mxu3 %v7262_v53  ;;  %v6626_v53 = vld [vmem:[#allocation2 + $0x114] sm:$0xf0] }
  0xc4   :  { %v1674_v19 = vpop.f32.mrf.mxu2 }
  0xc5   :  { %v1675_v30 = vadd.f32 %v1674_v19, %v1626_v3  ;;  %v1723_v31 = vpop.f32.mrf.mxu3  ;;  %v1578_v32 = vpop.f32.mrf.mxu0  ;;  %v5763_v19 = vld [vmem:[#allocation5 + $0x490] sm:$0xf0] }
  0xc6   :  { %v1579_v33 = vadd.f32 %v1578_v32, %v7359_v59  ;;  %v1627_v34 = vpop.f32.mrf.mxu1  ;;  %v5766_v29 = vor.u32 %v6783_v18, %v5763_v19  ;;  %v5891_v32 = vld [vmem:[#allocation5 + $0x590] sm:$0xf0]  ;;  %v5059_v18 = vld [vmem:[#allocation2 + $0x88] sm:$0xf0] }
  0xc7   :  { %v7371_v35 = vadd.f32 %v1723_v31, %v1675_v30  ;;  %v5507_v30 = vld [vmem:[#allocation5 + $0x290] sm:$0xf0]  ;;  %v6815_v31 = vld [vmem:[#allocation5 + $0x584] sm:$0xf] }
  0xc8   :  { %v1628_v39 = vadd.f32 %v1627_v34, %v1579_v33  ;;  %v5510_v34 = vor.u32 %v6719_v28, %v5507_v30  ;;  %v5894_v36 = vor.u32 %v6815_v31, %v5891_v32  ;;  %2060 = vmatpush.bf16.msra.mxu2 %v5766_v29 }
  0xca   :  { %1962 = vmatpush.bf16.msra.mxu0 %v5510_v34  ;;  %2109 = vmatpush.bf16.msra.mxu3 %v5894_v36 }
  0xcc   :  { %v1676_v63 = vpop.f32.mrf.mxu2 }
  0xcd   :  { %v1677_v2 = vadd.f32 %v1676_v63, %v1628_v39  ;;  %v1725_v3 = vpop.f32.mrf.mxu3  ;;  %v1581_v4 = vpop.f32.mrf.mxu0  ;;  %v5635_v63 = vld [vmem:[#allocation5 + $0x390] sm:$0xf0] }
  0xce   :  { %v1582_v6 = vadd.f32 %v1581_v4, %v7359_v59  ;;  %v1630_v7 = vpop.f32.mrf.mxu1  ;;  %v5057_v4 = vld [vmem:[#allocation2 + $0x70] sm:$0xf] }
  0xcf   :  { %v7378_v16 = vadd.f32 %v1725_v3, %v1677_v2  ;;  %v5638_v3 = vor.u32 %v6751_v61, %v5635_v63  ;;  %v6811_v61 = vld [vmem:[#allocation5 + $0x564] sm:$0xf]  ;;  %v5875_v63 = vld [vmem:[#allocation5 + $0x570] sm:$0xf0] }
  0xd0   :  { %v1631_v17 = vadd.f32 %v1630_v7, %v1582_v6  ;;  %1776 = vmatmul.bf16.gmra.mxu0 %v7373_v1  ;;  %1825 = vmatmul.bf16.gmra.mxu1 %v7375_v5  ;;  %v6608_v6 = vld [vmem:[#allocation2 + $0x84] sm:$0xf0]  ;;  %v6605_v7 = vld [vmem:[#allocation2 + $0x74] sm:$0xf] }
  0xd1   :  { %1874 = vmatmul.bf16.gmra.mxu2 %v7272_v24  ;;  %2011 = vmatpush.bf16.msra.mxu1 %v5638_v3  ;;  %v7387_v19 = vor.u32 %v6608_v6, %v5057_v4  ;;  %v7389_v31 = vor.u32 %v6605_v7, %v5059_v18  ;;  %v5878_v4 = vor.u32 %v6811_v61, %v5875_v63  ;;  %v6617_v24 = vld [vmem:[#allocation2 + $0xd4] sm:$0xf] }
  0xd2   :  { %1923 = vmatmul.bf16.gmra.mxu3 %v7274_v25  ;;  %v6620_v25 = vld [vmem:[#allocation2 + $0xe4] sm:$0xf0] }
  0xd3   :  { %2110 = vmatpush.bf16.msra.mxu3 %v5878_v4 }
  0xd4   :  { %v1679_v33 = vpop.f32.mrf.mxu2 }
  0xd5   :  { %v1680_v38 = vadd.f32 %v1679_v33, %v1631_v17  ;;  %v1728_v39 = vpop.f32.mrf.mxu3  ;;  %v1583_v55 = vpop.f32.mrf.mxu0 }
  0xd6   :  { %v1584_v56 = vadd.f32 %v1583_v55, %v7359_v59  ;;  %v1632_v58 = vpop.f32.mrf.mxu1  ;;  %v6715_v55 = vld [vmem:[#allocation5 + $0x264] sm:$0xf] }
  0xd7   :  { %v7385_v60 = vadd.f32 %v1728_v39, %v1680_v38  ;;  %v6779_v38 = vld [vmem:[#allocation5 + $0x464] sm:$0xf]  ;;  %v5747_v39 = vld [vmem:[#allocation5 + $0x470] sm:$0xf0] }
  0xd8   :  { %v1633_v2 = vadd.f32 %v1632_v58, %v1584_v56  ;;  %v5750_v56 = vor.u32 %v6779_v38, %v5747_v39  ;;  %v5491_v58 = vld [vmem:[#allocation5 + $0x270] sm:$0xf0]  ;;  %v5081_v39 = vld [vmem:[#allocation2 + $0xa0] sm:$0xf] }
  0xd9   :  { %v5494_v3 = vor.u32 %v6715_v55, %v5491_v58  ;;  %v5083_v55 = vld [vmem:[#allocation2 + $0xb8] sm:$0xf0] }
  0xda   :  { %2061 = vmatpush.bf16.msra.mxu2 %v5750_v56 }
  0xdb   :  { %1963 = vmatpush.bf16.msra.mxu0 %v5494_v3 }
  0xdc   :  { %v1681_v17 = vpop.f32.mrf.mxu2 }
  0xdd   :  { %v1682_v28 = vadd.f32 %v1681_v17, %v1633_v2  ;;  %v1730_v29 = vpop.f32.mrf.mxu3  ;;  %v1586_v30 = vpop.f32.mrf.mxu0 }
  0xde   :  { %v1587_v32 = vadd.f32 %v1586_v30, %v7359_v59  ;;  %v1635_v33 = vpop.f32.mrf.mxu1  ;;  %v6747_v30 = vld [vmem:[#allocation5 + $0x364] sm:$0xf] }
  0xdf   :  { %v7392_v34 = vadd.f32 %v1730_v29, %v1682_v28 }
  0xe0   :  { %v1636_v36 = vadd.f32 %v1635_v33, %v1587_v32  ;;  %1781 = vmatmul.bf16.gmra.mxu0 %v7387_v19  ;;  %1830 = vmatmul.bf16.gmra.mxu1 %v7389_v31  ;;  %v5619_v32 = vld [vmem:[#allocation5 + $0x370] sm:$0xf0] }
  0xe1   :  { %1879 = vmatmul.bf16.gmra.mxu2 %v7284_v49  ;;  %v5622_v38 = vor.u32 %v6747_v30, %v5619_v32  ;;  %v6611_v49 = vld [vmem:[#allocation2 + $0xa4] sm:$0xf]  ;;  %v5859_v32 = vld [vmem:[#allocation5 + $0x550] sm:$0xf0] }
  0xe2   :  { %1928 = vmatmul.bf16.gmra.mxu3 %v7286_v50  ;;  %v6614_v50 = vld [vmem:[#allocation2 + $0xb4] sm:$0xf0]  ;;  %v6807_v30 = vld [vmem:[#allocation5 + $0x544] sm:$0xf] }
  0xe3   :  { %2012 = vmatpush.bf16.msra.mxu1 %v5622_v38  ;;  %v7401_v58 = vor.u32 %v6614_v50, %v5081_v39  ;;  %v6775_v50 = vld [vmem:[#allocation5 + $0x444] sm:$0xf]  ;;  %v5862_v39 = vor.u32 %v6807_v30, %v5859_v32 }
  0xe4   :  { %v1684_v2 = vpop.f32.mrf.mxu2 }
  0xe5   :  { %v1685_v6 = vadd.f32 %v1684_v2, %v1636_v36  ;;  %v1733_v7 = vpop.f32.mrf.mxu3  ;;  %v1588_v18 = vpop.f32.mrf.mxu0  ;;  %v7403_v2 = vor.u32 %v6611_v49, %v5083_v55  ;;  %v5475_v49 = vld [vmem:[#allocation5 + $0x250] sm:$0xf0]  ;;  %2111 = vmatpush.bf16.msra.mxu3 %v5862_v39 }
  0xe6   :  { %v1589_v17 = vadd.f32 %v1588_v18, %v7359_v59  ;;  %v1637_v28 = vpop.f32.mrf.mxu1  ;;  %v5731_v18 = vld [vmem:[#allocation5 + $0x450] sm:$0xf0] }
  0xe7   :  { %v7399_v29 = vadd.f32 %v1733_v7, %v1685_v6 }
  0xe8   :  { %v1638_v33 = vadd.f32 %v1637_v28, %v1589_v17  ;;  %v6711_v17 = vld [vmem:[#allocation5 + $0x244] sm:$0xf]  ;;  %v5734_v28 = vor.u32 %v6775_v50, %v5731_v18 }
  0xe9   :  { %v5478_v38 = vor.u32 %v6711_v17, %v5475_v49  ;;  %v5107_v17 = vld [vmem:[#allocation2 + $0xe8] sm:$0xf0] }
  0xea   :  { %2062 = vmatpush.bf16.msra.mxu2 %v5734_v28 }
  0xeb   :  { %1964 = vmatpush.bf16.msra.mxu0 %v5478_v38 }
  0xec   :  { %v1686_v36 = vpop.f32.mrf.mxu2 }
  0xed   :  { %v1687_v56 = vadd.f32 %v1686_v36, %v1638_v33  ;;  %v1735_v61 = vpop.f32.mrf.mxu3  ;;  %v1591_v63 = vpop.f32.mrf.mxu0 }
  0xee   :  { %v1592_v3 = vadd.f32 %v1591_v63, %v7359_v59  ;;  %v1640_v4 = vpop.f32.mrf.mxu1 }
  0xef   :  { %v7406_v6 = vadd.f32 %v1735_v61, %v1687_v56 }
  0xf0   :  { %v1641_v7 = vadd.f32 %v1640_v4, %v1592_v3  ;;  %1786 = vmatmul.bf16.gmra.mxu0 %v7401_v58  ;;  %1835 = vmatmul.bf16.gmra.mxu1 %v7403_v2  ;;  %v6743_v4 = vld [vmem:[#allocation5 + $0x344] sm:$0xf] }
  0xf1   :  { %1884 = vmatmul.bf16.gmra.mxu2 %v7296_v12  ;;  %v5105_v12 = vld [vmem:[#allocation2 + $0xd0] sm:$0xf] }
  0xf2   :  { %1933 = vmatmul.bf16.gmra.mxu3 %v7298_v13  ;;  %v5603_v13 = vld [vmem:[#allocation5 + $0x350] sm:$0xf0]  ;;  %v7415_v49 = vor.u32 %v6620_v25, %v5105_v12  ;;  %v6771_v25 = vld [vmem:[#allocation5 + $0x424] sm:$0xf] }
  0xf3   :  { %v5606_v18 = vor.u32 %v6743_v4, %v5603_v13  ;;  %v5715_v12 = vld [vmem:[#allocation5 + $0x430] sm:$0xf0]  ;;  %v6707_v13 = vld [vmem:[#allocation5 + $0x224] sm:$0xf] }
  0xf4   :  { %v1689_v33 = vpop.f32.mrf.mxu2 }
  0xf5   :  { %v1690_v55 = vadd.f32 %v1689_v33, %v1641_v7  ;;  %v1738_v36 = vpop.f32.mrf.mxu3  ;;  %v1593_v56 = vpop.f32.mrf.mxu0  ;;  %2013 = vmatpush.bf16.msra.mxu1 %v5606_v18  ;;  %v7417_v33 = vor.u32 %v6617_v24, %v5107_v17  ;;  %v5459_v24 = vld [vmem:[#allocation5 + $0x230] sm:$0xf0] }
  0xf6   :  { %v1594_v61 = vadd.f32 %v1593_v56, %v7359_v59  ;;  %v1642_v63 = vpop.f32.mrf.mxu1  ;;  %v5718_v56 = vor.u32 %v6771_v25, %v5715_v12 }
  0xf7   :  { %v7413_v3 = vadd.f32 %v1738_v36, %v1690_v55 }
  0xf8   :  { %v1643_v50 = vadd.f32 %v1642_v63, %v1594_v61  ;;  %v6803_v61 = vld [vmem:[#allocation5 + $0x524] sm:$0xf]  ;;  %v5843_v63 = vld [vmem:[#allocation5 + $0x530] sm:$0xf0]  ;;  %2063 = vmatpush.bf16.msra.mxu2 %v5718_v56 }
  0xf9   :  { %v5846_v18 = vor.u32 %v6803_v61, %v5843_v63 }
  0xfb   :  { %2112 = vmatpush.bf16.msra.mxu3 %v5846_v18 }
  0xfc   :  { %v1691_v7 = vpop.f32.mrf.mxu2 }
  0xfd   :  { %v1692_v28 = vadd.f32 %v1691_v7, %v1643_v50  ;;  %v1740_v30 = vpop.f32.mrf.mxu3  ;;  %v1596_v32 = vpop.f32.mrf.mxu0  ;;  %v5462_v50 = vor.u32 %v6707_v13, %v5459_v24  ;;  %v5131_v13 = vld [vmem:[#allocation2 + $0x118] sm:$0xf0] }
  0xfe   :  { %v1597_v38 = vadd.f32 %v1596_v32, %v7359_v59  ;;  %v1645_v39 = vpop.f32.mrf.mxu1 }
  0xff   :  { %v7420_v55 = vadd.f32 %v1740_v30, %v1692_v28  ;;  %1965 = vmatpush.bf16.msra.mxu0 %v5462_v50 }
 0x100   :  { %v1646_v36 = vadd.f32 %v1645_v39, %v1597_v38  ;;  %1791 = vmatmul.bf16.gmra.mxu0 %v7415_v49  ;;  %1840 = vmatmul.bf16.gmra.mxu1 %v7417_v33  ;;  %v6739_v39 = vld [vmem:[#allocation5 + $0x324] sm:$0xf] }
 0x101   :  { %1889 = vmatmul.bf16.gmra.mxu2 %v7308_v40  ;;  %v5129_v40 = vld [vmem:[#allocation2 + $0x100] sm:$0xf] }
 0x102   :  { %1938 = vmatmul.bf16.gmra.mxu3 %v7310_v41  ;;  %v5587_v41 = vld [vmem:[#allocation5 + $0x330] sm:$0xf0]  ;;  %v7429_v24 = vor.u32 %v6626_v53, %v5129_v40  ;;  %v6767_v53 = vld [vmem:[#allocation5 + $0x404] sm:$0xf] }
 0x103   :  { %v5590_v12 = vor.u32 %v6739_v39, %v5587_v41  ;;  %v5699_v40 = vld [vmem:[#allocation5 + $0x410] sm:$0xf0]  ;;  %v6703_v41 = vld [vmem:[#allocation5 + $0x204] sm:$0xf] }
 0x104   :  { %v1694_v4 = vpop.f32.mrf.mxu2  ;;  %8293 = vst [vmem:[#allocation38_spill] sm:$0xff] %v7429_v24 }
 0x105   :  { %v1695_v17 = vadd.f32 %v1694_v4, %v1646_v36  ;;  %v1743_v7 = vpop.f32.mrf.mxu3  ;;  %v1598_v28 = vpop.f32.mrf.mxu0  ;;  %2014 = vmatpush.bf16.msra.mxu1 %v5590_v12  ;;  %v7431_v4 = vor.u32 %v6623_v48, %v5131_v13  ;;  %v5443_v48 = vld [vmem:[#allocation5 + $0x210] sm:$0xf0] }
 0x106   :  { %v1599_v30 = vadd.f32 %v1598_v28, %v7359_v59  ;;  %v1647_v32 = vpop.f32.mrf.mxu1  ;;  %v5702_v28 = vor.u32 %v6767_v53, %v5699_v40 }
 0x107   :  { %v7427_v38 = vadd.f32 %v1743_v7, %v1695_v17  ;;  %8294 = vst [vmem:[#allocation39_spill] sm:$0xff] %v7431_v4 }
 0x108   :  { %v1648_v25 = vadd.f32 %v1647_v32, %v1599_v30  ;;  %v6799_v30 = vld [vmem:[#allocation5 + $0x504] sm:$0xf]  ;;  %v5827_v32 = vld [vmem:[#allocation5 + $0x510] sm:$0xf0]  ;;  %2064 = vmatpush.bf16.msra.mxu2 %v5702_v28 }
 0x109   :  { %v5830_v12 = vor.u32 %v6799_v30, %v5827_v32 }
 0x10b   :  { %2113 = vmatpush.bf16.msra.mxu3 %v5830_v12 }
 0x10c   :  { %v1696_v36 = vpop.f32.mrf.mxu2 }
 0x10d   :  { %v1697_v56 = vadd.f32 %v1696_v36, %v1648_v25  ;;  %v1745_v61 = vpop.f32.mrf.mxu3  ;;  %v1601_v63 = vpop.f32.mrf.mxu0  ;;  %v5446_v25 = vor.u32 %v6703_v41, %v5443_v48  ;;  %v5155_v41 = vld [vmem:[#allocation2 + $0x148] sm:$0xf0] }
 0x10e   :  { %v1602_v50 = vadd.f32 %v1601_v63, %v7359_v59  ;;  %v1650_v18 = vpop.f32.mrf.mxu1 }
 0x10f   :  { %v7434_v17 = vadd.f32 %v1745_v61, %v1697_v56  ;;  %1966 = vmatpush.bf16.msra.mxu0 %v5446_v25 }
 0x110   :  { %v1651_v7 = vadd.f32 %v1650_v18, %v1602_v50  ;;  %1796 = vmatmul.bf16.gmra.mxu0 %v7429_v24  ;;  %1845 = vmatmul.bf16.gmra.mxu1 %v7431_v4  ;;  %v6735_v18 = vld [vmem:[#allocation5 + $0x304] sm:$0xf] }
 0x111   :  { %1894 = vmatmul.bf16.gmra.mxu2 %v7320_v8  ;;  %v5153_v8 = vld [vmem:[#allocation2 + $0x130] sm:$0xf] }
 0x112   :  { %1943 = vmatmul.bf16.gmra.mxu3 %v7322_v9  ;;  %v5571_v9 = vld [vmem:[#allocation5 + $0x310] sm:$0xf0]  ;;  %v7443_v48 = vor.u32 %v6632_v23, %v5153_v8  ;;  %v5561_v8 = vld [vmem:[#allocation5 + $0x2e8] sm:$0xf] }
 0x113   :  { %v5574_v40 = vor.u32 %v6735_v18, %v5571_v9  ;;  %v6734_v9 = vld [vmem:[#allocation5 + $0x2f4] sm:$0xf0]  ;;  %v5305_v23 = vld [vmem:[#allocation5 + $0xe8] sm:$0xf] }
 0x114   :  { %v1699_v39 = vpop.f32.mrf.mxu2  ;;  %8295 = vst [vmem:[#allocation40_spill] sm:$0xff] %v7443_v48 }
 0x115   :  { %v1700_v13 = vadd.f32 %v1699_v39, %v1651_v7  ;;  %v1748_v36 = vpop.f32.mrf.mxu3  ;;  %v1603_v56 = vpop.f32.mrf.mxu0  ;;  %2015 = vmatpush.bf16.msra.mxu1 %v5574_v40  ;;  %v7445_v39 = vor.u32 %v6629_v22, %v5155_v41  ;;  %v6670_v22 = vld [vmem:[#allocation5 + $0xf4] sm:$0xf0] }
 0x116   :  { %v1604_v61 = vadd.f32 %v1603_v56, %v7359_v59  ;;  %v1652_v63 = vpop.f32.mrf.mxu1  ;;  %v5562_v56 = vor.u32 %v6734_v9, %v5561_v8 }
 0x117   :  { %v7441_v50 = vadd.f32 %v1748_v36, %v1700_v13  ;;  %8296 = vst [vmem:[#allocation41_spill] sm:$0xff] %v7445_v39 }
 0x118   :  { %v1653_v53 = vadd.f32 %v1652_v63, %v1604_v61  ;;  %v5689_v61 = vld [vmem:[#allocation5 + $0x3e8] sm:$0xf]  ;;  %v6766_v63 = vld [vmem:[#allocation5 + $0x3f4] sm:$0xf0]  ;;  %2253 = vmatpush.bf16.msrb.mxu2 %v5562_v56 }
 0x119   :  { %v5690_v40 = vor.u32 %v6766_v63, %v5689_v61 }
 0x11b   :  { %2302 = vmatpush.bf16.msrb.mxu3 %v5690_v40 }
 0x11c   :  { %v1701_v7 = vpop.f32.mrf.mxu2 }
 0x11d   :  { %v1702_v28 = vadd.f32 %v1701_v7, %v1653_v53  ;;  %v1750_v30 = vpop.f32.mrf.mxu3  ;;  %v1606_v32 = vpop.f32.mrf.mxu0  ;;  %v5306_v53 = vor.u32 %v6670_v22, %v5305_v23  ;;  %v5179_v23 = vld [vmem:[#allocation2 + $0x178] sm:$0xf0] }
 0x11e   :  { %v1607_v25 = vadd.f32 %v1606_v32, %v7359_v59  ;;  %v1655_v12 = vpop.f32.mrf.mxu1 }
 0x11f   :  { %v7448_v13 = vadd.f32 %v1750_v30, %v1702_v28  ;;  %2155 = vmatpush.bf16.msrb.mxu0 %v5306_v53 }
 0x120   :  { %v1656_v36 = vadd.f32 %v1655_v12, %v1607_v25  ;;  %1801 = vmatmul.bf16.gmra.mxu0 %v7443_v48  ;;  %1850 = vmatmul.bf16.gmra.mxu1 %v7445_v39  ;;  %v5433_v12 = vld [vmem:[#allocation5 + $0x1e8] sm:$0xf]  ;;  %v6638_v39 = vld [vmem:[#allocation2 + $0x174] sm:$0xf0]  ;;  %v6635_v48 = vld [vmem:[#allocation2 + $0x164] sm:$0xf] }
 0x121   :  { %1899 = vmatmul.bf16.gmra.mxu2 %v7332_v44  ;;  %v5177_v44 = vld [vmem:[#allocation2 + $0x160] sm:$0xf] }
 0x122   :  { %1948 = vmatmul.bf16.gmra.mxu3 %v7334_v45  ;;  %v6702_v45 = vld [vmem:[#allocation5 + $0x1f4] sm:$0xf0]  ;;  %v7457_v22 = vor.u32 %v6638_v39, %v5177_v44  ;;  %v5545_v44 = vld [vmem:[#allocation5 + $0x2c8] sm:$0xf] }
 0x123   :  { %v5434_v9 = vor.u32 %v6702_v45, %v5433_v12  ;;  %v6730_v45 = vld [vmem:[#allocation5 + $0x2d4] sm:$0xf0]  ;;  %v5289_v39 = vld [vmem:[#allocation5 + $0xc8] sm:$0xf] }
 0x124   :  { %v1704_v18 = vpop.f32.mrf.mxu2  ;;  %8297 = vst [vmem:[#allocation42_spill] sm:$0xff] %v7457_v22 }
 0x125   :  { %v1705_v41 = vadd.f32 %v1704_v18, %v1656_v36  ;;  %v1753_v7 = vpop.f32.mrf.mxu3  ;;  %v1608_v28 = vpop.f32.mrf.mxu0  ;;  %2204 = vmatpush.bf16.msrb.mxu1 %v5434_v9  ;;  %v7459_v18 = vor.u32 %v6635_v48, %v5179_v23  ;;  %v6666_v48 = vld [vmem:[#allocation5 + $0xd4] sm:$0xf0] }
 0x126   :  { %v1609_v30 = vadd.f32 %v1608_v28, %v7359_v59  ;;  %v1657_v32 = vpop.f32.mrf.mxu1  ;;  %v5546_v28 = vor.u32 %v6730_v45, %v5545_v44 }
 0x127   :  { %v7455_v25 = vadd.f32 %v1753_v7, %v1705_v41  ;;  %8298 = vst [vmem:[#allocation43_spill] sm:$0xff] %v7459_v18 }
 0x128   :  { %v1658_v8 = vadd.f32 %v1657_v32, %v1609_v30  ;;  %v5673_v30 = vld [vmem:[#allocation5 + $0x3c8] sm:$0xf]  ;;  %v6762_v32 = vld [vmem:[#allocation5 + $0x3d4] sm:$0xf0]  ;;  %2254 = vmatpush.bf16.msrb.mxu2 %v5546_v28 }
 0x129   :  { %v5674_v9 = vor.u32 %v6762_v32, %v5673_v30  ;;  %v7478_v32 = vperm.slane %v7356_v37, 1 }
 0x12b   :  { %2303 = vmatpush.bf16.msrb.mxu3 %v5674_v9  ;;  %v5657_v9 = vld [vmem:[#allocation5 + $0x3a8] sm:$0xf] }
 0x12c   :  { %v1706_v36 = vpop.f32.mrf.mxu2 }
 0x12d   :  { %v1707_v56 = vadd.f32 %v1706_v36, %v1658_v8  ;;  %v1755_v61 = vpop.f32.mrf.mxu3  ;;  %v1611_v63 = vpop.f32.mrf.mxu0  ;;  %v5290_v8 = vor.u32 %v6666_v48, %v5289_v39 }
 0x12e   :  { %v1612_v53 = vadd.f32 %v1611_v63, %v7359_v59  ;;  %v1660_v40 = vpop.f32.mrf.mxu1 }
 0x12f   :  { %v7462_v41 = vadd.f32 %v1755_v61, %v1707_v56  ;;  %2156 = vmatpush.bf16.msrb.mxu0 %v5290_v8  ;;  %v5273_v8 = vld [vmem:[#allocation5 + $0xa8] sm:$0xf] }
 0x130   :  { %v1661_v7 = vadd.f32 %v1660_v40, %v1612_v53  ;;  %1806 = vmatmul.bf16.gmra.mxu0 %v7457_v22  ;;  %1855 = vmatmul.bf16.gmra.mxu1 %v7459_v18  ;;  %v5417_v40 = vld [vmem:[#allocation5 + $0x1c8] sm:$0xf] }
 0x131   :  { %1904 = vmatmul.bf16.gmra.mxu2 %v7344_v20 }
 0x132   :  { %1953 = vmatmul.bf16.gmra.mxu3 %v7346_v21  ;;  %v6698_v21 = vld [vmem:[#allocation5 + $0x1d4] sm:$0xf0] }
 0x133   :  { %v5418_v45 = vor.u32 %v6698_v21, %v5417_v40  ;;  %v6726_v21 = vld [vmem:[#allocation5 + $0x2b4] sm:$0xf0] }
 0x134   :  { %v1709_v12 = vpop.f32.mrf.mxu2 }
 0x135   :  { %v1710_v23 = vadd.f32 %v1709_v12, %v1661_v7  ;;  %v1758_v36 = vpop.f32.mrf.mxu3  ;;  %v1613_v56 = vpop.f32.mrf.mxu0  ;;  %2205 = vmatpush.bf16.msrb.mxu1 %v5418_v45 }
 0x136   :  { %v1614_v61 = vadd.f32 %v1613_v56, %v7359_v59  ;;  %v1662_v63 = vpop.f32.mrf.mxu1 }
 0x137   :  { %v7469_v53 = vadd.f32 %v1758_v36, %v1710_v23  ;;  %v6758_v36 = vld [vmem:[#allocation5 + $0x3b4] sm:$0xf0] }
 0x138   :  { %v1663_v44 = vadd.f32 %v1662_v63, %v1614_v61  ;;  %v5658_v40 = vor.u32 %v6758_v36, %v5657_v9 }
 0x13a   :  { %2304 = vmatpush.bf16.msrb.mxu3 %v5658_v40  ;;  %v5257_v40 = vld [vmem:[#allocation5 + $0x88] sm:$0xf] }
 0x13c   :  { %v1711_v20 = vpop.f32.mrf.mxu2 }
 0x13d   :  { %v1712_v18 = vadd.f32 %v1711_v20, %v1663_v44  ;;  %v1760_v39 = vpop.f32.mrf.mxu3  ;;  %v1772_v48 = vpop.f32.mrf.mxu0  ;;  %v5529_v20 = vld [vmem:[#allocation5 + $0x2a8] sm:$0xf] }
 0x13e   :  { %v1773_v7 = vadd.f32 %v1772_v48, %v7371_v35  ;;  %v1821_v30 = vpop.f32.mrf.mxu1  ;;  %v5530_v12 = vor.u32 %v6726_v21, %v5529_v20  ;;  %v6662_v35 = vld [vmem:[#allocation5 + $0xb4] sm:$0xf0] }
 0x13f   :  { %v7472_v28 = vadd.f32 %v1760_v39, %v1712_v18  ;;  %v5274_v23 = vor.u32 %v6662_v35, %v5273_v8  ;;  %v5401_v39 = vld [vmem:[#allocation5 + $0x1a8] sm:$0xf]  ;;  %v6694_v48 = vld [vmem:[#allocation5 + $0x1b4] sm:$0xf0] }
 0x140   :  { %v1822_v59 = vadd.f32 %v1821_v30, %v1773_v7  ;;  %1967 = vmatmul.bf16.vlgmr.msra.gmra.mxu0 %v7264_v54  ;;  %2016 = vmatmul.bf16.vlgmr.msra.gmra.mxu1 %v7266_v57  ;;  %v5402_v30 = vor.u32 %v6694_v48, %v5401_v39  ;;  %v6754_v48 = vld [vmem:[#allocation5 + $0x394] sm:$0xf0] }
 0x141   :  { %2065 = vmatmul.bf16.vlgmr.msra.gmra.mxu2 %v7361_v62  ;;  %2157 = vmatpush.bf16.msrb.mxu0 %v5274_v23 }
 0x142   :  { %2114 = vmatmul.bf16.vlgmr.msra.gmra.mxu3 %v7363_v0  ;;  %2255 = vmatpush.bf16.msrb.mxu2 %v5530_v12  ;;  %v2743_v20 = vmax.f32 %v1822_v59, 0.0  ;;  %v5513_v59 = vld [vmem:[#allocation5 + $0x288] sm:$0xf] }
 0x143   :  { %2206 = vmatpush.bf16.msrb.mxu1 %v5402_v30 }
 0x144   :  { %v1870_v18 = vpop.f32.mrf.mxu2 }
 0x145   :  { %v1871_v56 = vadd.f32 %v1870_v18, %v7478_v32  ;;  %v1919_v61 = vpop.f32.mrf.mxu3  ;;  %v1774_v63 = vpop.f32.mrf.mxu0 }
 0x146   :  { %v1775_v37 = vadd.f32 %v1774_v63, %v7378_v16  ;;  %v1823_v44 = vpop.f32.mrf.mxu1 }
 0x147   :  { %v7483_v45 = vadd.f32 %v1919_v61, %v1871_v56  ;;  %v6722_v61 = vld [vmem:[#allocation5 + $0x294] sm:$0xf0] }
 0x148   :  { %v1824_v7 = vadd.f32 %v1823_v44, %v1775_v37  ;;  %v5514_v63 = vor.u32 %v6722_v61, %v5513_v59  ;;  %v6658_v37 = vld [vmem:[#allocation5 + $0x94] sm:$0xf0]  ;;  %v5641_v44 = vld [vmem:[#allocation5 + $0x388] sm:$0xf] }
 0x14a   :  { %v2747_v21 = vmax.f32 %v1824_v7, 0.0  ;;  %2256 = vmatpush.bf16.msrb.mxu2 %v5514_v63 }
 0x14c   :  { %v7485_v8 = vpack.c.bf16 %v2747_v21, %v2743_v20  ;;  %v1872_v35 = vpop.f32.mrf.mxu2  ;;  %v5642_v21 = vor.u32 %v6754_v48, %v5641_v44 }
 0x14d   :  { %v1873_v12 = vadd.f32 %v1872_v35, %v7478_v32  ;;  %v1921_v9 = vpop.f32.mrf.mxu3  ;;  %v1777_v18 = vpop.f32.mrf.mxu0 }
 0x14e   :  { %8299 = vst [vmem:[#allocation44_spill] sm:$0xff] %v7485_v8  ;;  %v1778_v16 = vadd.f32 %v1777_v18, %v7385_v60  ;;  %v1826_v23 = vpop.f32.mrf.mxu1  ;;  %v5258_v60 = vor.u32 %v6658_v37, %v5257_v40  ;;  %2305 = vmatpush.bf16.msrb.mxu3 %v5642_v21  ;;  %v5385_v18 = vld [vmem:[#allocation5 + $0x188] sm:$0xf] }
 0x14f   :  { %v7489_v36 = vadd.f32 %v1921_v9, %v1873_v12 }
 0x150   :  { %v1827_v56 = vadd.f32 %v1826_v23, %v1778_v16  ;;  %1972 = vmatmul.bf16.gmra.mxu0 %v7276_v26  ;;  %2021 = vmatmul.bf16.gmra.mxu1 %v7278_v27  ;;  %v6690_v16 = vld [vmem:[#allocation5 + $0x194] sm:$0xf0] }
 0x151   :  { %2070 = vmatmul.bf16.gmra.mxu2 %v7373_v1  ;;  %2158 = vmatpush.bf16.msrb.mxu0 %v5258_v60  ;;  %v5386_v59 = vor.u32 %v6690_v16, %v5385_v18  ;;  %v5625_v18 = vld [vmem:[#allocation5 + $0x368] sm:$0xf] }
 0x152   :  { %2119 = vmatmul.bf16.gmra.mxu3 %v7375_v5  ;;  %v2751_v61 = vmax.f32 %v1827_v56, 0.0  ;;  %v5497_v56 = vld [vmem:[#allocation5 + $0x268] sm:$0xf] }
 0x153   :  { %2207 = vmatpush.bf16.msrb.mxu1 %v5386_v59 }
 0x154   :  { %v1875_v39 = vpop.f32.mrf.mxu2 }
 0x155   :  { %v1876_v7 = vadd.f32 %v1875_v39, %v7478_v32  ;;  %v1924_v30 = vpop.f32.mrf.mxu3  ;;  %v1779_v20 = vpop.f32.mrf.mxu0 }
 0x156   :  { %v1780_v35 = vadd.f32 %v1779_v20, %v7392_v34  ;;  %v1828_v12 = vpop.f32.mrf.mxu1  ;;  %v6718_v20 = vld [vmem:[#allocation5 + $0x274] sm:$0xf0] }
 0x157   :  { %v7497_v9 = vadd.f32 %v1924_v30, %v1876_v7  ;;  %v5498_v21 = vor.u32 %v6718_v20, %v5497_v56 }
 0x158   :  { %v1829_v23 = vadd.f32 %v1828_v12, %v1780_v35  ;;  %v5241_v35 = vld [vmem:[#allocation5 + $0x68] sm:$0xf]  ;;  %v6654_v12 = vld [vmem:[#allocation5 + $0x74] sm:$0xf0] }
 0x159   :  { %2257 = vmatpush.bf16.msrb.mxu2 %v5498_v21 }
 0x15a   :  { %v2755_v40 = vmax.f32 %v1829_v23, 0.0  ;;  %v6750_v23 = vld [vmem:[#allocation5 + $0x374] sm:$0xf0] }
 0x15c   :  { %v7499_v37 = vpack.c.bf16 %v2755_v40, %v2751_v61  ;;  %v1877_v39 = vpop.f32.mrf.mxu2 }
 0x15d   :  { %v1878_v63 = vadd.f32 %v1877_v39, %v7478_v32  ;;  %v1926_v44 = vpop.f32.mrf.mxu3  ;;  %v1782_v48 = vpop.f32.mrf.mxu0  ;;  %v5626_v39 = vor.u32 %v6750_v23, %v5625_v18 }
 0x15e   :  { %8300 = vst [vmem:[#allocation45_spill] sm:$0xff] %v7499_v37  ;;  %v1783_v34 = vadd.f32 %v1782_v48, %v7399_v29  ;;  %v1831_v60 = vpop.f32.mrf.mxu1  ;;  %v5242_v29 = vor.u32 %v6654_v12, %v5241_v35 }
 0x15f   :  { %v7503_v7 = vadd.f32 %v1926_v44, %v1878_v63  ;;  %2306 = vmatpush.bf16.msrb.mxu3 %v5626_v39  ;;  %v5225_v39 = vld [vmem:[#allocation5 + $0x48] sm:$0xf] }
 0x160   :  { %v1832_v30 = vadd.f32 %v1831_v60, %v1783_v34  ;;  %1977 = vmatmul.bf16.gmra.mxu0 %v7288_v51  ;;  %2026 = vmatmul.bf16.gmra.mxu1 %v7290_v52  ;;  %v5369_v34 = vld [vmem:[#allocation5 + $0x168] sm:$0xf]  ;;  %v6686_v60 = vld [vmem:[#allocation5 + $0x174] sm:$0xf0] }
 0x161   :  { %2075 = vmatmul.bf16.gmra.mxu2 %v7387_v19  ;;  %2159 = vmatpush.bf16.msrb.mxu0 %v5242_v29  ;;  %v5370_v20 = vor.u32 %v6686_v60, %v5369_v34  ;;  %v6746_v60 = vld [vmem:[#allocation5 + $0x354] sm:$0xf0] }
 0x162   :  { %2124 = vmatmul.bf16.gmra.mxu3 %v7389_v31  ;;  %v2759_v37 = vmax.f32 %v1832_v30, 0.0  ;;  %v6714_v30 = vld [vmem:[#allocation5 + $0x254] sm:$0xf0] }
 0x163   :  { %2208 = vmatpush.bf16.msrb.mxu1 %v5370_v20 }
 0x164   :  { %v1880_v16 = vpop.f32.mrf.mxu2 }
 0x165   :  { %v1881_v59 = vadd.f32 %v1880_v16, %v7478_v32  ;;  %v1929_v61 = vpop.f32.mrf.mxu3  ;;  %v1784_v40 = vpop.f32.mrf.mxu0 }
 0x166   :  { %v1785_v63 = vadd.f32 %v1784_v40, %v7406_v6  ;;  %v1833_v44 = vpop.f32.mrf.mxu1 }
 0x167   :  { %v7511_v48 = vadd.f32 %v1929_v61, %v1881_v59 }
 0x168   :  { %v1834_v56 = vadd.f32 %v1833_v44, %v1785_v63  ;;  %v6650_v63 = vld [vmem:[#allocation5 + $0x54] sm:$0xf0]  ;;  %v5609_v44 = vld [vmem:[#allocation5 + $0x348] sm:$0xf] }
 0x16a   :  { %v2763_v35 = vmax.f32 %v1834_v56, 0.0 }
 0x16c   :  { %v7513_v12 = vpack.c.bf16 %v2763_v35, %v2759_v37  ;;  %v1882_v16 = vpop.f32.mrf.mxu2  ;;  %v5481_v37 = vld [vmem:[#allocation5 + $0x248] sm:$0xf] }
 0x16d   :  { %v1883_v21 = vadd.f32 %v1882_v16, %v7478_v32  ;;  %v1931_v18 = vpop.f32.mrf.mxu3  ;;  %v1787_v23 = vpop.f32.mrf.mxu0  ;;  %v5482_v40 = vor.u32 %v6714_v30, %v5481_v37  ;;  %v5610_v16 = vor.u32 %v6746_v60, %v5609_v44 }
 0x16e   :  { %8301 = vst [vmem:[#allocation46_spill] sm:$0xff] %v7513_v12  ;;  %v1788_v6 = vadd.f32 %v1787_v23, %v7413_v3  ;;  %v1836_v29 = vpop.f32.mrf.mxu1  ;;  %v5226_v3 = vor.u32 %v6650_v63, %v5225_v39 }
 0x16f   :  { %v7517_v59 = vadd.f32 %v1931_v18, %v1883_v21  ;;  %2258 = vmatpush.bf16.msrb.mxu2 %v5482_v40  ;;  %2307 = vmatpush.bf16.msrb.mxu3 %v5610_v16  ;;  %v5209_v16 = vld [vmem:[#allocation5 + $0x28] sm:$0xf] }
 0x170   :  { %v1837_v61 = vadd.f32 %v1836_v29, %v1788_v6  ;;  %1982 = vmatmul.bf16.gmra.mxu0 %v7300_v14  ;;  %2031 = vmatmul.bf16.gmra.mxu1 %v7302_v15  ;;  %v5353_v6 = vld [vmem:[#allocation5 + $0x148] sm:$0xf]  ;;  %v6682_v29 = vld [vmem:[#allocation5 + $0x154] sm:$0xf0] }
 0x171   :  { %2080 = vmatmul.bf16.gmra.mxu2 %v7401_v58  ;;  %2160 = vmatpush.bf16.msrb.mxu0 %v5226_v3  ;;  %v5354_v30 = vor.u32 %v6682_v29, %v5353_v6  ;;  %v6742_v29 = vld [vmem:[#allocation5 + $0x334] sm:$0xf0] }
 0x172   :  { %2129 = vmatmul.bf16.gmra.mxu3 %v7403_v2  ;;  %v2767_v12 = vmax.f32 %v1837_v61, 0.0  ;;  %v6710_v61 = vld [vmem:[#allocation5 + $0x234] sm:$0xf0] }
 0x173   :  { %2209 = vmatpush.bf16.msrb.mxu1 %v5354_v30 }
 0x174   :  { %v1885_v34 = vpop.f32.mrf.mxu2 }
 0x175   :  { %v1886_v56 = vadd.f32 %v1885_v34, %v7478_v32  ;;  %v1934_v20 = vpop.f32.mrf.mxu3  ;;  %v1789_v35 = vpop.f32.mrf.mxu0 }
 0x176   :  { %v1790_v21 = vadd.f32 %v1789_v35, %v7420_v55  ;;  %v1838_v18 = vpop.f32.mrf.mxu1 }
 0x177   :  { %v7525_v23 = vadd.f32 %v1934_v20, %v1886_v56 }
 0x178   :  { %v1839_v37 = vadd.f32 %v1838_v18, %v1790_v21  ;;  %v6646_v21 = vld [vmem:[#allocation5 + $0x34] sm:$0xf0]  ;;  %v5593_v18 = vld [vmem:[#allocation5 + $0x328] sm:$0xf] }
 0x17a   :  { %v2771_v39 = vmax.f32 %v1839_v37, 0.0 }
 0x17c   :  { %v7527_v63 = vpack.c.bf16 %v2771_v39, %v2767_v12  ;;  %v1887_v34 = vpop.f32.mrf.mxu2  ;;  %v5465_v12 = vld [vmem:[#allocation5 + $0x228] sm:$0xf] }
 0x17d   :  { %v1888_v40 = vadd.f32 %v1887_v34, %v7478_v32  ;;  %v1936_v44 = vpop.f32.mrf.mxu3  ;;  %v1792_v60 = vpop.f32.mrf.mxu0  ;;  %v5466_v35 = vor.u32 %v6710_v61, %v5465_v12  ;;  %v5594_v34 = vor.u32 %v6742_v29, %v5593_v18 }
 0x17e   :  { %8302 = vst [vmem:[#allocation47_spill] sm:$0xff] %v7527_v63  ;;  %v1793_v55 = vadd.f32 %v1792_v60, %v7427_v38  ;;  %v1841_v3 = vpop.f32.mrf.mxu1  ;;  %v5210_v38 = vor.u32 %v6646_v21, %v5209_v16 }
 0x17f   :  { %v7531_v56 = vadd.f32 %v1936_v44, %v1888_v40  ;;  %2259 = vmatpush.bf16.msrb.mxu2 %v5466_v35  ;;  %2308 = vmatpush.bf16.msrb.mxu3 %v5594_v34  ;;  %v5193_v34 = vld [vmem:[#allocation5 + $0x8] sm:$0xf] }
 0x180   :  { %v1842_v20 = vadd.f32 %v1841_v3, %v1793_v55  ;;  %1987 = vmatmul.bf16.gmra.mxu0 %v7312_v42  ;;  %2036 = vmatmul.bf16.gmra.mxu1 %v7314_v43  ;;  %v5337_v55 = vld [vmem:[#allocation5 + $0x128] sm:$0xf]  ;;  %v6678_v3 = vld [vmem:[#allocation5 + $0x134] sm:$0xf0] }
 0x181   :  { %2085 = vmatmul.bf16.gmra.mxu2 %v7415_v49  ;;  %2161 = vmatpush.bf16.msrb.mxu0 %v5210_v38  ;;  %v5338_v61 = vor.u32 %v6678_v3, %v5337_v55  ;;  %v6738_v3 = vld [vmem:[#allocation5 + $0x314] sm:$0xf0] }
 0x182   :  { %2134 = vmatmul.bf16.gmra.mxu3 %v7417_v33  ;;  %v2775_v63 = vmax.f32 %v1842_v20, 0.0  ;;  %v6706_v20 = vld [vmem:[#allocation5 + $0x214] sm:$0xf0] }
 0x183   :  { %2210 = vmatpush.bf16.msrb.mxu1 %v5338_v61 }
 0x184   :  { %v1890_v6 = vpop.f32.mrf.mxu2 }
 0x185   :  { %v1891_v37 = vadd.f32 %v1890_v6, %v7478_v32  ;;  %v1939_v30 = vpop.f32.mrf.mxu3  ;;  %v1794_v39 = vpop.f32.mrf.mxu0 }
 0x186   :  { %v1795_v40 = vadd.f32 %v1794_v39, %v7434_v17  ;;  %v1843_v44 = vpop.f32.mrf.mxu1 }
 0x187   :  { %v7539_v60 = vadd.f32 %v1939_v30, %v1891_v37 }
 0x188   :  { %v1844_v12 = vadd.f32 %v1843_v44, %v1795_v40  ;;  %v6642_v40 = vld [vmem:[#allocation5 + $0x14] sm:$0xf0]  ;;  %v5577_v44 = vld [vmem:[#allocation5 + $0x308] sm:$0xf] }
 0x18a   :  { %v2779_v16 = vmax.f32 %v1844_v12, 0.0 }
 0x18c   :  { %v7541_v21 = vpack.c.bf16 %v2779_v16, %v2775_v63  ;;  %v1892_v6 = vpop.f32.mrf.mxu2  ;;  %v5449_v63 = vld [vmem:[#allocation5 + $0x208] sm:$0xf] }
 0x18d   :  { %v1893_v35 = vadd.f32 %v1892_v6, %v7478_v32  ;;  %v1941_v18 = vpop.f32.mrf.mxu3  ;;  %v1797_v29 = vpop.f32.mrf.mxu0  ;;  %v5450_v39 = vor.u32 %v6706_v20, %v5449_v63  ;;  %v5578_v6 = vor.u32 %v6738_v3, %v5577_v44 }
 0x18e   :  { %8303 = vst [vmem:[#allocation48_spill] sm:$0xff] %v7541_v21  ;;  %v1798_v17 = vadd.f32 %v1797_v29, %v7441_v50  ;;  %v1846_v38 = vpop.f32.mrf.mxu1  ;;  %v5194_v50 = vor.u32 %v6642_v40, %v5193_v34 }
 0x18f   :  { %v7545_v37 = vadd.f32 %v1941_v18, %v1893_v35  ;;  %2260 = vmatpush.bf16.msrb.mxu2 %v5450_v39  ;;  %2309 = vmatpush.bf16.msrb.mxu3 %v5578_v6  ;;  %v5307_v6 = vld [vmem:[#allocation5 + $0xf8] sm:$0xf0] }
 0x190   :  { %v1847_v30 = vadd.f32 %v1846_v38, %v1798_v17  ;;  %1992 = vmatmul.bf16.gmra.mxu0 %v7324_v10  ;;  %2041 = vmatmul.bf16.gmra.mxu1 %v7326_v11  ;;  %v5321_v17 = vld [vmem:[#allocation5 + $0x108] sm:$0xf]  ;;  %v6674_v38 = vld [vmem:[#allocation5 + $0x114] sm:$0xf0] }
 0x191   :  { %2090 = vmatmul.bf16.gmra.mxu2 %v7429_v24  ;;  %2162 = vmatpush.bf16.msrb.mxu0 %v5194_v50  ;;  %v5322_v20 = vor.u32 %v6674_v38, %v5321_v17  ;;  %v6798_v17 = vld [vmem:[#allocation5 + $0x4f4] sm:$0xf0]  ;;  %v6700_v38 = vld [vmem:[#allocation5 + $0x1ec] sm:$0xf] }
 0x192   :  { %2139 = vmatmul.bf16.gmra.mxu3 %v7431_v4  ;;  %v2783_v21 = vmax.f32 %v1847_v30, 0.0  ;;  %v8305_v30 = vld [vmem:[#allocation40_spill] sm:$0xff] }
 0x193   :  { %2211 = vmatpush.bf16.msrb.mxu1 %v5322_v20  ;;  %v5435_v20 = vld [vmem:[#allocation5 + $0x1f8] sm:$0xf0] }
 0x194   :  { %v1895_v55 = vpop.f32.mrf.mxu2 }
 0x195   :  { %v1896_v12 = vadd.f32 %v1895_v55, %v7478_v32  ;;  %v1944_v61 = vpop.f32.mrf.mxu3  ;;  %v1799_v16 = vpop.f32.mrf.mxu0 }
 0x196   :  { %v1800_v35 = vadd.f32 %v1799_v16, %v7448_v13  ;;  %v1848_v18 = vpop.f32.mrf.mxu1  ;;  %v8306_v16 = vld [vmem:[#allocation41_spill] sm:$0xff] }
 0x197   :  { %v7553_v29 = vadd.f32 %v1944_v61, %v1896_v12 }
 0x198   :  { %v1849_v63 = vadd.f32 %v1848_v18, %v1800_v35  ;;  %v5817_v18 = vld [vmem:[#allocation5 + $0x4e8] sm:$0xf] }
 0x19a   :  { %v2787_v34 = vmax.f32 %v1849_v63, 0.0 }
 0x19c   :  { %v7555_v40 = vpack.c.bf16 %v2787_v34, %v2783_v21  ;;  %v1897_v55 = vpop.f32.mrf.mxu2  ;;  %v6668_v21 = vld [vmem:[#allocation5 + $0xec] sm:$0xf] }
 0x19d   :  { %v1898_v39 = vadd.f32 %v1897_v55, %v7478_v32  ;;  %v1946_v44 = vpop.f32.mrf.mxu3  ;;  %v1802_v3 = vpop.f32.mrf.mxu0  ;;  %v5310_v35 = vor.u32 %v6668_v21, %v5307_v6  ;;  %v5945_v6 = vld [vmem:[#allocation5 + $0x5e8] sm:$0xf] }
 0x19e   :  { %8304 = vst [vmem:[#allocation49_spill] sm:$0xff] %v7555_v40  ;;  %v1803_v13 = vadd.f32 %v1802_v3, %v7455_v25  ;;  %v1851_v50 = vpop.f32.mrf.mxu1  ;;  %v5818_v25 = vor.u32 %v6798_v17, %v5817_v18  ;;  %v6830_v40 = vld [vmem:[#allocation5 + $0x5f4] sm:$0xf0] }
 0x19f   :  { %v7559_v12 = vadd.f32 %v1946_v44, %v1898_v39  ;;  %2449 = vmatpush.bf16.msra.mxu2 %v5310_v35  ;;  %v5438_v44 = vor.u32 %v6700_v38, %v5435_v20  ;;  %v5946_v18 = vor.u32 %v6830_v40, %v5945_v6  ;;  %v6664_v40 = vld [vmem:[#allocation5 + $0xcc] sm:$0xf] }
 0x1a0   :  { %v1852_v61 = vadd.f32 %v1851_v50, %v1803_v13  ;;  %1997 = vmatmul.bf16.gmra.mxu0 %v7336_v46  ;;  %2046 = vmatmul.bf16.gmra.mxu1 %v7338_v47  ;;  %v6696_v6 = vld [vmem:[#allocation5 + $0x1cc] sm:$0xf] }
 0x1a1   :  { %2095 = vmatmul.bf16.gmra.mxu2 %v8305_v30  ;;  %2351 = vmatpush.bf16.msra.mxu0 %v5818_v25 }
 0x1a2   :  { %2144 = vmatmul.bf16.gmra.mxu3 %v8306_v16  ;;  %v2791_v8 = vmax.f32 %v1852_v61, 0.0  ;;  %2400 = vmatpush.bf16.msra.mxu1 %v5946_v18  ;;  %v5291_v61 = vld [vmem:[#allocation5 + $0xd8] sm:$0xf0] }
 0x1a3   :  { %2498 = vmatpush.bf16.msra.mxu3 %v5438_v44  ;;  %v8309_v44 = vld [vmem:[#allocation37_spill] sm:$0xff] }
 0x1a4   :  { %v1900_v63 = vpop.f32.mrf.mxu2 }
 0x1a5   :  { %v1901_v34 = vadd.f32 %v1900_v63, %v7478_v32  ;;  %v1949_v55 = vpop.f32.mrf.mxu3  ;;  %v1804_v39 = vpop.f32.mrf.mxu0 }
 0x1a6   :  { %v1805_v3 = vadd.f32 %v1804_v39, %v7462_v41  ;;  %v1853_v13 = vpop.f32.mrf.mxu1  ;;  %v8308_v39 = vld [vmem:[#allocation36_spill] sm:$0xff] }
 0x1a7   :  { %v7567_v50 = vadd.f32 %v1949_v55, %v1901_v34 }
 0x1a8   :  { %v1854_v21 = vadd.f32 %v1853_v13, %v1805_v3  ;;  %v5294_v13 = vor.u32 %v6664_v40, %v5291_v61  ;;  %v6826_v40 = vld [vmem:[#allocation5 + $0x5d4] sm:$0xf0] }
 0x1aa   :  { %v2795_v16 = vmax.f32 %v1854_v21, 0.0  ;;  %v6794_v21 = vld [vmem:[#allocation5 + $0x4d4] sm:$0xf0]  ;;  %2450 = vmatpush.bf16.msra.mxu2 %v5294_v13 }
 0x1ac   :  { %v7569_v17 = vpack.c.bf16 %v2795_v16, %v2791_v8  ;;  %v1902_v63 = vpop.f32.mrf.mxu2  ;;  %v8310_v8 = vld [vmem:[#allocation43_spill] sm:$0xff] }
 0x1ad   :  { %v1903_v35 = vadd.f32 %v1902_v63, %v7478_v32  ;;  %v1951_v38 = vpop.f32.mrf.mxu3  ;;  %v1807_v20 = vpop.f32.mrf.mxu0  ;;  %v5801_v16 = vld [vmem:[#allocation5 + $0x4c8] sm:$0xf] }
 0x1ae   :  { %8307 = vst [vmem:[#allocation50_spill] sm:$0xff] %v7569_v17  ;;  %v1808_v41 = vadd.f32 %v1807_v20, %v7469_v53  ;;  %v1856_v25 = vpop.f32.mrf.mxu1  ;;  %v5419_v53 = vld [vmem:[#allocation5 + $0x1d8] sm:$0xf0] }
 0x1af   :  { %v7573_v34 = vadd.f32 %v1951_v38, %v1903_v35  ;;  %v5802_v38 = vor.u32 %v6794_v21, %v5801_v16  ;;  %v5422_v20 = vor.u32 %v6696_v6, %v5419_v53 }
 0x1b0   :  { %v1857_v55 = vadd.f32 %v1856_v25, %v1808_v41  ;;  %2002 = vmatmul.bf16.gmra.mxu0 %v8308_v39  ;;  %2051 = vmatmul.bf16.gmra.mxu1 %v8309_v44 }
 0x1b1   :  { %2100 = vmatmul.bf16.gmra.mxu2 %v7457_v22  ;;  %2352 = vmatpush.bf16.msra.mxu0 %v5802_v38  ;;  %v5929_v22 = vld [vmem:[#allocation5 + $0x5c8] sm:$0xf]  ;;  %v6692_v38 = vld [vmem:[#allocation5 + $0x1ac] sm:$0xf] }
 0x1b2   :  { %2149 = vmatmul.bf16.gmra.mxu3 %v8310_v8  ;;  %v2799_v61 = vmax.f32 %v1857_v55, 0.0  ;;  %v5930_v4 = vor.u32 %v6826_v40, %v5929_v22  ;;  %v6660_v22 = vld [vmem:[#allocation5 + $0xac] sm:$0xf] }
 0x1b3   :  { %2499 = vmatpush.bf16.msra.mxu3 %v5422_v20 }
 0x1b4   :  { %v1905_v3 = vpop.f32.mrf.mxu2  ;;  %2401 = vmatpush.bf16.msra.mxu1 %v5930_v4  ;;  %v5275_v4 = vld [vmem:[#allocation5 + $0xb8] sm:$0xf0] }
 0x1b5   :  { %v1906_v18 = vadd.f32 %v1905_v3, %v7478_v32  ;;  %v1954_v63 = vpop.f32.mrf.mxu3  ;;  %v1809_v35 = vpop.f32.mrf.mxu0  ;;  %v5278_v55 = vor.u32 %v6660_v22, %v5275_v4 }
 0x1b6   :  { %v1810_v41 = vadd.f32 %v1809_v35, %v7472_v28  ;;  %v1858_v25 = vpop.f32.mrf.mxu1  ;;  %v8313_v35 = vld [vmem:[#allocation20_spill] sm:$0xff] }
 0x1b7   :  { %v7581_v17 = vadd.f32 %v1954_v63, %v1906_v18  ;;  %v8312_v63 = vld [vmem:[#allocation19_spill] sm:$0xff]  ;;  %2451 = vmatpush.bf16.msra.mxu2 %v5278_v55 }
 0x1b8   :  { %v1859_v8 = vadd.f32 %v1858_v25, %v1810_v41 }
 0x1ba   :  { %v2803_v30 = vmax.f32 %v1859_v8, 0.0  ;;  %v6790_v8 = vld [vmem:[#allocation5 + $0x4b4] sm:$0xf0] }
 0x1bc   :  { %v7583_v24 = vpack.c.bf16 %v2803_v30, %v2799_v61  ;;  %v1907_v3 = vpop.f32.mrf.mxu2  ;;  %v5785_v30 = vld [vmem:[#allocation5 + $0x4a8] sm:$0xf] }
 0x1bd   :  { %v1908_v16 = vadd.f32 %v1907_v3, %v7478_v32  ;;  %v1956_v21 = vpop.f32.mrf.mxu3  ;;  %v1968_v28 = vpop.f32.mrf.mxu0  ;;  %v5786_v40 = vor.u32 %v6790_v8, %v5785_v30 }
 0x1be   :  { %8311 = vst [vmem:[#allocation36_spill] sm:$0xff] %v7583_v24  ;;  %v1969_v13 = vadd.f32 %v1968_v28, %v7483_v45  ;;  %v2017_v6 = vpop.f32.mrf.mxu1  ;;  %v5403_v45 = vld [vmem:[#allocation5 + $0x1b8] sm:$0xf0] }
 0x1bf   :  { %v7587_v53 = vadd.f32 %v1956_v21, %v1908_v16  ;;  %v5406_v61 = vor.u32 %v6692_v38, %v5403_v45  ;;  %2353 = vmatpush.bf16.msra.mxu0 %v5786_v40  ;;  %v5769_v40 = vld [vmem:[#allocation5 + $0x488] sm:$0xf] }
 0x1c0   :  { %v2018_v18 = vadd.f32 %v2017_v6, %v1969_v13  ;;  %2163 = vmatmul.bf16.vlgmr.msrb.gmra.mxu0 %v8312_v63  ;;  %2212 = vmatmul.bf16.vlgmr.msrb.gmra.mxu1 %v8313_v35  ;;  %v5913_v13 = vld [vmem:[#allocation5 + $0x5a8] sm:$0xf]  ;;  %v6822_v6 = vld [vmem:[#allocation5 + $0x5b4] sm:$0xf0] }
 0x1c1   :  { %2261 = vmatmul.bf16.vlgmr.msrb.gmra.mxu2 %v7264_v54  ;;  %2500 = vmatpush.bf16.msra.mxu3 %v5406_v61  ;;  %v5914_v24 = vor.u32 %v6822_v6, %v5913_v13 }
 0x1c2   :  { %2310 = vmatmul.bf16.vlgmr.msrb.gmra.mxu3 %v7266_v57 }
 0x1c3   :  { %2402 = vmatpush.bf16.msra.mxu1 %v5914_v24  ;;  %v6656_v24 = vld [vmem:[#allocation5 + $0x8c] sm:$0xf] }
 0x1c4   :  { %v2066_v32 = vpop.f32.mrf.mxu2 }
 0x1c5   :  { %v2067_v20 = vadd.f32 %v2066_v32, %v2018_v18  ;;  %v2115_v41 = vpop.f32.mrf.mxu3  ;;  %v1970_v25 = vpop.f32.mrf.mxu0 }
 0x1c6   :  { %v1971_v3 = vadd.f32 %v1970_v25, %v7489_v36  ;;  %v2019_v16 = vpop.f32.mrf.mxu1  ;;  %v8314_v36 = vld [vmem:[#allocation22_spill] sm:$0xff]  ;;  %v5259_v25 = vld [vmem:[#allocation5 + $0x98] sm:$0xf0] }
 0x1c7   :  { %v2116_v21 = vadd.f32 %v2115_v41, %v2067_v20  ;;  %v8315_v20 = vld [vmem:[#allocation23_spill] sm:$0xff] }
 0x1c8   :  { %v2020_v28 = vadd.f32 %v2019_v16, %v1971_v3  ;;  %v6786_v3 = vld [vmem:[#allocation5 + $0x494] sm:$0xf0]  ;;  %v5387_v16 = vld [vmem:[#allocation5 + $0x198] sm:$0xf0] }
 0x1c9   :  { %v2744_v55 = vmax.f32 %v2116_v21, 0.0  ;;  %v5770_v6 = vor.u32 %v6786_v3, %v5769_v40 }
 0x1cb   :  { %2354 = vmatpush.bf16.msra.mxu0 %v5770_v6  ;;  %v5243_v6 = vld [vmem:[#allocation5 + $0x78] sm:$0xf0] }
 0x1cc   :  { %v2068_v22 = vpop.f32.mrf.mxu2 }
 0x1cd   :  { %v2069_v4 = vadd.f32 %v2068_v22, %v2020_v28  ;;  %v2117_v57 = vpop.f32.mrf.mxu3  ;;  %v1973_v18 = vpop.f32.mrf.mxu0 }
 0x1ce   :  { %v1974_v32 = vadd.f32 %v1973_v18, %v7497_v9  ;;  %v2022_v30 = vpop.f32.mrf.mxu1  ;;  %v5262_v9 = vor.u32 %v6656_v24, %v5259_v25 }
 0x1cf   :  { %v2118_v8 = vadd.f32 %v2117_v57, %v2069_v4  ;;  %v6688_v57 = vld [vmem:[#allocation5 + $0x18c] sm:$0xf] }
 0x1d0   :  { %v2023_v38 = vadd.f32 %v2022_v30, %v1974_v32  ;;  %2168 = vmatmul.bf16.gmra.mxu0 %v8314_v36  ;;  %2217 = vmatmul.bf16.gmra.mxu1 %v8315_v20  ;;  %v5390_v22 = vor.u32 %v6688_v57, %v5387_v16 }
 0x1d1   :  { %v2748_v45 = vmax.f32 %v2118_v8, 0.0  ;;  %2266 = vmatmul.bf16.gmra.mxu2 %v7276_v26  ;;  %v5897_v8 = vld [vmem:[#allocation5 + $0x588] sm:$0xf] }
 0x1d2   :  { %2315 = vmatmul.bf16.gmra.mxu3 %v7278_v27  ;;  %2452 = vmatpush.bf16.msra.mxu2 %v5262_v9 }
 0x1d3   :  { %v7599_v41 = vpack.c.bf16 %v2748_v45, %v2744_v55  ;;  %2501 = vmatpush.bf16.msra.mxu3 %v5390_v22  ;;  %v6818_v55 = vld [vmem:[#allocation5 + $0x594] sm:$0xf0]  ;;  %v5753_v22 = vld [vmem:[#allocation5 + $0x468] sm:$0xf] }
 0x1d4   :  { %v2071_v61 = vpop.f32.mrf.mxu2  ;;  %v5898_v45 = vor.u32 %v6818_v55, %v5897_v8 }
 0x1d5   :  { %8316 = vst [vmem:[#allocation19_spill] sm:$0xff] %v7599_v41  ;;  %v2072_v28 = vadd.f32 %v2071_v61, %v2023_v38  ;;  %v2120_v13 = vpop.f32.mrf.mxu3  ;;  %v1975_v21 = vpop.f32.mrf.mxu0 }
 0x1d6   :  { %v1976_v4 = vadd.f32 %v1975_v21, %v7503_v7  ;;  %v2024_v18 = vpop.f32.mrf.mxu1  ;;  %2403 = vmatpush.bf16.msra.mxu1 %v5898_v45  ;;  %v8317_v7 = vld [vmem:[#allocation24_spill] sm:$0xff]  ;;  %v6652_v21 = vld [vmem:[#allocation5 + $0x6c] sm:$0xf] }
 0x1d7   :  { %v2121_v32 = vadd.f32 %v2120_v13, %v2072_v28  ;;  %v8318_v28 = vld [vmem:[#allocation25_spill] sm:$0xff] }
 0x1d8   :  { %v2025_v30 = vadd.f32 %v2024_v18, %v1976_v4  ;;  %v6782_v18 = vld [vmem:[#allocation5 + $0x474] sm:$0xf0] }
 0x1d9   :  { %v2752_v9 = vmax.f32 %v2121_v32, 0.0  ;;  %v5754_v45 = vor.u32 %v6782_v18, %v5753_v22 }
 0x1db   :  { %2355 = vmatpush.bf16.msra.mxu0 %v5754_v45  ;;  %v5227_v45 = vld [vmem:[#allocation5 + $0x58] sm:$0xf0] }
 0x1dc   :  { %v2073_v24 = vpop.f32.mrf.mxu2 }
 0x1dd   :  { %v2074_v25 = vadd.f32 %v2073_v24, %v2025_v30  ;;  %v2122_v41 = vpop.f32.mrf.mxu3  ;;  %v1978_v38 = vpop.f32.mrf.mxu0  ;;  %v5371_v30 = vld [vmem:[#allocation5 + $0x178] sm:$0xf0] }
 0x1de   :  { %v1979_v61 = vadd.f32 %v1978_v38, %v7511_v48  ;;  %v2027_v40 = vpop.f32.mrf.mxu1  ;;  %v5246_v48 = vor.u32 %v6652_v21, %v5243_v6 }
 0x1df   :  { %v2123_v3 = vadd.f32 %v2122_v41, %v2074_v25  ;;  %v6684_v41 = vld [vmem:[#allocation5 + $0x16c] sm:$0xf] }
 0x1e0   :  { %v2028_v57 = vadd.f32 %v2027_v40, %v1979_v61  ;;  %2173 = vmatmul.bf16.gmra.mxu0 %v8317_v7  ;;  %2222 = vmatmul.bf16.gmra.mxu1 %v8318_v28  ;;  %v5374_v24 = vor.u32 %v6684_v41, %v5371_v30 }
 0x1e1   :  { %v2756_v16 = vmax.f32 %v2123_v3, 0.0  ;;  %2271 = vmatmul.bf16.gmra.mxu2 %v7288_v51  ;;  %v5881_v3 = vld [vmem:[#allocation5 + $0x568] sm:$0xf] }
 0x1e2   :  { %2320 = vmatmul.bf16.gmra.mxu3 %v7290_v52  ;;  %2453 = vmatpush.bf16.msra.mxu2 %v5246_v48 }
 0x1e3   :  { %v7607_v13 = vpack.c.bf16 %v2756_v16, %v2752_v9  ;;  %2502 = vmatpush.bf16.msra.mxu3 %v5374_v24  ;;  %v6814_v9 = vld [vmem:[#allocation5 + $0x574] sm:$0xf0]  ;;  %v5737_v24 = vld [vmem:[#allocation5 + $0x448] sm:$0xf] }
 0x1e4   :  { %v2076_v4 = vpop.f32.mrf.mxu2  ;;  %v5882_v16 = vor.u32 %v6814_v9, %v5881_v3 }
 0x1e5   :  { %8319 = vst [vmem:[#allocation20_spill] sm:$0xff] %v7607_v13  ;;  %v2077_v8 = vadd.f32 %v2076_v4, %v2028_v57  ;;  %v2125_v55 = vpop.f32.mrf.mxu3  ;;  %v1980_v32 = vpop.f32.mrf.mxu0 }
 0x1e6   :  { %v1981_v25 = vadd.f32 %v1980_v32, %v7517_v59  ;;  %v2029_v38 = vpop.f32.mrf.mxu1  ;;  %2404 = vmatpush.bf16.msra.mxu1 %v5882_v16  ;;  %v8320_v59 = vld [vmem:[#allocation26_spill] sm:$0xff]  ;;  %v6648_v32 = vld [vmem:[#allocation5 + $0x4c] sm:$0xf] }
 0x1e7   :  { %v2126_v61 = vadd.f32 %v2125_v55, %v2077_v8  ;;  %v8321_v8 = vld [vmem:[#allocation27_spill] sm:$0xff] }
 0x1e8   :  { %v2030_v40 = vadd.f32 %v2029_v38, %v1981_v25  ;;  %v6778_v38 = vld [vmem:[#allocation5 + $0x454] sm:$0xf0] }
 0x1e9   :  { %v2760_v48 = vmax.f32 %v2126_v61, 0.0  ;;  %v5738_v16 = vor.u32 %v6778_v38, %v5737_v24 }
 0x1eb   :  { %2356 = vmatpush.bf16.msra.mxu0 %v5738_v16  ;;  %v5211_v16 = vld [vmem:[#allocation5 + $0x38] sm:$0xf0] }
 0x1ec   :  { %v2078_v21 = vpop.f32.mrf.mxu2 }
 0x1ed   :  { %v2079_v6 = vadd.f32 %v2078_v21, %v2030_v40  ;;  %v2127_v13 = vpop.f32.mrf.mxu3  ;;  %v1983_v57 = vpop.f32.mrf.mxu0  ;;  %v5355_v40 = vld [vmem:[#allocation5 + $0x158] sm:$0xf0] }
 0x1ee   :  { %v1984_v4 = vadd.f32 %v1983_v57, %v7525_v23  ;;  %v2032_v22 = vpop.f32.mrf.mxu1  ;;  %v5230_v23 = vor.u32 %v6648_v32, %v5227_v45 }
 0x1ef   :  { %v2128_v18 = vadd.f32 %v2127_v13, %v2079_v6  ;;  %v6680_v13 = vld [vmem:[#allocation5 + $0x14c] sm:$0xf] }
 0x1f0   :  { %v2033_v41 = vadd.f32 %v2032_v22, %v1984_v4  ;;  %2178 = vmatmul.bf16.gmra.mxu0 %v8320_v59  ;;  %2227 = vmatmul.bf16.gmra.mxu1 %v8321_v8  ;;  %v5358_v21 = vor.u32 %v6680_v13, %v5355_v40 }
 0x1f1   :  { %v2764_v30 = vmax.f32 %v2128_v18, 0.0  ;;  %2276 = vmatmul.bf16.gmra.mxu2 %v7300_v14  ;;  %v5865_v18 = vld [vmem:[#allocation5 + $0x548] sm:$0xf] }
 0x1f2   :  { %2325 = vmatmul.bf16.gmra.mxu3 %v7302_v15  ;;  %2454 = vmatpush.bf16.msra.mxu2 %v5230_v23 }
 0x1f3   :  { %v7615_v55 = vpack.c.bf16 %v2764_v30, %v2760_v48  ;;  %2503 = vmatpush.bf16.msra.mxu3 %v5358_v21  ;;  %v6810_v48 = vld [vmem:[#allocation5 + $0x554] sm:$0xf0]  ;;  %v5721_v21 = vld [vmem:[#allocation5 + $0x428] sm:$0xf] }
 0x1f4   :  { %v2081_v25 = vpop.f32.mrf.mxu2  ;;  %v5866_v30 = vor.u32 %v6810_v48, %v5865_v18 }
 0x1f5   :  { %8322 = vst [vmem:[#allocation22_spill] sm:$0xff] %v7615_v55  ;;  %v2082_v3 = vadd.f32 %v2081_v25, %v2033_v41  ;;  %v2130_v9 = vpop.f32.mrf.mxu3  ;;  %v1985_v61 = vpop.f32.mrf.mxu0 }
 0x1f6   :  { %v1986_v6 = vadd.f32 %v1985_v61, %v7531_v56  ;;  %v2034_v57 = vpop.f32.mrf.mxu1  ;;  %2405 = vmatpush.bf16.msra.mxu1 %v5866_v30  ;;  %v8323_v56 = vld [vmem:[#allocation28_spill] sm:$0xff]  ;;  %v6644_v61 = vld [vmem:[#allocation5 + $0x2c] sm:$0xf] }
 0x1f7   :  { %v2131_v4 = vadd.f32 %v2130_v9, %v2082_v3  ;;  %v8324_v3 = vld [vmem:[#allocation29_spill] sm:$0xff] }
 0x1f8   :  { %v2035_v22 = vadd.f32 %v2034_v57, %v1986_v6  ;;  %v6774_v57 = vld [vmem:[#allocation5 + $0x434] sm:$0xf0] }
 0x1f9   :  { %v2768_v23 = vmax.f32 %v2131_v4, 0.0  ;;  %v5722_v30 = vor.u32 %v6774_v57, %v5721_v21 }
 0x1fb   :  { %2357 = vmatpush.bf16.msra.mxu0 %v5722_v30  ;;  %v5195_v30 = vld [vmem:[#allocation5 + $0x18] sm:$0xf0] }
 0x1fc   :  { %v2083_v32 = vpop.f32.mrf.mxu2 }
 0x1fd   :  { %v2084_v45 = vadd.f32 %v2083_v32, %v2035_v22  ;;  %v2132_v55 = vpop.f32.mrf.mxu3  ;;  %v1988_v41 = vpop.f32.mrf.mxu0  ;;  %v5339_v22 = vld [vmem:[#allocation5 + $0x138] sm:$0xf0] }
 0x1fe   :  { %v1989_v25 = vadd.f32 %v1988_v41, %v7539_v60  ;;  %v2037_v24 = vpop.f32.mrf.mxu1  ;;  %v5214_v60 = vor.u32 %v6644_v61, %v5211_v16 }
 0x1ff   :  { %v2133_v38 = vadd.f32 %v2132_v55, %v2084_v45  ;;  %v6676_v55 = vld [vmem:[#allocation5 + $0x12c] sm:$0xf] }
 0x200   :  { %v2038_v13 = vadd.f32 %v2037_v24, %v1989_v25  ;;  %2183 = vmatmul.bf16.gmra.mxu0 %v8323_v56  ;;  %2232 = vmatmul.bf16.gmra.mxu1 %v8324_v3  ;;  %v5342_v32 = vor.u32 %v6676_v55, %v5339_v22 }
 0x201   :  { %v2772_v40 = vmax.f32 %v2133_v38, 0.0  ;;  %2281 = vmatmul.bf16.gmra.mxu2 %v7312_v42  ;;  %v5849_v38 = vld [vmem:[#allocation5 + $0x528] sm:$0xf] }
 0x202   :  { %2330 = vmatmul.bf16.gmra.mxu3 %v7314_v43  ;;  %2455 = vmatpush.bf16.msra.mxu2 %v5214_v60 }
 0x203   :  { %v7623_v9 = vpack.c.bf16 %v2772_v40, %v2768_v23  ;;  %2504 = vmatpush.bf16.msra.mxu3 %v5342_v32  ;;  %v6806_v23 = vld [vmem:[#allocation5 + $0x534] sm:$0xf0]  ;;  %v5705_v32 = vld [vmem:[#allocation5 + $0x408] sm:$0xf] }
 0x204   :  { %v2086_v6 = vpop.f32.mrf.mxu2  ;;  %v5850_v40 = vor.u32 %v6806_v23, %v5849_v38 }
 0x205   :  { %8325 = vst [vmem:[#allocation23_spill] sm:$0xff] %v7623_v9  ;;  %v2087_v18 = vadd.f32 %v2086_v6, %v2038_v13  ;;  %v2135_v48 = vpop.f32.mrf.mxu3  ;;  %v1990_v4 = vpop.f32.mrf.mxu0 }
 0x206   :  { %v1991_v45 = vadd.f32 %v1990_v4, %v7545_v37  ;;  %v2039_v41 = vpop.f32.mrf.mxu1  ;;  %2406 = vmatpush.bf16.msra.mxu1 %v5850_v40  ;;  %v8326_v37 = vld [vmem:[#allocation30_spill] sm:$0xff]  ;;  %v6640_v4 = vld [vmem:[#allocation5 + $0xc] sm:$0xf] }
 0x207   :  { %v2136_v25 = vadd.f32 %v2135_v48, %v2087_v18  ;;  %v8327_v18 = vld [vmem:[#allocation31_spill] sm:$0xff] }
 0x208   :  { %v2040_v24 = vadd.f32 %v2039_v41, %v1991_v45  ;;  %v6770_v41 = vld [vmem:[#allocation5 + $0x414] sm:$0xf0] }
 0x209   :  { %v2776_v60 = vmax.f32 %v2136_v25, 0.0  ;;  %v5706_v40 = vor.u32 %v6770_v41, %v5705_v32 }
 0x20b   :  { %2358 = vmatpush.bf16.msra.mxu0 %v5706_v40  ;;  %v5819_v40 = vld [vmem:[#allocation5 + $0x4f8] sm:$0xf0] }
 0x20c   :  { %v2088_v61 = vpop.f32.mrf.mxu2 }
 0x20d   :  { %v2089_v16 = vadd.f32 %v2088_v61, %v2040_v24  ;;  %v2137_v9 = vpop.f32.mrf.mxu3  ;;  %v1993_v13 = vpop.f32.mrf.mxu0  ;;  %v5323_v24 = vld [vmem:[#allocation5 + $0x118] sm:$0xf0] }
 0x20e   :  { %v1994_v6 = vadd.f32 %v1993_v13, %v7553_v29  ;;  %v2042_v21 = vpop.f32.mrf.mxu1  ;;  %v5198_v29 = vor.u32 %v6640_v4, %v5195_v30 }
 0x20f   :  { %v2138_v57 = vadd.f32 %v2137_v9, %v2089_v16  ;;  %v6672_v9 = vld [vmem:[#allocation5 + $0x10c] sm:$0xf] }
 0x210   :  { %v2043_v55 = vadd.f32 %v2042_v21, %v1994_v6  ;;  %2188 = vmatmul.bf16.gmra.mxu0 %v8326_v37  ;;  %2237 = vmatmul.bf16.gmra.mxu1 %v8327_v18  ;;  %v5326_v61 = vor.u32 %v6672_v9, %v5323_v24 }
 0x211   :  { %v2780_v22 = vmax.f32 %v2138_v57, 0.0  ;;  %2286 = vmatmul.bf16.gmra.mxu2 %v7324_v10  ;;  %v5833_v57 = vld [vmem:[#allocation5 + $0x508] sm:$0xf] }
 0x212   :  { %2335 = vmatmul.bf16.gmra.mxu3 %v7326_v11  ;;  %2456 = vmatpush.bf16.msra.mxu2 %v5198_v29 }
 0x213   :  { %v7631_v48 = vpack.c.bf16 %v2780_v22, %v2776_v60  ;;  %2505 = vmatpush.bf16.msra.mxu3 %v5326_v61  ;;  %v6802_v60 = vld [vmem:[#allocation5 + $0x514] sm:$0xf0]  ;;  %v6732_v61 = vld [vmem:[#allocation5 + $0x2ec] sm:$0xf] }
 0x214   :  { %v2091_v45 = vpop.f32.mrf.mxu2  ;;  %v5834_v22 = vor.u32 %v6802_v60, %v5833_v57 }
 0x215   :  { %8328 = vst [vmem:[#allocation24_spill] sm:$0xff] %v7631_v48  ;;  %v2092_v38 = vadd.f32 %v2091_v45, %v2043_v55  ;;  %v2140_v23 = vpop.f32.mrf.mxu3  ;;  %v1995_v25 = vpop.f32.mrf.mxu0 }
 0x216   :  { %v1996_v16 = vadd.f32 %v1995_v25, %v7559_v12  ;;  %v2044_v13 = vpop.f32.mrf.mxu1  ;;  %2407 = vmatpush.bf16.msra.mxu1 %v5834_v22  ;;  %v8329_v12 = vld [vmem:[#allocation32_spill] sm:$0xff]  ;;  %v6796_v25 = vld [vmem:[#allocation5 + $0x4ec] sm:$0xf] }
 0x217   :  { %v2141_v6 = vadd.f32 %v2140_v23, %v2092_v38  ;;  %v8330_v38 = vld [vmem:[#allocation33_spill] sm:$0xff] }
 0x218   :  { %v2045_v21 = vadd.f32 %v2044_v13, %v1996_v16  ;;  %v5563_v13 = vld [vmem:[#allocation5 + $0x2f8] sm:$0xf0] }
 0x219   :  { %v2784_v29 = vmax.f32 %v2141_v6, 0.0  ;;  %v5566_v22 = vor.u32 %v6732_v61, %v5563_v13 }
 0x21b   :  { %2547 = vmatpush.bf16.msrb.mxu0 %v5566_v22  ;;  %v6728_v22 = vld [vmem:[#allocation5 + $0x2cc] sm:$0xf] }
 0x21c   :  { %v2093_v4 = vpop.f32.mrf.mxu2 }
 0x21d   :  { %v2094_v30 = vadd.f32 %v2093_v4, %v2045_v21  ;;  %v2142_v48 = vpop.f32.mrf.mxu3  ;;  %v1998_v55 = vpop.f32.mrf.mxu0  ;;  %v5947_v21 = vld [vmem:[#allocation5 + $0x5f8] sm:$0xf0] }
 0x21e   :  { %v1999_v45 = vadd.f32 %v1998_v55, %v7567_v50  ;;  %v2047_v32 = vpop.f32.mrf.mxu1  ;;  %v5822_v50 = vor.u32 %v6796_v25, %v5819_v40 }
 0x21f   :  { %v2143_v41 = vadd.f32 %v2142_v48, %v2094_v30  ;;  %v6828_v48 = vld [vmem:[#allocation5 + $0x5ec] sm:$0xf] }
 0x220   :  { %v2048_v9 = vadd.f32 %v2047_v32, %v1999_v45  ;;  %2193 = vmatmul.bf16.gmra.mxu0 %v8329_v12  ;;  %2242 = vmatmul.bf16.gmra.mxu1 %v8330_v38  ;;  %v5950_v4 = vor.u32 %v6828_v48, %v5947_v21  ;;  %v6764_v32 = vld [vmem:[#allocation5 + $0x3ec] sm:$0xf] }
 0x221   :  { %v2788_v24 = vmax.f32 %v2143_v41, 0.0  ;;  %2291 = vmatmul.bf16.gmra.mxu2 %v7336_v46  ;;  %v5691_v41 = vld [vmem:[#allocation5 + $0x3f8] sm:$0xf0] }
 0x222   :  { %2340 = vmatmul.bf16.gmra.mxu3 %v7338_v47  ;;  %2645 = vmatpush.bf16.msrb.mxu2 %v5822_v50 }
 0x223   :  { %v7639_v23 = vpack.c.bf16 %v2788_v24, %v2784_v29  ;;  %2694 = vmatpush.bf16.msrb.mxu3 %v5950_v4  ;;  %v5694_v24 = vor.u32 %v6764_v32, %v5691_v41 }
 0x224   :  { %v2096_v16 = vpop.f32.mrf.mxu2 }
 0x225   :  { %8331 = vst [vmem:[#allocation25_spill] sm:$0xff] %v7639_v23  ;;  %v2097_v57 = vadd.f32 %v2096_v16, %v2048_v9  ;;  %v2145_v60 = vpop.f32.mrf.mxu3  ;;  %v2000_v6 = vpop.f32.mrf.mxu0  ;;  %2596 = vmatpush.bf16.msrb.mxu1 %v5694_v24 }
 0x226   :  { %v2001_v30 = vadd.f32 %v2000_v6, %v7573_v34  ;;  %v2049_v55 = vpop.f32.mrf.mxu1  ;;  %v8332_v34 = vld [vmem:[#allocation34_spill] sm:$0xff]  ;;  %v5803_v6 = vld [vmem:[#allocation5 + $0x4d8] sm:$0xf0] }
 0x227   :  { %v2146_v45 = vadd.f32 %v2145_v60, %v2097_v57  ;;  %v8333_v57 = vld [vmem:[#allocation35_spill] sm:$0xff] }
 0x228   :  { %v2050_v29 = vadd.f32 %v2049_v55, %v2001_v30  ;;  %v6792_v60 = vld [vmem:[#allocation5 + $0x4cc] sm:$0xf] }
 0x229   :  { %v2792_v50 = vmax.f32 %v2146_v45, 0.0  ;;  %v5806_v30 = vor.u32 %v6792_v60, %v5803_v6  ;;  %v6824_v55 = vld [vmem:[#allocation5 + $0x5cc] sm:$0xf]  ;;  %v7650_v60 = vld [vmem:[#allocation7] sm:$0xf] }
 0x22a   :  { %v7653_v6 = vperm.slane %v7650_v60, 2 }
 0x22b   :  { %2646 = vmatpush.bf16.msrb.mxu2 %v5806_v30 }
 0x22c   :  { %v2098_v25 = vpop.f32.mrf.mxu2 }
 0x22d   :  { %v2099_v40 = vadd.f32 %v2098_v25, %v2050_v29  ;;  %v2147_v23 = vpop.f32.mrf.mxu3  ;;  %v2003_v9 = vpop.f32.mrf.mxu0 }
 0x22e   :  { %v2004_v16 = vadd.f32 %v2003_v9, %v7581_v17  ;;  %v2052_v61 = vpop.f32.mrf.mxu1  ;;  %v5547_v17 = vld [vmem:[#allocation5 + $0x2d8] sm:$0xf0] }
 0x22f   :  { %v2148_v13 = vadd.f32 %v2147_v23, %v2099_v40  ;;  %v5931_v23 = vld [vmem:[#allocation5 + $0x5d8] sm:$0xf0]  ;;  %v5550_v41 = vor.u32 %v6728_v22, %v5547_v17 }
 0x230   :  { %v2053_v48 = vadd.f32 %v2052_v61, %v2004_v16  ;;  %2198 = vmatmul.bf16.gmra.mxu0 %v8332_v34  ;;  %2247 = vmatmul.bf16.gmra.mxu1 %v8333_v57  ;;  %v5934_v29 = vor.u32 %v6824_v55, %v5931_v23  ;;  %v6760_v61 = vld [vmem:[#allocation5 + $0x3cc] sm:$0xf] }
 0x231   :  { %v2796_v21 = vmax.f32 %v2148_v13, 0.0  ;;  %2296 = vmatmul.bf16.gmra.mxu2 %v8308_v39  ;;  %2548 = vmatpush.bf16.msrb.mxu0 %v5550_v41  ;;  %v5675_v13 = vld [vmem:[#allocation5 + $0x3d8] sm:$0xf0] }
 0x232   :  { %2345 = vmatmul.bf16.gmra.mxu3 %v8309_v44 }
 0x233   :  { %v7647_v4 = vpack.c.bf16 %v2796_v21, %v2792_v50  ;;  %2695 = vmatpush.bf16.msrb.mxu3 %v5934_v29  ;;  %v5678_v21 = vor.u32 %v6760_v61, %v5675_v13  ;;  %v5531_v61 = vld [vmem:[#allocation5 + $0x2b8] sm:$0xf0]  ;;  %v6820_v13 = vld [vmem:[#allocation5 + $0x5ac] sm:$0xf] }
 0x234   :  { %v2101_v32 = vpop.f32.mrf.mxu2 }
 0x235   :  { %8334 = vst [vmem:[#allocation26_spill] sm:$0xff] %v7647_v4  ;;  %v2102_v45 = vadd.f32 %v2101_v32, %v2053_v48  ;;  %v2150_v24 = vpop.f32.mrf.mxu3  ;;  %v2005_v25 = vpop.f32.mrf.mxu0  ;;  %2597 = vmatpush.bf16.msrb.mxu1 %v5678_v21 }
 0x236   :  { %v2006_v40 = vadd.f32 %v2005_v25, %v7587_v53  ;;  %v2054_v9 = vpop.f32.mrf.mxu1  ;;  %v6724_v25 = vld [vmem:[#allocation5 + $0x2ac] sm:$0xf] }
 0x237   :  { %v2151_v16 = vadd.f32 %v2150_v24, %v2102_v45  ;;  %v6788_v45 = vld [vmem:[#allocation5 + $0x4ac] sm:$0xf]  ;;  %v5787_v24 = vld [vmem:[#allocation5 + $0x4b8] sm:$0xf0] }
 0x238   :  { %v2055_v50 = vadd.f32 %v2054_v9, %v2006_v40  ;;  %v5790_v9 = vor.u32 %v6788_v45, %v5787_v24 }
 0x239   :  { %v2800_v41 = vmax.f32 %v2151_v16, 0.0 }
 0x23a   :  { %2647 = vmatpush.bf16.msrb.mxu2 %v5790_v9 }
 0x23c   :  { %v2103_v48 = vpop.f32.mrf.mxu2 }
 0x23d   :  { %v2104_v22 = vadd.f32 %v2103_v48, %v2055_v50  ;;  %v2152_v17 = vpop.f32.mrf.mxu3  ;;  %v2164_v30 = vpop.f32.mrf.mxu0  ;;  %v5915_v50 = vld [vmem:[#allocation5 + $0x5b8] sm:$0xf0]  ;;  %v5534_v48 = vor.u32 %v6724_v25, %v5531_v61 }
 0x23e   :  { %v2165_v53 = vadd.f32 %v2164_v30, %v7653_v6  ;;  %v2213_v55 = vpop.f32.mrf.mxu1 }
 0x23f   :  { %v2153_v23 = vadd.f32 %v2152_v17, %v2104_v22  ;;  %v5918_v22 = vor.u32 %v6820_v13, %v5915_v50  ;;  %2549 = vmatpush.bf16.msrb.mxu0 %v5534_v48  ;;  %v5771_v48 = vld [vmem:[#allocation5 + $0x498] sm:$0xf0] }
 0x240   :  { %v2214_v32 = vadd.f32 %v2213_v55, %v2165_v53  ;;  %2359 = vmatmul.bf16.vlgmr.msra.gmra.mxu0 %v7361_v62  ;;  %2408 = vmatmul.bf16.vlgmr.msra.gmra.mxu1 %v7363_v0  ;;  %v6756_v55 = vld [vmem:[#allocation5 + $0x3ac] sm:$0xf] }
 0x241   :  { %v2804_v29 = vmax.f32 %v2153_v23, 0.0  ;;  %2457 = vmatmul.bf16.vlgmr.msra.gmra.mxu2 %v8312_v63  ;;  %2696 = vmatpush.bf16.msrb.mxu3 %v5918_v22  ;;  %v5659_v23 = vld [vmem:[#allocation5 + $0x3b8] sm:$0xf0]  ;;  %v6720_v22 = vld [vmem:[#allocation5 + $0x28c] sm:$0xf] }
 0x242   :  { %2506 = vmatmul.bf16.vlgmr.msra.gmra.mxu3 %v8313_v35 }
 0x243   :  { %v7660_v40 = vpack.c.bf16 %v2804_v29, %v2800_v41  ;;  %v5662_v29 = vor.u32 %v6756_v55, %v5659_v23 }
 0x244   :  { %v2262_v21 = vpop.f32.mrf.mxu2 }
 0x245   :  { %8335 = vst [vmem:[#allocation27_spill] sm:$0xff] %v7660_v40  ;;  %v2263_v16 = vadd.f32 %v2262_v21, %v2214_v32  ;;  %v2311_v17 = vpop.f32.mrf.mxu3  ;;  %v2166_v30 = vpop.f32.mrf.mxu0  ;;  %2598 = vmatpush.bf16.msrb.mxu1 %v5662_v29  ;;  %v6784_v21 = vld [vmem:[#allocation5 + $0x48c] sm:$0xf] }
 0x246   :  { %v2167_v63 = vadd.f32 %v2166_v30, %v7653_v6  ;;  %v2215_v53 = vpop.f32.mrf.mxu1  ;;  %v6816_v30 = vld [vmem:[#allocation5 + $0x58c] sm:$0xf] }
 0x247   :  { %v7663_v35 = vadd.f32 %v2311_v17, %v2263_v16  ;;  %v5774_v16 = vor.u32 %v6784_v21, %v5771_v48  ;;  %v5515_v17 = vld [vmem:[#allocation5 + $0x298] sm:$0xf0] }
 0x248   :  { %v2216_v41 = vadd.f32 %v2215_v53, %v2167_v63  ;;  %v5899_v63 = vld [vmem:[#allocation5 + $0x598] sm:$0xf0]  ;;  %v5518_v55 = vor.u32 %v6720_v22, %v5515_v17 }
 0x249   :  { %v5902_v23 = vor.u32 %v6816_v30, %v5899_v63  ;;  %2648 = vmatpush.bf16.msrb.mxu2 %v5774_v16 }
 0x24a   :  { %2550 = vmatpush.bf16.msrb.mxu0 %v5518_v55  ;;  %v5755_v55 = vld [vmem:[#allocation5 + $0x478] sm:$0xf0] }
 0x24b   :  { %2697 = vmatpush.bf16.msrb.mxu3 %v5902_v23  ;;  %v6716_v23 = vld [vmem:[#allocation5 + $0x26c] sm:$0xf] }
 0x24c   :  { %v2264_v45 = vpop.f32.mrf.mxu2 }
 0x24d   :  { %v2265_v24 = vadd.f32 %v2264_v45, %v2216_v41  ;;  %v2313_v25 = vpop.f32.mrf.mxu3  ;;  %v2169_v61 = vpop.f32.mrf.mxu0 }
 0x24e   :  { %v2170_v32 = vadd.f32 %v2169_v61, %v7653_v6  ;;  %v2218_v13 = vpop.f32.mrf.mxu1  ;;  %v5643_v61 = vld [vmem:[#allocation5 + $0x398] sm:$0xf0] }
 0x24f   :  { %v7666_v9 = vadd.f32 %v2313_v25, %v2265_v24 }
 0x250   :  { %v2219_v50 = vadd.f32 %v2218_v13, %v2170_v32  ;;  %2364 = vmatmul.bf16.gmra.mxu0 %v7373_v1  ;;  %2413 = vmatmul.bf16.gmra.mxu1 %v7375_v5 }
 0x251   :  { %2462 = vmatmul.bf16.gmra.mxu2 %v8314_v36 }
 0x252   :  { %2511 = vmatmul.bf16.gmra.mxu3 %v8315_v20  ;;  %v6752_v20 = vld [vmem:[#allocation5 + $0x38c] sm:$0xf] }
 0x253   :  { %v5646_v13 = vor.u32 %v6752_v20, %v5643_v61 }
 0x254   :  { %v2267_v53 = vpop.f32.mrf.mxu2 }
 0x255   :  { %v2268_v41 = vadd.f32 %v2267_v53, %v2219_v50  ;;  %v2316_v29 = vpop.f32.mrf.mxu3  ;;  %v2171_v45 = vpop.f32.mrf.mxu0  ;;  %2599 = vmatpush.bf16.msrb.mxu1 %v5646_v13  ;;  %v6780_v53 = vld [vmem:[#allocation5 + $0x46c] sm:$0xf] }
 0x256   :  { %v2172_v24 = vadd.f32 %v2171_v45, %v7653_v6  ;;  %v2220_v25 = vpop.f32.mrf.mxu1  ;;  %v6812_v45 = vld [vmem:[#allocation5 + $0x56c] sm:$0xf] }
 0x257   :  { %v7673_v36 = vadd.f32 %v2316_v29, %v2268_v41  ;;  %v5758_v41 = vor.u32 %v6780_v53, %v5755_v55  ;;  %v5499_v29 = vld [vmem:[#allocation5 + $0x278] sm:$0xf0] }
 0x258   :  { %v2221_v32 = vadd.f32 %v2220_v25, %v2172_v24  ;;  %v5883_v24 = vld [vmem:[#allocation5 + $0x578] sm:$0xf0]  ;;  %v5502_v20 = vor.u32 %v6716_v23, %v5499_v29 }
 0x259   :  { %v5886_v61 = vor.u32 %v6812_v45, %v5883_v24  ;;  %2649 = vmatpush.bf16.msrb.mxu2 %v5758_v41 }
 0x25a   :  { %2551 = vmatpush.bf16.msrb.mxu0 %v5502_v20  ;;  %v5739_v20 = vld [vmem:[#allocation5 + $0x458] sm:$0xf0] }
 0x25b   :  { %2698 = vmatpush.bf16.msrb.mxu3 %v5886_v61  ;;  %v6712_v61 = vld [vmem:[#allocation5 + $0x24c] sm:$0xf] }
 0x25c   :  { %v2269_v21 = vpop.f32.mrf.mxu2 }
 0x25d   :  { %v2270_v48 = vadd.f32 %v2269_v21, %v2221_v32  ;;  %v2318_v22 = vpop.f32.mrf.mxu3  ;;  %v2174_v17 = vpop.f32.mrf.mxu0 }
 0x25e   :  { %v2175_v50 = vadd.f32 %v2174_v17, %v7653_v6  ;;  %v2223_v30 = vpop.f32.mrf.mxu1  ;;  %v5627_v17 = vld [vmem:[#allocation5 + $0x378] sm:$0xf0] }
 0x25f   :  { %v7676_v16 = vadd.f32 %v2318_v22, %v2270_v48 }
 0x260   :  { %v2224_v63 = vadd.f32 %v2223_v30, %v2175_v50  ;;  %2369 = vmatmul.bf16.gmra.mxu0 %v7387_v19  ;;  %2418 = vmatmul.bf16.gmra.mxu1 %v7389_v31 }
 0x261   :  { %2467 = vmatmul.bf16.gmra.mxu2 %v8317_v7 }
 0x262   :  { %2516 = vmatmul.bf16.gmra.mxu3 %v8318_v28  ;;  %v6748_v28 = vld [vmem:[#allocation5 + $0x36c] sm:$0xf] }
 0x263   :  { %v5630_v30 = vor.u32 %v6748_v28, %v5627_v17 }
 0x264   :  { %v2272_v25 = vpop.f32.mrf.mxu2 }
 0x265   :  { %v2273_v32 = vadd.f32 %v2272_v25, %v2224_v63  ;;  %v2321_v13 = vpop.f32.mrf.mxu3  ;;  %v2176_v21 = vpop.f32.mrf.mxu0  ;;  %2600 = vmatpush.bf16.msrb.mxu1 %v5630_v30  ;;  %v6776_v25 = vld [vmem:[#allocation5 + $0x44c] sm:$0xf] }
 0x266   :  { %v2177_v48 = vadd.f32 %v2176_v21, %v7653_v6  ;;  %v2225_v22 = vpop.f32.mrf.mxu1  ;;  %v6808_v21 = vld [vmem:[#allocation5 + $0x54c] sm:$0xf] }
 0x267   :  { %v7683_v7 = vadd.f32 %v2321_v13, %v2273_v32  ;;  %v5742_v32 = vor.u32 %v6776_v25, %v5739_v20  ;;  %v5483_v13 = vld [vmem:[#allocation5 + $0x258] sm:$0xf0] }
 0x268   :  { %v2226_v50 = vadd.f32 %v2225_v22, %v2177_v48  ;;  %v5867_v48 = vld [vmem:[#allocation5 + $0x558] sm:$0xf0]  ;;  %v5486_v28 = vor.u32 %v6712_v61, %v5483_v13 }
 0x269   :  { %v5870_v17 = vor.u32 %v6808_v21, %v5867_v48  ;;  %2650 = vmatpush.bf16.msrb.mxu2 %v5742_v32 }
 0x26a   :  { %2552 = vmatpush.bf16.msrb.mxu0 %v5486_v28  ;;  %v5723_v28 = vld [vmem:[#allocation5 + $0x438] sm:$0xf0] }
 0x26b   :  { %2699 = vmatpush.bf16.msrb.mxu3 %v5870_v17  ;;  %v6708_v17 = vld [vmem:[#allocation5 + $0x22c] sm:$0xf] }
 0x26c   :  { %v2274_v53 = vpop.f32.mrf.mxu2 }
 0x26d   :  { %v2275_v55 = vadd.f32 %v2274_v53, %v2226_v50  ;;  %v2323_v23 = vpop.f32.mrf.mxu3  ;;  %v2179_v29 = vpop.f32.mrf.mxu0 }
 0x26e   :  { %v2180_v63 = vadd.f32 %v2179_v29, %v7653_v6  ;;  %v2228_v45 = vpop.f32.mrf.mxu1  ;;  %v5611_v29 = vld [vmem:[#allocation5 + $0x358] sm:$0xf0] }
 0x26f   :  { %v7686_v41 = vadd.f32 %v2323_v23, %v2275_v55 }
 0x270   :  { %v2229_v24 = vadd.f32 %v2228_v45, %v2180_v63  ;;  %2374 = vmatmul.bf16.gmra.mxu0 %v7401_v58  ;;  %2423 = vmatmul.bf16.gmra.mxu1 %v7403_v2 }
 0x271   :  { %2472 = vmatmul.bf16.gmra.mxu2 %v8320_v59 }
 0x272   :  { %2521 = vmatmul.bf16.gmra.mxu3 %v8321_v8  ;;  %v6744_v8 = vld [vmem:[#allocation5 + $0x34c] sm:$0xf] }
 0x273   :  { %v5614_v45 = vor.u32 %v6744_v8, %v5611_v29 }
 0x274   :  { %v2277_v22 = vpop.f32.mrf.mxu2 }
 0x275   :  { %v2278_v50 = vadd.f32 %v2277_v22, %v2229_v24  ;;  %v2326_v30 = vpop.f32.mrf.mxu3  ;;  %v2181_v53 = vpop.f32.mrf.mxu0  ;;  %2601 = vmatpush.bf16.msrb.mxu1 %v5614_v45  ;;  %v6772_v22 = vld [vmem:[#allocation5 + $0x42c] sm:$0xf] }
 0x276   :  { %v2182_v55 = vadd.f32 %v2181_v53, %v7653_v6  ;;  %v2230_v23 = vpop.f32.mrf.mxu1  ;;  %v6804_v53 = vld [vmem:[#allocation5 + $0x52c] sm:$0xf] }
 0x277   :  { %v7693_v59 = vadd.f32 %v2326_v30, %v2278_v50  ;;  %v5726_v50 = vor.u32 %v6772_v22, %v5723_v28  ;;  %v5467_v30 = vld [vmem:[#allocation5 + $0x238] sm:$0xf0] }
 0x278   :  { %v2231_v63 = vadd.f32 %v2230_v23, %v2182_v55  ;;  %v5851_v55 = vld [vmem:[#allocation5 + $0x538] sm:$0xf0]  ;;  %v5470_v8 = vor.u32 %v6708_v17, %v5467_v30 }
 0x279   :  { %v5854_v29 = vor.u32 %v6804_v53, %v5851_v55  ;;  %2651 = vmatpush.bf16.msrb.mxu2 %v5726_v50 }
 0x27a   :  { %2553 = vmatpush.bf16.msrb.mxu0 %v5470_v8  ;;  %v8337_v8 = vld [vmem:[#allocation39_spill] sm:$0xff] }
 0x27b   :  { %2700 = vmatpush.bf16.msrb.mxu3 %v5854_v29  ;;  %v6768_v29 = vld [vmem:[#allocation5 + $0x40c] sm:$0xf] }
 0x27c   :  { %v2279_v25 = vpop.f32.mrf.mxu2 }
 0x27d   :  { %v2280_v20 = vadd.f32 %v2279_v25, %v2231_v63  ;;  %v2328_v61 = vpop.f32.mrf.mxu3  ;;  %v2184_v13 = vpop.f32.mrf.mxu0 }
 0x27e   :  { %v2185_v24 = vadd.f32 %v2184_v13, %v7653_v6  ;;  %v2233_v21 = vpop.f32.mrf.mxu1  ;;  %v5595_v13 = vld [vmem:[#allocation5 + $0x338] sm:$0xf0] }
 0x27f   :  { %v7696_v32 = vadd.f32 %v2328_v61, %v2280_v20 }
 0x280   :  { %v2234_v48 = vadd.f32 %v2233_v21, %v2185_v24  ;;  %2379 = vmatmul.bf16.gmra.mxu0 %v7415_v49  ;;  %2428 = vmatmul.bf16.gmra.mxu1 %v7417_v33 }
 0x281   :  { %2477 = vmatmul.bf16.gmra.mxu2 %v8323_v56 }
 0x282   :  { %2526 = vmatmul.bf16.gmra.mxu3 %v8324_v3  ;;  %v6740_v3 = vld [vmem:[#allocation5 + $0x32c] sm:$0xf] }
 0x283   :  { %v5598_v21 = vor.u32 %v6740_v3, %v5595_v13  ;;  %v5835_v3 = vld [vmem:[#allocation5 + $0x518] sm:$0xf0] }
 0x284   :  { %v2282_v23 = vpop.f32.mrf.mxu2 }
 0x285   :  { %v2283_v63 = vadd.f32 %v2282_v23, %v2234_v48  ;;  %v2331_v45 = vpop.f32.mrf.mxu3  ;;  %v2186_v25 = vpop.f32.mrf.mxu0  ;;  %2602 = vmatpush.bf16.msrb.mxu1 %v5598_v21  ;;  %v8336_v23 = vld [vmem:[#allocation38_spill] sm:$0xff] }
 0x286   :  { %v2187_v20 = vadd.f32 %v2186_v25, %v7653_v6  ;;  %v2235_v61 = vpop.f32.mrf.mxu1 }
 0x287   :  { %v7703_v56 = vadd.f32 %v2331_v45, %v2283_v63  ;;  %v5707_v63 = vld [vmem:[#allocation5 + $0x418] sm:$0xf0]  ;;  %v6704_v45 = vld [vmem:[#allocation5 + $0x20c] sm:$0xf] }
 0x288   :  { %v2236_v24 = vadd.f32 %v2235_v61, %v2187_v20  ;;  %v5710_v25 = vor.u32 %v6768_v29, %v5707_v63  ;;  %v5451_v20 = vld [vmem:[#allocation5 + $0x218] sm:$0xf0]  ;;  %v6800_v61 = vld [vmem:[#allocation5 + $0x50c] sm:$0xf] }
 0x289   :  { %v5838_v21 = vor.u32 %v6800_v61, %v5835_v3 }
 0x28a   :  { %2652 = vmatpush.bf16.msrb.mxu2 %v5710_v25 }
 0x28b   :  { %2701 = vmatpush.bf16.msrb.mxu3 %v5838_v21 }
 0x28c   :  { %v2284_v22 = vpop.f32.mrf.mxu2 }
 0x28d   :  { %v2285_v28 = vadd.f32 %v2284_v22, %v2236_v24  ;;  %v2333_v17 = vpop.f32.mrf.mxu3  ;;  %v2189_v30 = vpop.f32.mrf.mxu0  ;;  %v5454_v24 = vor.u32 %v6704_v45, %v5451_v20 }
 0x28e   :  { %v2190_v48 = vadd.f32 %v2189_v30, %v7653_v6  ;;  %v2238_v53 = vpop.f32.mrf.mxu1 }
 0x28f   :  { %v7706_v50 = vadd.f32 %v2333_v17, %v2285_v28  ;;  %2554 = vmatpush.bf16.msrb.mxu0 %v5454_v24  ;;  %v8339_v24 = vld [vmem:[#allocation41_spill] sm:$0xff] }
 0x290   :  { %v2239_v55 = vadd.f32 %v2238_v53, %v2190_v48  ;;  %2384 = vmatmul.bf16.gmra.mxu0 %v8336_v23  ;;  %2433 = vmatmul.bf16.gmra.mxu1 %v8337_v8  ;;  %v5579_v53 = vld [vmem:[#allocation5 + $0x318] sm:$0xf0] }
 0x291   :  { %2482 = vmatmul.bf16.gmra.mxu2 %v8326_v37 }
 0x292   :  { %2531 = vmatmul.bf16.gmra.mxu3 %v8327_v18  ;;  %v6736_v18 = vld [vmem:[#allocation5 + $0x30c] sm:$0xf] }
 0x293   :  { %v5582_v63 = vor.u32 %v6736_v18, %v5579_v53 }
 0x294   :  { %v2287_v13 = vpop.f32.mrf.mxu2 }
 0x295   :  { %v2288_v22 = vadd.f32 %v2287_v13, %v2239_v55  ;;  %v2336_v28 = vpop.f32.mrf.mxu3  ;;  %v2191_v17 = vpop.f32.mrf.mxu0  ;;  %2603 = vmatpush.bf16.msrb.mxu1 %v5582_v63  ;;  %v8338_v13 = vld [vmem:[#allocation40_spill] sm:$0xff] }
 0x296   :  { %v2192_v30 = vadd.f32 %v2191_v17, %v7653_v6  ;;  %v2240_v48 = vpop.f32.mrf.mxu1 }
 0x297   :  { %v7713_v37 = vadd.f32 %v2336_v28, %v2288_v22 }
 0x298   :  { %v2241_v29 = vadd.f32 %v2240_v48, %v2192_v30 }
 0x29c   :  { %v2289_v40 = vpop.f32.mrf.mxu2 }
 0x29d   :  { %v2290_v4 = vadd.f32 %v2289_v40, %v2241_v29  ;;  %v2338_v45 = vpop.f32.mrf.mxu3  ;;  %v2194_v20 = vpop.f32.mrf.mxu0 }
 0x29e   :  { %v2195_v55 = vadd.f32 %v2194_v20, %v7653_v6  ;;  %v2243_v61 = vpop.f32.mrf.mxu1 }
 0x29f   :  { %v7716_v25 = vadd.f32 %v2338_v45, %v2290_v4 }
 0x2a0   :  { %v2244_v3 = vadd.f32 %v2243_v61, %v2195_v55  ;;  %2389 = vmatmul.bf16.gmra.mxu0 %v8338_v13  ;;  %2438 = vmatmul.bf16.gmra.mxu1 %v8339_v24  ;;  %v8340_v55 = vld [vmem:[#allocation42_spill] sm:$0xff]  ;;  %v8341_v61 = vld [vmem:[#allocation43_spill] sm:$0xff] }
 0x2a1   :  { %2487 = vmatmul.bf16.gmra.mxu2 %v8329_v12 }
 0x2a2   :  { %2536 = vmatmul.bf16.gmra.mxu3 %v8330_v38 }
 0x2a4   :  { %v2292_v21 = vpop.f32.mrf.mxu2 }
 0x2a5   :  { %v2293_v22 = vadd.f32 %v2292_v21, %v2244_v3  ;;  %v2341_v28 = vpop.f32.mrf.mxu3  ;;  %v2196_v40 = vpop.f32.mrf.mxu0  ;;  %v6321_v3 = vld [vmem:[#allocation8 + $0x2e0] sm:$0xf]  ;;  %v6925_v21 = vld [vmem:[#allocation8 + $0x2ec] sm:$0xf0] }
 0x2a6   :  { %v2197_v17 = vadd.f32 %v2196_v40, %v7653_v6  ;;  %v2245_v30 = vpop.f32.mrf.mxu1 }
 0x2a7   :  { %v7723_v48 = vadd.f32 %v2341_v28, %v2293_v22  ;;  %v6322_v22 = vor.u32 %v6925_v21, %v6321_v3  ;;  %v6193_v21 = vld [vmem:[#allocation8 + $0x1e0] sm:$0xf] }
 0x2a8   :  { %v2246_v4 = vadd.f32 %v2245_v30, %v2197_v17 }
 0x2a9   :  { %3715 = vmatpush.bf16.msra.mxu2 %v6322_v22 }
 0x2ac   :  { %v2294_v18 = vpop.f32.mrf.mxu2 }
 0x2ad   :  { %v2295_v53 = vadd.f32 %v2294_v18, %v2246_v4  ;;  %v2343_v29 = vpop.f32.mrf.mxu3  ;;  %v2199_v63 = vpop.f32.mrf.mxu0 }
 0x2ae   :  { %v2200_v45 = vadd.f32 %v2199_v63, %v7653_v6  ;;  %v2248_v20 = vpop.f32.mrf.mxu1  ;;  %v6861_v63 = vld [vmem:[#allocation8 + $0xec] sm:$0xf0] }
 0x2af   :  { %v7726_v12 = vadd.f32 %v2343_v29, %v2295_v53  ;;  %v6065_v29 = vld [vmem:[#allocation8 + $0xe0] sm:$0xf] }
 0x2b0   :  { %v2249_v38 = vadd.f32 %v2248_v20, %v2200_v45  ;;  %2394 = vmatmul.bf16.gmra.mxu0 %v8340_v55  ;;  %2443 = vmatmul.bf16.gmra.mxu1 %v8341_v61  ;;  %v6449_v45 = vld [vmem:[#allocation8 + $0x3e0] sm:$0xf]  ;;  %v6957_v61 = vld [vmem:[#allocation8 + $0x3ec] sm:$0xf0] }
 0x2b1   :  { %2492 = vmatmul.bf16.gmra.mxu2 %v8332_v34  ;;  %v6066_v34 = vor.u32 %v6861_v63, %v6065_v29  ;;  %v6921_v29 = vld [vmem:[#allocation8 + $0x2cc] sm:$0xf0] }
 0x2b2   :  { %2541 = vmatmul.bf16.gmra.mxu3 %v8333_v57  ;;  %v6450_v57 = vor.u32 %v6957_v61, %v6449_v45  ;;  %v7742_v61 = vperm.slane %v7650_v60, 3  ;;  %v6433_v60 = vld [vmem:[#allocation8 + $0x3c0] sm:$0xf] }
 0x2b3   :  { %3617 = vmatpush.bf16.msra.mxu0 %v6066_v34 }
 0x2b4   :  { %v2297_v28 = vpop.f32.mrf.mxu2  ;;  %3764 = vmatpush.bf16.msra.mxu3 %v6450_v57  ;;  %v6857_v57 = vld [vmem:[#allocation8 + $0xcc] sm:$0xf0] }
 0x2b5   :  { %v2298_v40 = vadd.f32 %v2297_v28, %v2249_v38  ;;  %v2346_v17 = vpop.f32.mrf.mxu3  ;;  %v2201_v30 = vpop.f32.mrf.mxu0  ;;  %v6893_v38 = vld [vmem:[#allocation8 + $0x1ec] sm:$0xf0] }
 0x2b6   :  { %v2202_v4 = vadd.f32 %v2201_v30, %v7653_v6  ;;  %v2250_v18 = vpop.f32.mrf.mxu1  ;;  %v6194_v44 = vor.u32 %v6893_v38, %v6193_v21 }
 0x2b7   :  { %v7733_v53 = vadd.f32 %v2346_v17, %v2298_v40 }
 0x2b8   :  { %v2251_v20 = vadd.f32 %v2250_v18, %v2202_v4  ;;  %3666 = vmatpush.bf16.msra.mxu1 %v6194_v44  ;;  %v8342_v4 = vld [vmem:[#allocation21_spill] sm:$0xff]  ;;  %v6305_v18 = vld [vmem:[#allocation8 + $0x2c0] sm:$0xf] }
 0x2b9   :  { %v6306_v63 = vor.u32 %v6921_v29, %v6305_v18  ;;  %v6889_v18 = vld [vmem:[#allocation8 + $0x1cc] sm:$0xf0] }
 0x2bb   :  { %3716 = vmatpush.bf16.msra.mxu2 %v6306_v63 }
 0x2bc   :  { %v2299_v3 = vpop.f32.mrf.mxu2 }
 0x2bd   :  { %v2300_v28 = vadd.f32 %v2299_v3, %v2251_v20  ;;  %v2348_v55 = vpop.f32.mrf.mxu3  ;;  %v2360_v22 = vpop.f32.mrf.mxu0 }
 0x2be   :  { %v2361_v6 = vadd.f32 %v2360_v22, %v7663_v35  ;;  %v2409_v40 = vpop.f32.mrf.mxu1 }
 0x2bf   :  { %v7736_v17 = vadd.f32 %v2348_v55, %v2300_v28 }
 0x2c0   :  { %v2410_v30 = vadd.f32 %v2409_v40, %v2361_v6  ;;  %2555 = vmatmul.bf16.vlgmr.msrb.gmra.mxu0 %v7264_v54  ;;  %2604 = vmatmul.bf16.vlgmr.msrb.gmra.mxu1 %v8342_v4  ;;  %v6177_v4 = vld [vmem:[#allocation8 + $0x1c0] sm:$0xf] }
 0x2c1   :  { %2653 = vmatmul.bf16.vlgmr.msrb.gmra.mxu2 %v7361_v62  ;;  %v6049_v62 = vld [vmem:[#allocation8 + $0xc0] sm:$0xf] }
 0x2c2   :  { %2702 = vmatmul.bf16.vlgmr.msrb.gmra.mxu3 %v7363_v0  ;;  %v6050_v21 = vor.u32 %v6857_v57, %v6049_v62  ;;  %v6953_v0 = vld [vmem:[#allocation8 + $0x3cc] sm:$0xf0]  ;;  %v2745_v28 = vmax.f32 %v2410_v30, 0.0 }
 0x2c3   :  { %v6434_v38 = vor.u32 %v6953_v0, %v6433_v60 }
 0x2c4   :  { %v2458_v35 = vpop.f32.mrf.mxu2  ;;  %3618 = vmatpush.bf16.msra.mxu0 %v6050_v21 }
 0x2c5   :  { %v2459_v55 = vadd.f32 %v2458_v35, %v7742_v61  ;;  %v2507_v45 = vpop.f32.mrf.mxu3  ;;  %v2362_v44 = vpop.f32.mrf.mxu0  ;;  %3765 = vmatpush.bf16.msra.mxu3 %v6434_v38  ;;  %v6178_v35 = vor.u32 %v6889_v18, %v6177_v4 }
 0x2c6   :  { %v2363_v54 = vadd.f32 %v2362_v44, %v7666_v9  ;;  %v2411_v20 = vpop.f32.mrf.mxu1 }
 0x2c7   :  { %v7747_v34 = vadd.f32 %v2507_v45, %v2459_v55  ;;  %3667 = vmatpush.bf16.msra.mxu1 %v6178_v35  ;;  %v6885_v35 = vld [vmem:[#allocation8 + $0x1ac] sm:$0xf0] }
 0x2c8   :  { %v2412_v3 = vadd.f32 %v2411_v20, %v2363_v54  ;;  %v6289_v54 = vld [vmem:[#allocation8 + $0x2a0] sm:$0xf]  ;;  %v6917_v20 = vld [vmem:[#allocation8 + $0x2ac] sm:$0xf0] }
 0x2c9   :  { %v6290_v62 = vor.u32 %v6917_v20, %v6289_v54 }
 0x2ca   :  { %v2749_v22 = vmax.f32 %v2412_v3, 0.0 }
 0x2cb   :  { %3717 = vmatpush.bf16.msra.mxu2 %v6290_v62 }
 0x2cc   :  { %v7749_v6 = vpack.c.bf16 %v2749_v22, %v2745_v28  ;;  %v2460_v40 = vpop.f32.mrf.mxu2  ;;  %v6417_v28 = vld [vmem:[#allocation8 + $0x3a0] sm:$0xf] }
 0x2cd   :  { %v2461_v9 = vadd.f32 %v2460_v40, %v7742_v61  ;;  %v2509_v29 = vpop.f32.mrf.mxu3  ;;  %v2365_v63 = vpop.f32.mrf.mxu0 }
 0x2ce   :  { %v2366_v55 = vadd.f32 %v2365_v63, %v7673_v36  ;;  %v2414_v45 = vpop.f32.mrf.mxu1  ;;  %v6161_v63 = vld [vmem:[#allocation8 + $0x1a0] sm:$0xf] }
 0x2cf   :  { %v7753_v44 = vadd.f32 %v2509_v29, %v2461_v9  ;;  %v6162_v54 = vor.u32 %v6885_v35, %v6161_v63  ;;  %v6145_v35 = vld [vmem:[#allocation8 + $0x180] sm:$0xf] }
 0x2d0   :  { %v2415_v30 = vadd.f32 %v2414_v45, %v2366_v55  ;;  %2560 = vmatmul.bf16.gmra.mxu0 %v7276_v26  ;;  %2609 = vmatmul.bf16.gmra.mxu1 %v7278_v27  ;;  %v6033_v26 = vld [vmem:[#allocation8 + $0xa0] sm:$0xf]  ;;  %v6853_v27 = vld [vmem:[#allocation8 + $0xac] sm:$0xf0] }
 0x2d1   :  { %2658 = vmatmul.bf16.gmra.mxu2 %v7373_v1  ;;  %v6034_v22 = vor.u32 %v6853_v27, %v6033_v26  ;;  %3668 = vmatpush.bf16.msra.mxu1 %v6162_v54 }
 0x2d2   :  { %2707 = vmatmul.bf16.gmra.mxu3 %v7375_v5  ;;  %v6949_v5 = vld [vmem:[#allocation8 + $0x3ac] sm:$0xf0]  ;;  %v2753_v4 = vmax.f32 %v2415_v30, 0.0 }
 0x2d3   :  { %v6418_v40 = vor.u32 %v6949_v5, %v6417_v28  ;;  %3619 = vmatpush.bf16.msra.mxu0 %v6034_v22  ;;  %v6401_v22 = vld [vmem:[#allocation8 + $0x380] sm:$0xf] }
 0x2d4   :  { %v2463_v57 = vpop.f32.mrf.mxu2 }
 0x2d5   :  { %v2464_v60 = vadd.f32 %v2463_v57, %v7742_v61  ;;  %v2512_v36 = vpop.f32.mrf.mxu3  ;;  %v2367_v3 = vpop.f32.mrf.mxu0  ;;  %3766 = vmatpush.bf16.msra.mxu3 %v6418_v40 }
 0x2d6   :  { %v2368_v21 = vadd.f32 %v2367_v3, %v7676_v16  ;;  %v2416_v0 = vpop.f32.mrf.mxu1 }
 0x2d7   :  { %v7761_v38 = vadd.f32 %v2512_v36, %v2464_v60  ;;  %v6273_v60 = vld [vmem:[#allocation8 + $0x280] sm:$0xf]  ;;  %v6913_v36 = vld [vmem:[#allocation8 + $0x28c] sm:$0xf0] }
 0x2d8   :  { %v2417_v1 = vadd.f32 %v2416_v0, %v2368_v21  ;;  %v6274_v3 = vor.u32 %v6913_v36, %v6273_v60  ;;  %v6257_v36 = vld [vmem:[#allocation8 + $0x260] sm:$0xf] }
 0x2da   :  { %v2757_v18 = vmax.f32 %v2417_v1, 0.0  ;;  %3718 = vmatpush.bf16.msra.mxu2 %v6274_v3  ;;  %v6909_v3 = vld [vmem:[#allocation8 + $0x26c] sm:$0xf0] }
 0x2dc   :  { %v7763_v9 = vpack.c.bf16 %v2757_v18, %v2753_v4  ;;  %v2465_v29 = vpop.f32.mrf.mxu2 }
 0x2dd   :  { %v2466_v16 = vadd.f32 %v2465_v29, %v7742_v61  ;;  %v2514_v55 = vpop.f32.mrf.mxu3  ;;  %v2370_v45 = vpop.f32.mrf.mxu0 }
 0x2de   :  { %v2371_v20 = vadd.f32 %v2370_v45, %v7683_v7  ;;  %v2419_v62 = vpop.f32.mrf.mxu1 }
 0x2df   :  { %v7767_v57 = vadd.f32 %v2514_v55, %v2466_v16  ;;  %v6881_v16 = vld [vmem:[#allocation8 + $0x18c] sm:$0xf0] }
 0x2e0   :  { %v2420_v30 = vadd.f32 %v2419_v62, %v2371_v20  ;;  %2565 = vmatmul.bf16.gmra.mxu0 %v7288_v51  ;;  %2614 = vmatmul.bf16.gmra.mxu1 %v7290_v52  ;;  %v6017_v51 = vld [vmem:[#allocation8 + $0x80] sm:$0xf]  ;;  %v6849_v52 = vld [vmem:[#allocation8 + $0x8c] sm:$0xf0]  ;;  %v6146_v54 = vor.u32 %v6881_v16, %v6145_v35 }
 0x2e1   :  { %2663 = vmatmul.bf16.gmra.mxu2 %v7387_v19  ;;  %v6018_v5 = vor.u32 %v6849_v52, %v6017_v51  ;;  %v6385_v52 = vld [vmem:[#allocation8 + $0x360] sm:$0xf] }
 0x2e2   :  { %2712 = vmatmul.bf16.gmra.mxu3 %v7389_v31  ;;  %v6945_v31 = vld [vmem:[#allocation8 + $0x38c] sm:$0xf0]  ;;  %v2761_v4 = vmax.f32 %v2420_v30, 0.0  ;;  %3669 = vmatpush.bf16.msra.mxu1 %v6146_v54 }
 0x2e3   :  { %v6402_v40 = vor.u32 %v6945_v31, %v6401_v22  ;;  %3620 = vmatpush.bf16.msra.mxu0 %v6018_v5 }
 0x2e4   :  { %v2468_v21 = vpop.f32.mrf.mxu2 }
 0x2e5   :  { %v2469_v0 = vadd.f32 %v2468_v21, %v7742_v61  ;;  %v2517_v7 = vpop.f32.mrf.mxu3  ;;  %v2372_v26 = vpop.f32.mrf.mxu0  ;;  %3767 = vmatpush.bf16.msra.mxu3 %v6402_v40  ;;  %v6258_v21 = vor.u32 %v6909_v3, %v6257_v36 }
 0x2e6   :  { %v2373_v27 = vadd.f32 %v2372_v26, %v7686_v41  ;;  %v2421_v28 = vpop.f32.mrf.mxu1 }
 0x2e7   :  { %v7775_v1 = vadd.f32 %v2517_v7, %v2469_v0  ;;  %3719 = vmatpush.bf16.msra.mxu2 %v6258_v21 }
 0x2e8   :  { %v2422_v19 = vadd.f32 %v2421_v28, %v2373_v27 }
 0x2ea   :  { %v2765_v18 = vmax.f32 %v2422_v19, 0.0 }
 0x2ec   :  { %v7777_v29 = vpack.c.bf16 %v2765_v18, %v2761_v4  ;;  %v2470_v63 = vpop.f32.mrf.mxu2  ;;  %v6129_v18 = vld [vmem:[#allocation8 + $0x160] sm:$0xf] }
 0x2ed   :  { %v2471_v41 = vadd.f32 %v2470_v63, %v7742_v61  ;;  %v2519_v55 = vpop.f32.mrf.mxu3  ;;  %v2375_v45 = vpop.f32.mrf.mxu0  ;;  %v6877_v63 = vld [vmem:[#allocation8 + $0x16c] sm:$0xf0] }
 0x2ee   :  { %v2376_v20 = vadd.f32 %v2375_v45, %v7693_v59  ;;  %v2424_v62 = vpop.f32.mrf.mxu1 }
 0x2ef   :  { %v7781_v60 = vadd.f32 %v2519_v55, %v2471_v41  ;;  %v6130_v41 = vor.u32 %v6877_v63, %v6129_v18 }
 0x2f0   :  { %v2425_v30 = vadd.f32 %v2424_v62, %v2376_v20  ;;  %2570 = vmatmul.bf16.gmra.mxu0 %v7300_v14  ;;  %2619 = vmatmul.bf16.gmra.mxu1 %v7302_v15  ;;  %v6001_v14 = vld [vmem:[#allocation8 + $0x60] sm:$0xf]  ;;  %v6845_v15 = vld [vmem:[#allocation8 + $0x6c] sm:$0xf0] }
 0x2f1   :  { %2668 = vmatmul.bf16.gmra.mxu2 %v7401_v58  ;;  %v6002_v22 = vor.u32 %v6845_v15, %v6001_v14  ;;  %3670 = vmatpush.bf16.msra.mxu1 %v6130_v41  ;;  %v6241_v62 = vld [vmem:[#allocation8 + $0x240] sm:$0xf] }
 0x2f2   :  { %2717 = vmatmul.bf16.gmra.mxu3 %v7403_v2  ;;  %v6941_v2 = vld [vmem:[#allocation8 + $0x36c] sm:$0xf0]  ;;  %v2769_v5 = vmax.f32 %v2425_v30, 0.0 }
 0x2f3   :  { %v6386_v19 = vor.u32 %v6941_v2, %v6385_v52  ;;  %3621 = vmatpush.bf16.msra.mxu0 %v6002_v22  ;;  %v6905_v30 = vld [vmem:[#allocation8 + $0x24c] sm:$0xf0]  ;;  %v6113_v2 = vld [vmem:[#allocation8 + $0x140] sm:$0xf] }
 0x2f4   :  { %v2473_v0 = vpop.f32.mrf.mxu2  ;;  %v6242_v36 = vor.u32 %v6905_v30, %v6241_v62 }
 0x2f5   :  { %v2474_v7 = vadd.f32 %v2473_v0, %v7742_v61  ;;  %v2522_v59 = vpop.f32.mrf.mxu3  ;;  %v2377_v26 = vpop.f32.mrf.mxu0  ;;  %3768 = vmatpush.bf16.msra.mxu3 %v6386_v19 }
 0x2f6   :  { %v2378_v27 = vadd.f32 %v2377_v26, %v7696_v32  ;;  %v2426_v28 = vpop.f32.mrf.mxu1  ;;  %3720 = vmatpush.bf16.msra.mxu2 %v6242_v36  ;;  %v6353_v36 = vld [vmem:[#allocation8 + $0x320] sm:$0xf] }
 0x2f7   :  { %v7789_v51 = vadd.f32 %v2522_v59, %v2474_v7 }
 0x2f8   :  { %v2427_v58 = vadd.f32 %v2426_v28, %v2378_v27  ;;  %v6369_v27 = vld [vmem:[#allocation8 + $0x340] sm:$0xf] }
 0x2fa   :  { %v2773_v31 = vmax.f32 %v2427_v58, 0.0 }
 0x2fc   :  { %v7791_v40 = vpack.c.bf16 %v2773_v31, %v2769_v5  ;;  %v2475_v4 = vpop.f32.mrf.mxu2 }
 0x2fd   :  { %v2476_v32 = vadd.f32 %v2475_v4, %v7742_v61  ;;  %v2524_v35 = vpop.f32.mrf.mxu3  ;;  %v2380_v16 = vpop.f32.mrf.mxu0 }
 0x2fe   :  { %v2381_v55 = vadd.f32 %v2380_v16, %v7703_v56  ;;  %v2429_v45 = vpop.f32.mrf.mxu1 }
 0x2ff   :  { %v7795_v54 = vadd.f32 %v2524_v35, %v2476_v32  ;;  %v6225_v32 = vld [vmem:[#allocation8 + $0x220] sm:$0xf]  ;;  %v6901_v35 = vld [vmem:[#allocation8 + $0x22c] sm:$0xf0] }
 0x300   :  { %v2430_v20 = vadd.f32 %v2429_v45, %v2381_v55  ;;  %2575 = vmatmul.bf16.gmra.mxu0 %v7312_v42  ;;  %2624 = vmatmul.bf16.gmra.mxu1 %v7314_v43  ;;  %v5985_v42 = vld [vmem:[#allocation8 + $0x40] sm:$0xf]  ;;  %v6841_v43 = vld [vmem:[#allocation8 + $0x4c] sm:$0xf0]  ;;  %v6226_v16 = vor.u32 %v6901_v35, %v6225_v32 }
 0x301   :  { %2673 = vmatmul.bf16.gmra.mxu2 %v7415_v49  ;;  %v5986_v28 = vor.u32 %v6841_v43, %v5985_v42 }
 0x302   :  { %2722 = vmatmul.bf16.gmra.mxu3 %v7417_v33  ;;  %v6937_v33 = vld [vmem:[#allocation8 + $0x34c] sm:$0xf0]  ;;  %v2777_v15 = vmax.f32 %v2430_v20, 0.0  ;;  %3721 = vmatpush.bf16.msra.mxu2 %v6226_v16 }
 0x303   :  { %v6370_v14 = vor.u32 %v6937_v33, %v6369_v27  ;;  %3622 = vmatpush.bf16.msra.mxu0 %v5986_v28  ;;  %v5953_v27 = vld [vmem:[#allocation8] sm:$0xf] }
 0x304   :  { %v2478_v3 = vpop.f32.mrf.mxu2  ;;  %v6081_v28 = vld [vmem:[#allocation8 + $0x100] sm:$0xf] }
 0x305   :  { %v2479_v21 = vadd.f32 %v2478_v3, %v7742_v61  ;;  %v2527_v56 = vpop.f32.mrf.mxu3  ;;  %v2382_v0 = vpop.f32.mrf.mxu0  ;;  %3769 = vmatpush.bf16.msra.mxu3 %v6370_v14 }
 0x306   :  { %v2383_v7 = vadd.f32 %v2382_v0, %v7706_v50  ;;  %v2431_v59 = vpop.f32.mrf.mxu1  ;;  %v6873_v50 = vld [vmem:[#allocation8 + $0x14c] sm:$0xf0] }
 0x307   :  { %v7803_v26 = vadd.f32 %v2527_v56, %v2479_v21  ;;  %v6114_v31 = vor.u32 %v6873_v50, %v6113_v2  ;;  %v6097_v21 = vld [vmem:[#allocation8 + $0x120] sm:$0xf]  ;;  %v6869_v56 = vld [vmem:[#allocation8 + $0x12c] sm:$0xf0] }
 0x308   :  { %v2432_v49 = vadd.f32 %v2431_v59, %v2383_v7  ;;  %v6098_v7 = vor.u32 %v6869_v56, %v6097_v21  ;;  %v6209_v2 = vld [vmem:[#allocation8 + $0x200] sm:$0xf]  ;;  %v6897_v50 = vld [vmem:[#allocation8 + $0x20c] sm:$0xf0]  ;;  %v8345_v56 = vld [vmem:[#allocation43_spill] sm:$0xff] }
 0x309   :  { %3671 = vmatpush.bf16.msra.mxu1 %v6114_v31  ;;  %v8344_v21 = vld [vmem:[#allocation42_spill] sm:$0xff] }
 0x30a   :  { %v2781_v52 = vmax.f32 %v2432_v49, 0.0  ;;  %v6833_v49 = vld [vmem:[#allocation8 + $0xc] sm:$0xf0] }
 0x30c   :  { %v7805_v58 = vpack.c.bf16 %v2781_v52, %v2777_v15  ;;  %v7807_v22 = vpop.f32.mrf.mxu2  ;;  %v5954_v15 = vor.u32 %v6833_v49, %v5953_v27  ;;  %v6865_v52 = vld [vmem:[#allocation8 + $0x10c] sm:$0xf0] }
 0x30d   :  { %v7809_v19 = vpop.f32.mrf.mxu3  ;;  %v2385_v5 = vpop.f32.mrf.mxu0  ;;  %3672 = vmatpush.bf16.msra.mxu1 %v6098_v7  ;;  %v6323_v7 = vld [vmem:[#allocation8 + $0x2f0] sm:$0xf0] }
 0x30e   :  { %v2386_v4 = vadd.f32 %v2385_v5, %v7713_v37  ;;  %v2434_v18 = vpop.f32.mrf.mxu1 }
 0x310   :  { %v2435_v63 = vadd.f32 %v2434_v18, %v2386_v4  ;;  %2580 = vmatmul.bf16.gmra.mxu0 %v7324_v10  ;;  %2629 = vmatmul.bf16.gmra.mxu1 %v7326_v11  ;;  %v5969_v10 = vld [vmem:[#allocation8 + $0x20] sm:$0xf]  ;;  %v6837_v11 = vld [vmem:[#allocation8 + $0x2c] sm:$0xf0]  ;;  %v6082_v4 = vor.u32 %v6865_v52, %v6081_v28  ;;  %v6210_v18 = vor.u32 %v6897_v50, %v6209_v2  ;;  %v6859_v52 = vld [vmem:[#allocation8 + $0xe4] sm:$0xf] }
 0x311   :  { %2678 = vmatmul.bf16.gmra.mxu2 %v8336_v23  ;;  %v5970_v3 = vor.u32 %v6837_v11, %v5969_v10  ;;  %v6067_v2 = vld [vmem:[#allocation8 + $0xf0] sm:$0xf0]  ;;  %v6955_v50 = vld [vmem:[#allocation8 + $0x3e4] sm:$0xf] }
 0x312   :  { %2727 = vmatmul.bf16.gmra.mxu3 %v8337_v8  ;;  %v6933_v8 = vld [vmem:[#allocation8 + $0x32c] sm:$0xf0]  ;;  %v2785_v59 = vmax.f32 %v2435_v63, 0.0  ;;  %3673 = vmatpush.bf16.msra.mxu1 %v6082_v4  ;;  %v6070_v4 = vor.u32 %v6859_v52, %v6067_v2 }
 0x313   :  { %v6354_v0 = vor.u32 %v6933_v8, %v6353_v36  ;;  %3623 = vmatpush.bf16.msra.mxu0 %v5970_v3  ;;  %3722 = vmatpush.bf16.msra.mxu2 %v6210_v18  ;;  %v8343_v8 = vld [vmem:[#allocation37_spill] sm:$0xff] }
 0x314   :  { %v2483_v41 = vpop.f32.mrf.mxu2  ;;  %v6451_v18 = vld [vmem:[#allocation8 + $0x3f0] sm:$0xf0] }
 0x315   :  { %v2484_v55 = vadd.f32 %v2483_v41, %v7742_v61  ;;  %v2532_v45 = vpop.f32.mrf.mxu3  ;;  %v2387_v20 = vpop.f32.mrf.mxu0  ;;  %3770 = vmatpush.bf16.msra.mxu3 %v6354_v0  ;;  %v6923_v0 = vld [vmem:[#allocation8 + $0x2e4] sm:$0xf] }
 0x316   :  { %v2388_v37 = vadd.f32 %v2387_v20, %v7716_v25  ;;  %v2436_v62 = vpop.f32.mrf.mxu1 }
 0x317   :  { %v7818_v30 = vadd.f32 %v2532_v45, %v2484_v55  ;;  %3624 = vmatpush.bf16.msra.mxu0 %v5954_v15 }
 0x318   :  { %v2437_v23 = vadd.f32 %v2436_v62, %v2388_v37  ;;  %v6929_v37 = vld [vmem:[#allocation8 + $0x30c] sm:$0xf0] }
 0x31a   :  { %v2789_v42 = vmax.f32 %v2437_v23, 0.0 }
 0x31b   :  { %3813 = vmatpush.bf16.msrb.mxu0 %v6070_v4 }
 0x31c   :  { %v7820_v43 = vpack.c.bf16 %v2789_v42, %v2785_v59  ;;  %v7822_v25 = vpop.f32.mrf.mxu2  ;;  %v6326_v42 = vor.u32 %v6923_v0, %v6323_v7  ;;  %v6855_v7 = vld [vmem:[#allocation8 + $0xc4] sm:$0xf] }
 0x31d   :  { %v7824_v33 = vpop.f32.mrf.mxu3  ;;  %v2390_v14 = vpop.f32.mrf.mxu0 }
 0x31e   :  { %v2391_v5 = vadd.f32 %v2390_v14, %v7723_v48  ;;  %v2439_v31 = vpop.f32.mrf.mxu1  ;;  %3911 = vmatpush.bf16.msrb.mxu2 %v6326_v42 }
 0x320   :  { %v2440_v63 = vadd.f32 %v2439_v31, %v2391_v5  ;;  %2585 = vmatmul.bf16.gmra.mxu0 %v7336_v46  ;;  %2634 = vmatmul.bf16.gmra.mxu1 %v7338_v47  ;;  %v6337_v46 = vld [vmem:[#allocation8 + $0x300] sm:$0xf] }
 0x321   :  { %2683 = vmatmul.bf16.gmra.mxu2 %v8338_v13  ;;  %v6338_v10 = vor.u32 %v6929_v37, %v6337_v46  ;;  %v8346_v46 = vld [vmem:[#allocation44_spill] sm:$0xff]  ;;  %v8347_v37 = vld [vmem:[#allocation19_spill] sm:$0xff] }
 0x322   :  { %2732 = vmatmul.bf16.gmra.mxu3 %v8339_v24  ;;  %v2793_v62 = vmax.f32 %v2440_v63, 0.0  ;;  %v6891_v63 = vld [vmem:[#allocation8 + $0x1e4] sm:$0xf] }
 0x323   :  { %3771 = vmatpush.bf16.msra.mxu3 %v6338_v10  ;;  %v6307_v10 = vld [vmem:[#allocation8 + $0x2d0] sm:$0xf0] }
 0x324   :  { %v2488_v32 = vpop.f32.mrf.mxu2 }
 0x325   :  { %v2489_v35 = vadd.f32 %v2488_v32, %v7742_v61  ;;  %v2537_v16 = vpop.f32.mrf.mxu3  ;;  %v2392_v48 = vpop.f32.mrf.mxu0  ;;  %v6454_v32 = vor.u32 %v6955_v50, %v6451_v18  ;;  %v8348_v18 = vld [vmem:[#allocation45_spill] sm:$0xff] }
 0x326   :  { %v2393_v41 = vadd.f32 %v2392_v48, %v7726_v12  ;;  %v2441_v55 = vpop.f32.mrf.mxu1 }
 0x327   :  { %v7833_v45 = vadd.f32 %v2537_v16, %v2489_v35  ;;  %v6195_v35 = vld [vmem:[#allocation8 + $0x1f0] sm:$0xf0]  ;;  %3960 = vmatpush.bf16.msrb.mxu3 %v6454_v32 }
 0x328   :  { %v2442_v20 = vadd.f32 %v2441_v55, %v2393_v41 }
 0x32a   :  { %v2797_v47 = vmax.f32 %v2442_v20, 0.0 }
 0x32c   :  { %v7835_v13 = vpack.c.bf16 %v2797_v47, %v2793_v62  ;;  %v7837_v24 = vpop.f32.mrf.mxu2  ;;  %v6919_v47 = vld [vmem:[#allocation8 + $0x2c4] sm:$0xf] }
 0x32d   :  { %v7839_v11 = vpop.f32.mrf.mxu3  ;;  %v2395_v36 = vpop.f32.mrf.mxu0 }
 0x32e   :  { %v2396_v23 = vadd.f32 %v2395_v36, %v7733_v53  ;;  %v2444_v12 = vpop.f32.mrf.mxu1 }
 0x330   :  { %v2445_v3 = vadd.f32 %v2444_v12, %v2396_v23  ;;  %2590 = vmatmul.bf16.gmra.mxu0 %v8308_v39  ;;  %2639 = vmatmul.bf16.gmra.mxu1 %v8343_v8  ;;  %v6310_v23 = vor.u32 %v6919_v47, %v6307_v10 }
 0x331   :  { %2688 = vmatmul.bf16.gmra.mxu2 %v8344_v21 }
 0x332   :  { %2737 = vmatmul.bf16.gmra.mxu3 %v8345_v56  ;;  %v2801_v5 = vmax.f32 %v2445_v3, 0.0  ;;  %3912 = vmatpush.bf16.msrb.mxu2 %v6310_v23 }
 0x334   :  { %v2493_v59 = vpop.f32.mrf.mxu2 }
 0x335   :  { %v2494_v27 = vadd.f32 %v2493_v59, %v7742_v61  ;;  %v2542_v49 = vpop.f32.mrf.mxu3  ;;  %v2397_v28 = vpop.f32.mrf.mxu0  ;;  %v6051_v59 = vld [vmem:[#allocation8 + $0xd0] sm:$0xf0] }
 0x336   :  { %v2398_v53 = vadd.f32 %v2397_v28, %v7736_v17  ;;  %v2446_v14 = vpop.f32.mrf.mxu1  ;;  %v6198_v17 = vor.u32 %v6891_v63, %v6195_v35  ;;  %v6054_v42 = vor.u32 %v6855_v7, %v6051_v59  ;;  %v6887_v28 = vld [vmem:[#allocation8 + $0x1c4] sm:$0xf]  ;;  %v8349_v35 = vld [vmem:[#allocation20_spill] sm:$0xff] }
 0x337   :  { %v7848_v15 = vadd.f32 %v2542_v49, %v2494_v27  ;;  %v6951_v27 = vld [vmem:[#allocation8 + $0x3c4] sm:$0xf]  ;;  %v6435_v49 = vld [vmem:[#allocation8 + $0x3d0] sm:$0xf0] }
 0x338   :  { %v2447_v39 = vadd.f32 %v2446_v14, %v2398_v53  ;;  %3862 = vmatpush.bf16.msrb.mxu1 %v6198_v17  ;;  %v6179_v14 = vld [vmem:[#allocation8 + $0x1d0] sm:$0xf0]  ;;  %3814 = vmatpush.bf16.msrb.mxu0 %v6054_v42  ;;  %v6947_v59 = vld [vmem:[#allocation8 + $0x3a4] sm:$0xf] }
 0x339   :  { %v6182_v52 = vor.u32 %v6887_v28, %v6179_v14  ;;  %v6419_v42 = vld [vmem:[#allocation8 + $0x3b0] sm:$0xf0] }
 0x33a   :  { %v2805_v31 = vmax.f32 %v2447_v39, 0.0  ;;  %v6163_v28 = vld [vmem:[#allocation8 + $0x1b0] sm:$0xf0] }
 0x33c   :  { %v7850_v16 = vpack.c.bf16 %v2805_v31, %v2801_v5  ;;  %v7852_v48 = vpop.f32.mrf.mxu2  ;;  %3863 = vmatpush.bf16.msrb.mxu1 %v6182_v52 }
 0x33d   :  { %v7854_v41 = vpop.f32.mrf.mxu3  ;;  %v2556_v55 = vpop.f32.mrf.mxu0 }
 0x33e   :  { %v2605_v20 = vpop.f32.mrf.mxu1  ;;  %v2557_v62 = vadd.f32 %v2556_v55, %v7747_v34  ;;  %v6438_v34 = vor.u32 %v6951_v27, %v6435_v49  ;;  %v6422_v49 = vor.u32 %v6947_v59, %v6419_v42  ;;  %v6403_v59 = vld [vmem:[#allocation8 + $0x390] sm:$0xf0] }
 0x340   :  { %3625 = vmatmul.bf16.vlgmr.msra.gmra.mxu0 %v8346_v46  ;;  %3674 = vmatmul.bf16.vlgmr.msra.gmra.mxu1 %v8347_v37  ;;  %v2606_v21 = vadd.f32 %v2605_v20, %v2557_v62  ;;  %v6915_v20 = vld [vmem:[#allocation8 + $0x2a4] sm:$0xf]  ;;  %v6291_v62 = vld [vmem:[#allocation8 + $0x2b0] sm:$0xf0] }
 0x341   :  { %3723 = vmatmul.bf16.vlgmr.msra.gmra.mxu2 %v7749_v6  ;;  %3961 = vmatpush.bf16.msrb.mxu3 %v6438_v34  ;;  %v6294_v10 = vor.u32 %v6915_v20, %v6291_v62  ;;  %v6275_v20 = vld [vmem:[#allocation8 + $0x290] sm:$0xf0] }
 0x343   :  { %3913 = vmatpush.bf16.msrb.mxu2 %v6294_v10 }
 0x344   :  { %v2654_v36 = vpop.f32.mrf.mxu2 }
 0x345   :  { %v2703_v12 = vpop.f32.mrf.mxu3  ;;  %v2558_v3 = vpop.f32.mrf.mxu0  ;;  %v2655_v0 = vadd.f32 %v2654_v36, %v2606_v21  ;;  %3962 = vmatpush.bf16.msrb.mxu3 %v6422_v49 }
 0x346   :  { %v2607_v8 = vpop.f32.mrf.mxu1  ;;  %v2559_v56 = vadd.f32 %v2558_v3, %v7753_v44 }
 0x347   :  { %v2704_v2 = vadd.f32 %v2703_v12, %v2655_v0  ;;  %v6035_v0 = vld [vmem:[#allocation8 + $0xb0] sm:$0xf0] }
 0x348   :  { %v2608_v53 = vadd.f32 %v2607_v8, %v2559_v56  ;;  %v6851_v56 = vld [vmem:[#allocation8 + $0xa4] sm:$0xf] }
 0x349   :  { %v2746_v63 = vmax.f32 %v2704_v2, 0.0  ;;  %v6038_v7 = vor.u32 %v6851_v56, %v6035_v0  ;;  %v6019_v56 = vld [vmem:[#allocation8 + $0x90] sm:$0xf0] }
 0x34b   :  { %3815 = vmatpush.bf16.msrb.mxu0 %v6038_v7  ;;  %v6943_v7 = vld [vmem:[#allocation8 + $0x384] sm:$0xf] }
 0x34c   :  { %v2656_v39 = vpop.f32.mrf.mxu2 }
 0x34d   :  { %v2657_v50 = vadd.f32 %v2656_v39, %v2608_v53  ;;  %v2705_v5 = vpop.f32.mrf.mxu3  ;;  %v2561_v31 = vpop.f32.mrf.mxu0 }
 0x34e   :  { %v2610_v4 = vpop.f32.mrf.mxu1  ;;  %v2562_v55 = vadd.f32 %v2561_v31, %v7761_v38  ;;  %v6883_v38 = vld [vmem:[#allocation8 + $0x1a4] sm:$0xf] }
 0x34f   :  { %v2706_v44 = vadd.f32 %v2705_v5, %v2657_v50  ;;  %v6166_v34 = vor.u32 %v6883_v38, %v6163_v28  ;;  %v8350_v5 = vld [vmem:[#allocation46_spill] sm:$0xff]  ;;  %v6406_v38 = vor.u32 %v6943_v7, %v6403_v59  ;;  %v6939_v7 = vld [vmem:[#allocation8 + $0x364] sm:$0xf]  ;;  %v6387_v59 = vld [vmem:[#allocation8 + $0x370] sm:$0xf0] }
 0x350   :  { %3630 = vmatmul.bf16.gmra.mxu0 %v8348_v18  ;;  %3679 = vmatmul.bf16.gmra.mxu1 %v8349_v35  ;;  %v2611_v3 = vadd.f32 %v2610_v4, %v2562_v55  ;;  %v6911_v55 = vld [vmem:[#allocation8 + $0x284] sm:$0xf] }
 0x351   :  { %v2750_v32 = vmax.f32 %v2706_v44, 0.0  ;;  %3728 = vmatmul.bf16.gmra.mxu2 %v7763_v9  ;;  %3864 = vmatpush.bf16.msrb.mxu1 %v6166_v34  ;;  %v8351_v44 = vld [vmem:[#allocation22_spill] sm:$0xff] }
 0x352   :  { %3963 = vmatpush.bf16.msrb.mxu3 %v6406_v38  ;;  %v6131_v38 = vld [vmem:[#allocation8 + $0x170] sm:$0xf0] }
 0x353   :  { %v7864_v17 = vpack.c.bf16 %v2750_v32, %v2746_v63 }
 0x354   :  { %v2659_v47 = vpop.f32.mrf.mxu2 }
 0x355   :  { %v2708_v36 = vpop.f32.mrf.mxu3  ;;  %3772 = vmatmul.bf16.vlgmr.msra.gmra.mxu3 %v7864_v17  ;;  %v2563_v23 = vpop.f32.mrf.mxu0  ;;  %v2660_v21 = vadd.f32 %v2659_v47, %v2611_v3  ;;  %v6278_v47 = vor.u32 %v6911_v55, %v6275_v20  ;;  %v6907_v55 = vld [vmem:[#allocation8 + $0x264] sm:$0xf]  ;;  %v6259_v20 = vld [vmem:[#allocation8 + $0x270] sm:$0xf0] }
 0x356   :  { %v2612_v12 = vpop.f32.mrf.mxu1  ;;  %v2564_v8 = vadd.f32 %v2563_v23, %v7767_v57 }
 0x357   :  { %v2709_v14 = vadd.f32 %v2708_v36, %v2660_v21  ;;  %3914 = vmatpush.bf16.msrb.mxu2 %v6278_v47  ;;  %v6847_v21 = vld [vmem:[#allocation8 + $0x84] sm:$0xf]  ;;  %v6262_v47 = vor.u32 %v6907_v55, %v6259_v20 }
 0x358   :  { %v2613_v27 = vadd.f32 %v2612_v12, %v2564_v8  ;;  %v6022_v0 = vor.u32 %v6847_v21, %v6019_v56  ;;  %v6843_v21 = vld [vmem:[#allocation8 + $0x64] sm:$0xf]  ;;  %v6003_v56 = vld [vmem:[#allocation8 + $0x70] sm:$0xf0] }
 0x359   :  { %v2754_v31 = vmax.f32 %v2709_v14, 0.0 }
 0x35a   :  { %3816 = vmatpush.bf16.msrb.mxu0 %v6022_v0  ;;  %v6006_v0 = vor.u32 %v6843_v21, %v6003_v56 }
 0x35b   :  { %3915 = vmatpush.bf16.msrb.mxu2 %v6262_v47  ;;  %v6243_v47 = vld [vmem:[#allocation8 + $0x250] sm:$0xf0] }
 0x35c   :  { %v2661_v53 = vpop.f32.mrf.mxu2 }
 0x35d   :  { %v2662_v39 = vadd.f32 %v2661_v53, %v2613_v27  ;;  %v2710_v52 = vpop.f32.mrf.mxu3  ;;  %v2566_v2 = vpop.f32.mrf.mxu0  ;;  %v6147_v27 = vld [vmem:[#allocation8 + $0x190] sm:$0xf0] }
 0x35e   :  { %v2615_v50 = vpop.f32.mrf.mxu1  ;;  %v2567_v32 = vadd.f32 %v2566_v2, %v7775_v1  ;;  %v6879_v1 = vld [vmem:[#allocation8 + $0x184] sm:$0xf]  ;;  %3817 = vmatpush.bf16.msrb.mxu0 %v6006_v0 }
 0x35f   :  { %v2711_v57 = vadd.f32 %v2710_v52, %v2662_v39  ;;  %v6150_v28 = vor.u32 %v6879_v1, %v6147_v27  ;;  %v8352_v2 = vld [vmem:[#allocation47_spill] sm:$0xff] }
 0x360   :  { %3635 = vmatmul.bf16.gmra.mxu0 %v8350_v5  ;;  %3684 = vmatmul.bf16.gmra.mxu1 %v8351_v44  ;;  %v2616_v12 = vadd.f32 %v2615_v50, %v2567_v32  ;;  %v6839_v0 = vld [vmem:[#allocation8 + $0x44] sm:$0xf] }
 0x361   :  { %v2758_v4 = vmax.f32 %v2711_v57, 0.0  ;;  %3733 = vmatmul.bf16.gmra.mxu2 %v7777_v29  ;;  %3865 = vmatpush.bf16.msrb.mxu1 %v6150_v28 }
 0x363   :  { %v7872_v63 = vpack.c.bf16 %v2758_v4, %v2754_v31  ;;  %v8353_v31 = vld [vmem:[#allocation23_spill] sm:$0xff] }
 0x364   :  { %v2664_v62 = vpop.f32.mrf.mxu2 }
 0x365   :  { %v2713_v10 = vpop.f32.mrf.mxu3  ;;  %3777 = vmatmul.bf16.gmra.mxu3 %v7872_v63  ;;  %v2568_v36 = vpop.f32.mrf.mxu0  ;;  %v2665_v8 = vadd.f32 %v2664_v62, %v2616_v12 }
 0x366   :  { %v2617_v23 = vpop.f32.mrf.mxu1  ;;  %v2569_v3 = vadd.f32 %v2568_v36, %v7781_v60 }
 0x367   :  { %v2714_v53 = vadd.f32 %v2713_v10, %v2665_v8 }
 0x368   :  { %v2618_v42 = vadd.f32 %v2617_v23, %v2569_v3 }
 0x369   :  { %v2762_v50 = vmax.f32 %v2714_v53, 0.0 }
 0x36c   :  { %v2666_v49 = vpop.f32.mrf.mxu2 }
 0x36d   :  { %v2667_v34 = vadd.f32 %v2666_v49, %v2618_v42  ;;  %v2715_v14 = vpop.f32.mrf.mxu3  ;;  %v2571_v39 = vpop.f32.mrf.mxu0  ;;  %v6390_v42 = vor.u32 %v6939_v7, %v6387_v59  ;;  %v5987_v7 = vld [vmem:[#allocation8 + $0x50] sm:$0xf0] }
 0x36e   :  { %v2620_v52 = vpop.f32.mrf.mxu1  ;;  %v2572_v32 = vadd.f32 %v2571_v39, %v7789_v51  ;;  %v6875_v51 = vld [vmem:[#allocation8 + $0x164] sm:$0xf]  ;;  %v5990_v59 = vor.u32 %v6839_v0, %v5987_v7 }
 0x36f   :  { %v2716_v60 = vadd.f32 %v2715_v14, %v2667_v34  ;;  %v6134_v49 = vor.u32 %v6875_v51, %v6131_v38  ;;  %3964 = vmatpush.bf16.msrb.mxu3 %v6390_v42  ;;  %v6935_v51 = vld [vmem:[#allocation8 + $0x344] sm:$0xf] }
 0x370   :  { %3640 = vmatmul.bf16.gmra.mxu0 %v8352_v2  ;;  %3689 = vmatmul.bf16.gmra.mxu1 %v8353_v31  ;;  %v2621_v12 = vadd.f32 %v2620_v52, %v2572_v32  ;;  %v8354_v52 = vld [vmem:[#allocation48_spill] sm:$0xff]  ;;  %v6835_v7 = vld [vmem:[#allocation8 + $0x24] sm:$0xf] }
 0x371   :  { %v2766_v57 = vmax.f32 %v2716_v60, 0.0  ;;  %3738 = vmatmul.bf16.gmra.mxu2 %v7791_v40  ;;  %3866 = vmatpush.bf16.msrb.mxu1 %v6134_v49  ;;  %v2481_v60 = vadd.f32 %v7807_v22, %v7742_v61  ;;  %v8355_v32 = vld [vmem:[#allocation24_spill] sm:$0xff] }
 0x372   :  { %3818 = vmatpush.bf16.msrb.mxu0 %v5990_v59  ;;  %v5971_v59 = vld [vmem:[#allocation8 + $0x30] sm:$0xf0] }
 0x373   :  { %v7880_v4 = vpack.c.bf16 %v2766_v57, %v2762_v50 }
 0x374   :  { %v2669_v62 = vpop.f32.mrf.mxu2 }
 0x375   :  { %v2718_v10 = vpop.f32.mrf.mxu3  ;;  %3782 = vmatmul.bf16.gmra.mxu3 %v7880_v4  ;;  %v2573_v36 = vpop.f32.mrf.mxu0  ;;  %v2670_v8 = vadd.f32 %v2669_v62, %v2621_v12  ;;  %v6903_v62 = vld [vmem:[#allocation8 + $0x244] sm:$0xf] }
 0x376   :  { %v2622_v23 = vpop.f32.mrf.mxu1  ;;  %v2574_v3 = vadd.f32 %v2573_v36, %v7795_v54  ;;  %v6246_v36 = vor.u32 %v6903_v62, %v6243_v47  ;;  %v8357_v62 = vld [vmem:[#allocation25_spill] sm:$0xff] }
 0x377   :  { %v2719_v28 = vadd.f32 %v2718_v10, %v2670_v8 }
 0x378   :  { %v2623_v1 = vadd.f32 %v2622_v23, %v2574_v3  ;;  %v2530_v23 = vadd.f32 %v7809_v19, %v2481_v60  ;;  %3916 = vmatpush.bf16.msrb.mxu2 %v6246_v36  ;;  %v8356_v60 = vld [vmem:[#allocation49_spill] sm:$0xff]  ;;  %v6899_v36 = vld [vmem:[#allocation8 + $0x224] sm:$0xf] }
 0x379   :  { %v2770_v50 = vmax.f32 %v2719_v28, 0.0 }
 0x37c   :  { %v2671_v27 = vpop.f32.mrf.mxu2 }
 0x37d   :  { %v2672_v53 = vadd.f32 %v2671_v27, %v2623_v1  ;;  %v2720_v34 = vpop.f32.mrf.mxu3  ;;  %v2576_v14 = vpop.f32.mrf.mxu0  ;;  %v6871_v1 = vld [vmem:[#allocation8 + $0x144] sm:$0xf]  ;;  %v6115_v27 = vld [vmem:[#allocation8 + $0x150] sm:$0xf0] }
 0x37e   :  { %v2625_v39 = vpop.f32.mrf.mxu1  ;;  %v2577_v20 = vadd.f32 %v2576_v14, %v7803_v26  ;;  %v6371_v26 = vld [vmem:[#allocation8 + $0x350] sm:$0xf0]  ;;  %v6118_v19 = vor.u32 %v6871_v1, %v6115_v27  ;;  %v5974_v1 = vor.u32 %v6835_v7, %v5971_v59 }
 0x37f   :  { %v2721_v54 = vadd.f32 %v2720_v34, %v2672_v53  ;;  %v6374_v38 = vor.u32 %v6935_v51, %v6371_v26  ;;  %v6867_v51 = vld [vmem:[#allocation8 + $0x124] sm:$0xf]  ;;  %v6099_v27 = vld [vmem:[#allocation8 + $0x130] sm:$0xf0] }
 0x380   :  { %3645 = vmatmul.bf16.gmra.mxu0 %v8354_v52  ;;  %3694 = vmatmul.bf16.gmra.mxu1 %v8355_v32  ;;  %v2626_v8 = vadd.f32 %v2625_v39, %v2577_v20 }
 0x381   :  { %v2774_v57 = vmax.f32 %v2721_v54, 0.0  ;;  %3743 = vmatmul.bf16.gmra.mxu2 %v7805_v58  ;;  %3965 = vmatpush.bf16.msrb.mxu3 %v6374_v38 }
 0x382   :  { %3867 = vmatpush.bf16.msrb.mxu1 %v6118_v19  ;;  %3819 = vmatpush.bf16.msrb.mxu0 %v5974_v1 }
 0x383   :  { %v7890_v55 = vpack.c.bf16 %v2774_v57, %v2770_v50  ;;  %v2486_v50 = vadd.f32 %v7822_v25, %v7742_v61 }
 0x384   :  { %v2674_v10 = vpop.f32.mrf.mxu2 }
 0x385   :  { %v2723_v12 = vpop.f32.mrf.mxu3  ;;  %3787 = vmatmul.bf16.gmra.mxu3 %v7890_v55  ;;  %v2578_v22 = vpop.f32.mrf.mxu0  ;;  %v2675_v56 = vadd.f32 %v2674_v10, %v2626_v8 }
 0x386   :  { %v2627_v3 = vpop.f32.mrf.mxu1  ;;  %v2579_v21 = vadd.f32 %v2578_v22, %v2530_v23  ;;  %v6227_v23 = vld [vmem:[#allocation8 + $0x230] sm:$0xf0] }
 0x387   :  { %v2724_v28 = vadd.f32 %v2723_v12, %v2675_v56  ;;  %v6230_v22 = vor.u32 %v6899_v36, %v6227_v23 }
 0x388   :  { %v2628_v42 = vadd.f32 %v2627_v3, %v2579_v21  ;;  %v2535_v3 = vadd.f32 %v7824_v33, %v2486_v50  ;;  %v6102_v33 = vor.u32 %v6867_v51, %v6099_v27 }
 0x389   :  { %v2778_v57 = vmax.f32 %v2724_v28, 0.0  ;;  %3917 = vmatpush.bf16.msrb.mxu2 %v6230_v22  ;;  %v6831_v28 = vld [vmem:[#allocation8 + $0x4] sm:$0xf] }
 0x38a   :  { %3868 = vmatpush.bf16.msrb.mxu1 %v6102_v33 }
 0x38c   :  { %v2676_v49 = vpop.f32.mrf.mxu2 }
 0x38d   :  { %v2677_v53 = vadd.f32 %v2676_v49, %v2628_v42  ;;  %v2725_v34 = vpop.f32.mrf.mxu3  ;;  %v2581_v14 = vpop.f32.mrf.mxu0  ;;  %v6355_v42 = vld [vmem:[#allocation8 + $0x330] sm:$0xf0] }
 0x38e   :  { %v2630_v39 = vpop.f32.mrf.mxu1  ;;  %v2582_v10 = vadd.f32 %v2581_v14, %v7818_v30  ;;  %v6931_v30 = vld [vmem:[#allocation8 + $0x324] sm:$0xf] }
 0x38f   :  { %v2726_v54 = vadd.f32 %v2725_v34, %v2677_v53  ;;  %v6358_v38 = vor.u32 %v6931_v30, %v6355_v42  ;;  %v5955_v53 = vld [vmem:[#allocation8 + $0x10] sm:$0xf0]  ;;  %v6863_v34 = vld [vmem:[#allocation8 + $0x104] sm:$0xf] }
 0x390   :  { %3650 = vmatmul.bf16.gmra.mxu0 %v8356_v60  ;;  %3699 = vmatmul.bf16.gmra.mxu1 %v8357_v62  ;;  %v2631_v56 = vadd.f32 %v2630_v39, %v2582_v10  ;;  %v6895_v10 = vld [vmem:[#allocation8 + $0x204] sm:$0xf]  ;;  %v6339_v42 = vld [vmem:[#allocation8 + $0x310] sm:$0xf0] }
 0x391   :  { %v2782_v20 = vmax.f32 %v2726_v54, 0.0  ;;  %3748 = vmatmul.bf16.gmra.mxu2 %v7820_v43  ;;  %3966 = vmatpush.bf16.msrb.mxu3 %v6358_v38 }
 0x393   :  { %v7900_v47 = vpack.c.bf16 %v2782_v20, %v2778_v57  ;;  %v5958_v57 = vor.u32 %v6831_v28, %v5955_v53  ;;  %v6083_v20 = vld [vmem:[#allocation8 + $0x110] sm:$0xf0] }
 0x394   :  { %v2679_v12 = vpop.f32.mrf.mxu2  ;;  %v6086_v23 = vor.u32 %v6863_v34, %v6083_v20 }
 0x395   :  { %v2728_v8 = vpop.f32.mrf.mxu3  ;;  %3792 = vmatmul.bf16.gmra.mxu3 %v7900_v47  ;;  %v2583_v25 = vpop.f32.mrf.mxu0  ;;  %v2680_v26 = vadd.f32 %v2679_v12, %v2631_v56  ;;  %v6211_v12 = vld [vmem:[#allocation8 + $0x210] sm:$0xf0]  ;;  %3820 = vmatpush.bf16.msrb.mxu0 %v5958_v57  ;;  %v2496_v57 = vadd.f32 %v7852_v48, %v7742_v61  ;;  %v6073_v48 = vld [vmem:[#allocation8 + $0xe8] sm:$0xf] }
 0x396   :  { %v2632_v21 = vpop.f32.mrf.mxu1  ;;  %v2584_v0 = vadd.f32 %v2583_v25, %v2535_v3  ;;  %v6214_v3 = vor.u32 %v6895_v10, %v6211_v12  ;;  %v8358_v25 = vld [vmem:[#allocation50_spill] sm:$0xff]  ;;  %3869 = vmatpush.bf16.msrb.mxu1 %v6086_v23  ;;  %v8361_v23 = vld [vmem:[#allocation27_spill] sm:$0xff]  ;;  %v6926_v12 = vld [vmem:[#allocation8 + $0x2f4] sm:$0xf0] }
 0x397   :  { %v2729_v14 = vadd.f32 %v2728_v8, %v2680_v26 }
 0x398   :  { %v2633_v49 = vadd.f32 %v2632_v21, %v2584_v0  ;;  %v2491_v21 = vadd.f32 %v7837_v24, %v7742_v61  ;;  %v8359_v0 = vld [vmem:[#allocation26_spill] sm:$0xff]  ;;  %3918 = vmatpush.bf16.msrb.mxu2 %v6214_v3  ;;  %v6927_v24 = vld [vmem:[#allocation8 + $0x304] sm:$0xf] }
 0x399   :  { %v2786_v56 = vmax.f32 %v2729_v14, 0.0  ;;  %v6342_v27 = vor.u32 %v6927_v24, %v6339_v42  ;;  %v6958_v24 = vld [vmem:[#allocation8 + $0x3f4] sm:$0xf0] }
 0x39a   :  { %v2540_v26 = vadd.f32 %v7839_v11, %v2491_v21 }
 0x39b   :  { %3967 = vmatpush.bf16.msrb.mxu3 %v6342_v27  ;;  %v7925_v27 = vld [vmem:[#allocation10] sm:$0xf] }
 0x39c   :  { %v2681_v19 = vpop.f32.mrf.mxu2 }
 0x39d   :  { %v2682_v39 = vadd.f32 %v2681_v19, %v2633_v49  ;;  %v2730_v54 = vpop.f32.mrf.mxu3  ;;  %v2586_v50 = vpop.f32.mrf.mxu0 }
 0x39e   :  { %v2635_v36 = vpop.f32.mrf.mxu1  ;;  %v2587_v59 = vadd.f32 %v2586_v50, %v7833_v45  ;;  %v8360_v50 = vld [vmem:[#allocation36_spill] sm:$0xff] }
 0x39f   :  { %v2731_v22 = vadd.f32 %v2730_v54, %v2682_v39 }
 0x3a0   :  { %3655 = vmatmul.bf16.gmra.mxu0 %v8358_v25  ;;  %3704 = vmatmul.bf16.gmra.mxu1 %v8359_v0  ;;  %v2636_v49 = vadd.f32 %v2635_v36, %v2587_v59  ;;  %v6329_v36 = vld [vmem:[#allocation8 + $0x2e8] sm:$0xf] }
 0x3a1   :  { %v2790_v8 = vmax.f32 %v2731_v22, 0.0  ;;  %3753 = vmatmul.bf16.gmra.mxu2 %v7835_v13  ;;  %v6330_v22 = vor.u32 %v6926_v12, %v6329_v36 }
 0x3a3   :  { %v7910_v7 = vpack.c.bf16 %v2790_v8, %v2786_v56  ;;  %4107 = vmatpush.bf16.msra.mxu2 %v6330_v22  ;;  %v2545_v8 = vadd.f32 %v7854_v41, %v2496_v57 }
 0x3a4   :  { %v2684_v51 = vpop.f32.mrf.mxu2 }
 0x3a5   :  { %v2733_v1 = vpop.f32.mrf.mxu3  ;;  %3797 = vmatmul.bf16.gmra.mxu3 %v7910_v7  ;;  %v2588_v30 = vpop.f32.mrf.mxu0  ;;  %v2685_v19 = vadd.f32 %v2684_v51, %v2636_v49  ;;  %v6862_v51 = vld [vmem:[#allocation8 + $0xf4] sm:$0xf0] }
 0x3a6   :  { %v2637_v38 = vpop.f32.mrf.mxu1  ;;  %v2589_v33 = vadd.f32 %v2588_v30, %v2540_v26  ;;  %v6457_v26 = vld [vmem:[#allocation8 + $0x3e8] sm:$0xf]  ;;  %v6074_v30 = vor.u32 %v6862_v51, %v6073_v48 }
 0x3a7   :  { %v2734_v34 = vadd.f32 %v2733_v1, %v2685_v19  ;;  %v6458_v49 = vor.u32 %v6958_v24, %v6457_v26  ;;  %v6057_v48 = vld [vmem:[#allocation8 + $0xc8] sm:$0xf] }
 0x3a8   :  { %v2638_v28 = vadd.f32 %v2637_v38, %v2589_v33  ;;  %4009 = vmatpush.bf16.msra.mxu0 %v6074_v30  ;;  %v6894_v33 = vld [vmem:[#allocation8 + $0x1f4] sm:$0xf0]  ;;  %v6441_v24 = vld [vmem:[#allocation8 + $0x3c8] sm:$0xf] }
 0x3a9   :  { %v2794_v20 = vmax.f32 %v2734_v34, 0.0  ;;  %4156 = vmatpush.bf16.msra.mxu3 %v6458_v49  ;;  %v6858_v30 = vld [vmem:[#allocation8 + $0xd4] sm:$0xf0] }
 0x3ac   :  { %v2686_v53 = vpop.f32.mrf.mxu2 }
 0x3ad   :  { %v2687_v14 = vadd.f32 %v2686_v53, %v2638_v28  ;;  %v2735_v45 = vpop.f32.mrf.mxu3  ;;  %v2591_v39 = vpop.f32.mrf.mxu0  ;;  %v7928_v28 = vperm.slane %v7925_v27, 0 }
 0x3ae   :  { %v2640_v54 = vpop.f32.mrf.mxu1  ;;  %v2592_v21 = vadd.f32 %v2591_v39, %v7848_v15  ;;  %v6201_v15 = vld [vmem:[#allocation8 + $0x1e8] sm:$0xf] }
 0x3af   :  { %v2736_v11 = vadd.f32 %v2735_v45, %v2687_v14  ;;  %v6202_v41 = vor.u32 %v6894_v33, %v6201_v15  ;;  %v6185_v33 = vld [vmem:[#allocation8 + $0x1c8] sm:$0xf] }
 0x3b0   :  { %3660 = vmatmul.bf16.gmra.mxu0 %v8360_v50  ;;  %3709 = vmatmul.bf16.gmra.mxu1 %v8361_v23  ;;  %v2641_v42 = vadd.f32 %v2640_v54, %v2592_v21 }
 0x3b1   :  { %v2798_v10 = vmax.f32 %v2736_v11, 0.0  ;;  %3758 = vmatmul.bf16.gmra.mxu2 %v7850_v16  ;;  %4058 = vmatpush.bf16.msra.mxu1 %v6202_v41 }
 0x3b3   :  { %v7920_v3 = vpack.c.bf16 %v2798_v10, %v2794_v20 }
 0x3b4   :  { %v2689_v56 = vpop.f32.mrf.mxu2 }
 0x3b5   :  { %v2738_v59 = vpop.f32.mrf.mxu3  ;;  %3802 = vmatmul.bf16.gmra.mxu3 %v7920_v3  ;;  %v2593_v61 = vpop.f32.mrf.mxu0  ;;  %v2690_v19 = vadd.f32 %v2689_v56, %v2641_v42  ;;  %v6954_v42 = vld [vmem:[#allocation8 + $0x3d4] sm:$0xf0] }
 0x3b6   :  { %v2642_v1 = vpop.f32.mrf.mxu1  ;;  %v2594_v38 = vadd.f32 %v2593_v61, %v2545_v8  ;;  %v6922_v61 = vld [vmem:[#allocation8 + $0x2d4] sm:$0xf0]  ;;  %v6442_v49 = vor.u32 %v6954_v42, %v6441_v24  ;;  %v6169_v42 = vld [vmem:[#allocation8 + $0x1a8] sm:$0xf] }
 0x3b7   :  { %v2739_v14 = vadd.f32 %v2738_v59, %v2690_v19  ;;  %v6313_v59 = vld [vmem:[#allocation8 + $0x2c8] sm:$0xf]  ;;  %v6890_v19 = vld [vmem:[#allocation8 + $0x1d4] sm:$0xf0] }
 0x3b8   :  { %v2643_v53 = vadd.f32 %v2642_v1, %v2594_v38  ;;  %v6314_v1 = vor.u32 %v6922_v61, %v6313_v59  ;;  %v6058_v38 = vor.u32 %v6858_v30, %v6057_v48  ;;  %4157 = vmatpush.bf16.msra.mxu3 %v6442_v49  ;;  %v6186_v41 = vor.u32 %v6890_v19, %v6185_v33  ;;  %v6425_v59 = vld [vmem:[#allocation8 + $0x3a8] sm:$0xf] }
 0x3b9   :  { %v2802_v36 = vmax.f32 %v2739_v14, 0.0 }
 0x3ba   :  { %4108 = vmatpush.bf16.msra.mxu2 %v6314_v1  ;;  %4010 = vmatpush.bf16.msra.mxu0 %v6058_v38  ;;  %v6886_v38 = vld [vmem:[#allocation8 + $0x1b4] sm:$0xf0] }
 0x3bb   :  { %4059 = vmatpush.bf16.msra.mxu1 %v6186_v41 }
 0x3bc   :  { %v2691_v34 = vpop.f32.mrf.mxu2 }
 0x3bd   :  { %v2692_v45 = vadd.f32 %v2691_v34, %v2643_v53  ;;  %v3626_v39 = vpop.f32.mrf.mxu0  ;;  %v2740_v54 = vpop.f32.mrf.mxu3 }
 0x3be   :  { %v3627_v11 = vadd.f32 %v3626_v39, %v7928_v28  ;;  %v3675_v57 = vpop.f32.mrf.mxu1 }
 0x3bf   :  { %v2741_v20 = vadd.f32 %v2740_v54, %v2692_v45 }
 0x3c0   :  { %v3676_v10 = vadd.f32 %v3675_v57, %v3627_v11  ;;  %3821 = vmatmul.bf16.vlgmr.msrb.gmra.mxu0 %v8346_v46  ;;  %3870 = vmatmul.bf16.vlgmr.msrb.gmra.mxu1 %v8347_v37  ;;  %v6297_v11 = vld [vmem:[#allocation8 + $0x2a8] sm:$0xf]  ;;  %v6918_v57 = vld [vmem:[#allocation8 + $0x2b4] sm:$0xf0] }
 0x3c1   :  { %v2806_v12 = vmax.f32 %v2741_v20, 0.0  ;;  %3919 = vmatmul.bf16.vlgmr.msrb.gmra.mxu2 %v7749_v6 }
 0x3c3   :  { %v7934_v22 = vpack.c.bf16 %v2806_v12, %v2802_v36 }
 0x3c4   :  { %v3724_v21 = vpop.f32.mrf.mxu2 }
 0x3c5   :  { %v3725_v56 = vadd.f32 %v3724_v21, %v3676_v10  ;;  %3807 = vmatmul.bf16.gmra.mxu3 %v7934_v22  ;;  %v3628_v8 = vpop.f32.mrf.mxu0  ;;  %v6298_v10 = vor.u32 %v6918_v57, %v6297_v11  ;;  %v6041_v21 = vld [vmem:[#allocation8 + $0xa8] sm:$0xf] }
 0x3c6   :  { %v3629_v51 = vadd.f32 %v3628_v8, %v7928_v28  ;;  %v3677_v26 = vpop.f32.mrf.mxu1  ;;  %v6854_v8 = vld [vmem:[#allocation8 + $0xb4] sm:$0xf0]  ;;  %v6281_v57 = vld [vmem:[#allocation8 + $0x288] sm:$0xf] }
 0x3c7   :  { %4109 = vmatpush.bf16.msra.mxu2 %v6298_v10 }
 0x3c8   :  { %v3678_v15 = vadd.f32 %v3677_v26, %v3629_v51  ;;  %v6042_v51 = vor.u32 %v6854_v8, %v6041_v21  ;;  %v6950_v26 = vld [vmem:[#allocation8 + $0x3b4] sm:$0xf0] }
 0x3c9   :  { %v6426_v1 = vor.u32 %v6950_v26, %v6425_v59 }
 0x3ca   :  { %4011 = vmatpush.bf16.msra.mxu0 %v6042_v51  ;;  %v6409_v51 = vld [vmem:[#allocation8 + $0x388] sm:$0xf] }
 0x3cb   :  { %4158 = vmatpush.bf16.msra.mxu3 %v6426_v1 }
 0x3cc   :  { %v3726_v53 = vpop.f32.mrf.mxu2 }
 0x3cd   :  { %v3727_v34 = vadd.f32 %v3726_v53, %v3678_v15  ;;  %v3631_v14 = vpop.f32.mrf.mxu0  ;;  %v6170_v15 = vor.u32 %v6886_v38, %v6169_v42 }
 0x3ce   :  { %v3632_v45 = vadd.f32 %v3631_v14, %v7928_v28  ;;  %v3680_v39 = vpop.f32.mrf.mxu1 }
 0x3cf   :  { %4060 = vmatpush.bf16.msra.mxu1 %v6170_v15  ;;  %v6882_v15 = vld [vmem:[#allocation8 + $0x194] sm:$0xf0] }
 0x3d0   :  { %v3681_v54 = vadd.f32 %v3680_v39, %v3632_v45  ;;  %3826 = vmatmul.bf16.gmra.mxu0 %v8348_v18  ;;  %3875 = vmatmul.bf16.gmra.mxu1 %v8349_v35 }
 0x3d1   :  { %3924 = vmatmul.bf16.gmra.mxu2 %v7763_v9 }
 0x3d4   :  { %v3729_v20 = vpop.f32.mrf.mxu2 }
 0x3d5   :  { %v3730_v36 = vadd.f32 %v3729_v20, %v3681_v54  ;;  %3968 = vmatmul.bf16.vlgmr.msrb.gmra.mxu3 %v7864_v17  ;;  %v3633_v12 = vpop.f32.mrf.mxu0  ;;  %v6914_v20 = vld [vmem:[#allocation8 + $0x294] sm:$0xf0] }
 0x3d6   :  { %v3634_v61 = vadd.f32 %v3633_v12, %v7928_v28  ;;  %v3682_v48 = vpop.f32.mrf.mxu1  ;;  %v6282_v12 = vor.u32 %v6914_v20, %v6281_v57 }
 0x3d8   :  { %v3683_v30 = vadd.f32 %v3682_v48, %v3634_v61  ;;  %v3773_v24 = vpop.f32.mrf.mxu3  ;;  %v6025_v61 = vld [vmem:[#allocation8 + $0x88] sm:$0xf]  ;;  %v6850_v48 = vld [vmem:[#allocation8 + $0x94] sm:$0xf0]  ;;  %4110 = vmatpush.bf16.msra.mxu2 %v6282_v12 }
 0x3d9   :  { %v3774_v49 = vadd.f32 %v3773_v24, %v3725_v56  ;;  %v6026_v1 = vor.u32 %v6850_v48, %v6025_v61  ;;  %v6910_v12 = vld [vmem:[#allocation8 + $0x274] sm:$0xf0] }
 0x3db   :  { %v4401_v11 = vmax.f32 %v3774_v49, 0.0  ;;  %4012 = vmatpush.bf16.msra.mxu0 %v6026_v1  ;;  %v6153_v49 = vld [vmem:[#allocation8 + $0x188] sm:$0xf] }
 0x3dc   :  { %v3731_v33 = vpop.f32.mrf.mxu2  ;;  %v6393_v1 = vld [vmem:[#allocation8 + $0x368] sm:$0xf] }
 0x3dd   :  { %v3732_v19 = vadd.f32 %v3731_v33, %v3683_v30  ;;  %v3636_v41 = vpop.f32.mrf.mxu0  ;;  %v6946_v30 = vld [vmem:[#allocation8 + $0x394] sm:$0xf0] }
 0x3de   :  { %v3637_v53 = vadd.f32 %v3636_v41, %v7928_v28  ;;  %v3685_v14 = vpop.f32.mrf.mxu1  ;;  %v6410_v24 = vor.u32 %v6946_v30, %v6409_v51  ;;  %v6154_v41 = vor.u32 %v6882_v15, %v6153_v49 }
 0x3e0   :  { %v3686_v45 = vadd.f32 %v3685_v14, %v3637_v53  ;;  %v3775_v39 = vpop.f32.mrf.mxu3  ;;  %3831 = vmatmul.bf16.gmra.mxu0 %v8350_v5  ;;  %3880 = vmatmul.bf16.gmra.mxu1 %v8351_v44 }
 0x3e1   :  { %v3776_v54 = vadd.f32 %v3775_v39, %v3727_v34  ;;  %3929 = vmatmul.bf16.gmra.mxu2 %v7777_v29  ;;  %4159 = vmatpush.bf16.msra.mxu3 %v6410_v24 }
 0x3e2   :  { %4061 = vmatpush.bf16.msra.mxu1 %v6154_v41  ;;  %v6137_v41 = vld [vmem:[#allocation8 + $0x168] sm:$0xf] }
 0x3e3   :  { %v4405_v56 = vmax.f32 %v3776_v54, 0.0 }
 0x3e4   :  { %v3734_v10 = vpop.f32.mrf.mxu2 }
 0x3e5   :  { %v7948_v21 = vpack.c.bf16 %v4405_v56, %v4401_v11  ;;  %v3735_v8 = vadd.f32 %v3734_v10, %v3686_v45  ;;  %3973 = vmatmul.bf16.gmra.mxu3 %v7872_v63  ;;  %v3638_v59 = vpop.f32.mrf.mxu0  ;;  %v6265_v10 = vld [vmem:[#allocation8 + $0x268] sm:$0xf] }
 0x3e6   :  { %v3639_v34 = vadd.f32 %v3638_v59, %v7928_v28  ;;  %v3687_v26 = vpop.f32.mrf.mxu1  ;;  %v6266_v61 = vor.u32 %v6910_v12, %v6265_v10 }
 0x3e8   :  { %v3688_v42 = vadd.f32 %v3687_v26, %v3639_v34  ;;  %v3778_v38 = vpop.f32.mrf.mxu3  ;;  %v6009_v34 = vld [vmem:[#allocation8 + $0x68] sm:$0xf]  ;;  %v6846_v26 = vld [vmem:[#allocation8 + $0x74] sm:$0xf0]  ;;  %4111 = vmatpush.bf16.msra.mxu2 %v6266_v61 }
 0x3e9   :  { %v3779_v33 = vadd.f32 %v3778_v38, %v3730_v36  ;;  %v6942_v38 = vld [vmem:[#allocation8 + $0x374] sm:$0xf0]  ;;  %v6249_v61 = vld [vmem:[#allocation8 + $0x248] sm:$0xf] }
 0x3ea   :  { %v6394_v49 = vor.u32 %v6942_v38, %v6393_v1  ;;  %v6377_v38 = vld [vmem:[#allocation8 + $0x348] sm:$0xf] }
 0x3eb   :  { %v4409_v20 = vmax.f32 %v3779_v33, 0.0 }
 0x3ec   :  { %v3736_v53 = vpop.f32.mrf.mxu2  ;;  %4160 = vmatpush.bf16.msra.mxu3 %v6394_v49 }
 0x3ed   :  { %v3737_v14 = vadd.f32 %v3736_v53, %v3688_v42  ;;  %v3641_v45 = vpop.f32.mrf.mxu0  ;;  %v6010_v42 = vor.u32 %v6846_v26, %v6009_v34  ;;  %v6878_v53 = vld [vmem:[#allocation8 + $0x174] sm:$0xf0] }
 0x3ee   :  { %v3642_v39 = vadd.f32 %v3641_v45, %v7928_v28  ;;  %v3690_v54 = vpop.f32.mrf.mxu1 }
 0x3ef   :  { %4013 = vmatpush.bf16.msra.mxu0 %v6010_v42  ;;  %v6842_v42 = vld [vmem:[#allocation8 + $0x54] sm:$0xf0] }
 0x3f0   :  { %v3691_v11 = vadd.f32 %v3690_v54, %v3642_v39  ;;  %v3780_v56 = vpop.f32.mrf.mxu3  ;;  %3836 = vmatmul.bf16.gmra.mxu0 %v8352_v2  ;;  %3885 = vmatmul.bf16.gmra.mxu1 %v8353_v31  ;;  %v6138_v39 = vor.u32 %v6878_v53, %v6137_v41  ;;  %v6938_v41 = vld [vmem:[#allocation8 + $0x354] sm:$0xf0] }
 0x3f1   :  { %v3781_v57 = vadd.f32 %v3780_v56, %v3732_v19  ;;  %3934 = vmatmul.bf16.gmra.mxu2 %v7791_v40  ;;  %v6378_v53 = vor.u32 %v6938_v41, %v6377_v38  ;;  %v6838_v41 = vld [vmem:[#allocation8 + $0x34] sm:$0xf0] }
 0x3f2   :  { %4062 = vmatpush.bf16.msra.mxu1 %v6138_v39 }
 0x3f3   :  { %v4413_v36 = vmax.f32 %v3781_v57, 0.0  ;;  %4161 = vmatpush.bf16.msra.mxu3 %v6378_v53  ;;  %v6361_v53 = vld [vmem:[#allocation8 + $0x328] sm:$0xf] }
 0x3f4   :  { %v3739_v59 = vpop.f32.mrf.mxu2 }
 0x3f5   :  { %v3740_v48 = vadd.f32 %v3739_v59, %v3691_v11  ;;  %3978 = vmatmul.bf16.gmra.mxu3 %v7880_v4  ;;  %v3643_v51 = vpop.f32.mrf.mxu0  ;;  %v7957_v30 = vpack.c.bf16 %v4413_v36, %v4409_v20 }
 0x3f6   :  { %v3644_v19 = vadd.f32 %v3643_v51, %v7928_v28  ;;  %v3692_v24 = vpop.f32.mrf.mxu1  ;;  %v6906_v51 = vld [vmem:[#allocation8 + $0x254] sm:$0xf0] }
 0x3f7   :  { %v6250_v26 = vor.u32 %v6906_v51, %v6249_v61 }
 0x3f8   :  { %v3693_v15 = vadd.f32 %v3692_v24, %v3644_v19  ;;  %v3783_v33 = vpop.f32.mrf.mxu3  ;;  %v5993_v24 = vld [vmem:[#allocation8 + $0x48] sm:$0xf] }
 0x3f9   :  { %v3784_v45 = vadd.f32 %v3783_v33, %v3735_v8  ;;  %4112 = vmatpush.bf16.msra.mxu2 %v6250_v26  ;;  %v5994_v33 = vor.u32 %v6842_v42, %v5993_v24  ;;  %v6902_v24 = vld [vmem:[#allocation8 + $0x234] sm:$0xf0] }
 0x3fb   :  { %v4417_v59 = vmax.f32 %v3784_v45, 0.0  ;;  %4014 = vmatpush.bf16.msra.mxu0 %v5994_v33  ;;  %v5977_v33 = vld [vmem:[#allocation8 + $0x28] sm:$0xf] }
 0x3fc   :  { %v3741_v54 = vpop.f32.mrf.mxu2 }
 0x3fd   :  { %v3742_v11 = vadd.f32 %v3741_v54, %v3693_v15  ;;  %v3646_v56 = vpop.f32.mrf.mxu0  ;;  %v6121_v54 = vld [vmem:[#allocation8 + $0x148] sm:$0xf] }
 0x3fe   :  { %v3647_v57 = vadd.f32 %v3646_v56, %v7928_v28  ;;  %v3695_v20 = vpop.f32.mrf.mxu1  ;;  %v6874_v56 = vld [vmem:[#allocation8 + $0x154] sm:$0xf0] }
 0x400   :  { %v3696_v36 = vadd.f32 %v3695_v20, %v3647_v57  ;;  %v3785_v10 = vpop.f32.mrf.mxu3  ;;  %3841 = vmatmul.bf16.gmra.mxu0 %v8354_v52  ;;  %3890 = vmatmul.bf16.gmra.mxu1 %v8355_v32  ;;  %v6122_v20 = vor.u32 %v6874_v56, %v6121_v54  ;;  %v5978_v54 = vor.u32 %v6838_v41, %v5977_v33  ;;  %v6934_v56 = vld [vmem:[#allocation8 + $0x334] sm:$0xf0] }
 0x401   :  { %v3786_v12 = vadd.f32 %v3785_v10, %v3737_v14  ;;  %3939 = vmatmul.bf16.gmra.mxu2 %v7805_v58 }
 0x402   :  { %4063 = vmatpush.bf16.msra.mxu1 %v6122_v20  ;;  %4015 = vmatpush.bf16.msra.mxu0 %v5978_v54 }
 0x403   :  { %v4421_v8 = vmax.f32 %v3786_v12, 0.0 }
 0x404   :  { %v3744_v34 = vpop.f32.mrf.mxu2 }
 0x405   :  { %v3745_v1 = vadd.f32 %v3744_v34, %v3696_v36  ;;  %3983 = vmatmul.bf16.gmra.mxu3 %v7890_v55  ;;  %v3648_v19 = vpop.f32.mrf.mxu0  ;;  %v7965_v49 = vpack.c.bf16 %v4421_v8, %v4417_v59 }
 0x406   :  { %v3649_v14 = vadd.f32 %v3648_v19, %v7928_v28  ;;  %v3697_v15 = vpop.f32.mrf.mxu1  ;;  %v6233_v19 = vld [vmem:[#allocation8 + $0x228] sm:$0xf] }
 0x407   :  { %v6234_v38 = vor.u32 %v6902_v24, %v6233_v19 }
 0x408   :  { %v3698_v45 = vadd.f32 %v3697_v15, %v3649_v14  ;;  %v3788_v39 = vpop.f32.mrf.mxu3 }
 0x409   :  { %v3789_v57 = vadd.f32 %v3788_v39, %v3740_v48  ;;  %4113 = vmatpush.bf16.msra.mxu2 %v6234_v38  ;;  %v6866_v38 = vld [vmem:[#allocation8 + $0x114] sm:$0xf0] }
 0x40b   :  { %v4425_v26 = vmax.f32 %v3789_v57, 0.0  ;;  %v6362_v57 = vor.u32 %v6934_v56, %v6361_v53 }
 0x40c   :  { %v3746_v36 = vpop.f32.mrf.mxu2 }
 0x40d   :  { %v3747_v10 = vadd.f32 %v3746_v36, %v3698_v45  ;;  %v3651_v12 = vpop.f32.mrf.mxu0  ;;  %4162 = vmatpush.bf16.msra.mxu3 %v6362_v57 }
 0x40e   :  { %v3652_v59 = vadd.f32 %v3651_v12, %v7928_v28  ;;  %v3700_v8 = vpop.f32.mrf.mxu1  ;;  %v6105_v12 = vld [vmem:[#allocation8 + $0x128] sm:$0xf] }
 0x410   :  { %v3701_v61 = vadd.f32 %v3700_v8, %v3652_v59  ;;  %v3790_v51 = vpop.f32.mrf.mxu3  ;;  %3846 = vmatmul.bf16.gmra.mxu0 %v8356_v60  ;;  %3895 = vmatmul.bf16.gmra.mxu1 %v8357_v62  ;;  %v6870_v59 = vld [vmem:[#allocation8 + $0x134] sm:$0xf0] }
 0x411   :  { %v3791_v34 = vadd.f32 %v3790_v51, %v3742_v11  ;;  %3944 = vmatmul.bf16.gmra.mxu2 %v7820_v43 }
 0x413   :  { %v4429_v48 = vmax.f32 %v3791_v34, 0.0  ;;  %v5961_v34 = vld [vmem:[#allocation8 + $0x8] sm:$0xf] }
 0x414   :  { %v3749_v42 = vpop.f32.mrf.mxu2 }
 0x415   :  { %v3750_v14 = vadd.f32 %v3749_v42, %v3701_v61  ;;  %3988 = vmatmul.bf16.gmra.mxu3 %v7900_v47  ;;  %v3653_v15 = vpop.f32.mrf.mxu0  ;;  %v7973_v45 = vpack.c.bf16 %v4429_v48, %v4425_v26  ;;  %v6106_v61 = vor.u32 %v6870_v59, %v6105_v12  ;;  %v6834_v26 = vld [vmem:[#allocation8 + $0x14] sm:$0xf0]  ;;  %v6089_v48 = vld [vmem:[#allocation8 + $0x108] sm:$0xf] }
 0x416   :  { %v3654_v11 = vadd.f32 %v3653_v15, %v7928_v28  ;;  %v3702_v39 = vpop.f32.mrf.mxu1  ;;  %v5962_v42 = vor.u32 %v6834_v26, %v5961_v34  ;;  %v6217_v15 = vld [vmem:[#allocation8 + $0x208] sm:$0xf]  ;;  %v6090_v53 = vor.u32 %v6866_v38, %v6089_v48 }
 0x417   :  { %8362 = vst [vmem:[#allocation28_spill] sm:$0xff] %v7973_v45  ;;  %4064 = vmatpush.bf16.msra.mxu1 %v6106_v61  ;;  %v6345_v61 = vld [vmem:[#allocation8 + $0x308] sm:$0xf] }
 0x418   :  { %v3703_v20 = vadd.f32 %v3702_v39, %v3654_v11  ;;  %v3793_v36 = vpop.f32.mrf.mxu3  ;;  %v6898_v11 = vld [vmem:[#allocation8 + $0x214] sm:$0xf0]  ;;  %4016 = vmatpush.bf16.msra.mxu0 %v5962_v42 }
 0x419   :  { %v3794_v8 = vadd.f32 %v3793_v36, %v3745_v1  ;;  %v6218_v39 = vor.u32 %v6898_v11, %v6217_v15 }
 0x41b   :  { %4065 = vmatpush.bf16.msra.mxu1 %v6090_v53  ;;  %4114 = vmatpush.bf16.msra.mxu2 %v6218_v39  ;;  %v4433_v57 = vmax.f32 %v3794_v8, 0.0 }
 0x41c   :  { %v3751_v51 = vpop.f32.mrf.mxu2 }
 0x41d   :  { %v3752_v19 = vadd.f32 %v3751_v51, %v3703_v20  ;;  %v3656_v24 = vpop.f32.mrf.mxu0  ;;  %v6930_v51 = vld [vmem:[#allocation8 + $0x314] sm:$0xf0] }
 0x41e   :  { %v3657_v33 = vadd.f32 %v3656_v24, %v7928_v28  ;;  %v3705_v41 = vpop.f32.mrf.mxu1 }
 0x420   :  { %v3706_v1 = vadd.f32 %v3705_v41, %v3657_v33  ;;  %v3795_v54 = vpop.f32.mrf.mxu3  ;;  %3851 = vmatmul.bf16.gmra.mxu0 %v8358_v25  ;;  %3900 = vmatmul.bf16.gmra.mxu1 %v8359_v0 }
 0x421   :  { %v3796_v56 = vadd.f32 %v3795_v54, %v3747_v10  ;;  %3949 = vmatmul.bf16.gmra.mxu2 %v7835_v13  ;;  %v6346_v10 = vor.u32 %v6930_v51, %v6345_v61  ;;  %v6860_v51 = vld [vmem:[#allocation8 + $0xec] sm:$0xf] }
 0x423   :  { %v4437_v20 = vmax.f32 %v3796_v56, 0.0  ;;  %4163 = vmatpush.bf16.msra.mxu3 %v6346_v10 }
 0x424   :  { %v3754_v36 = vpop.f32.mrf.mxu2 }
 0x425   :  { %v3755_v12 = vadd.f32 %v3754_v36, %v3706_v1  ;;  %3993 = vmatmul.bf16.gmra.mxu3 %v7910_v7  ;;  %v3658_v59 = vpop.f32.mrf.mxu0  ;;  %v7981_v34 = vpack.c.bf16 %v4437_v20, %v4433_v57  ;;  %v6924_v57 = vld [vmem:[#allocation8 + $0x2ec] sm:$0xf]  ;;  %v6331_v20 = vld [vmem:[#allocation8 + $0x2f8] sm:$0xf0] }
 0x426   :  { %v3659_v26 = vadd.f32 %v3658_v59, %v7928_v28  ;;  %v3707_v48 = vpop.f32.mrf.mxu1  ;;  %v6334_v36 = vor.u32 %v6924_v57, %v6331_v20  ;;  %v7993_v57 = vperm.slane %v7925_v27, 1 }
 0x427   :  { %8363 = vst [vmem:[#allocation29_spill] sm:$0xff] %v7981_v34 }
 0x428   :  { %v3708_v24 = vadd.f32 %v3707_v48, %v3659_v26  ;;  %v3798_v42 = vpop.f32.mrf.mxu3  ;;  %v6075_v26 = vld [vmem:[#allocation8 + $0xf8] sm:$0xf0]  ;;  %v6956_v48 = vld [vmem:[#allocation8 + $0x3ec] sm:$0xf]  ;;  %4303 = vmatpush.bf16.msrb.mxu2 %v6334_v36 }
 0x429   :  { %v3799_v38 = vadd.f32 %v3798_v42, %v3750_v14  ;;  %v6078_v42 = vor.u32 %v6860_v51, %v6075_v26 }
 0x42b   :  { %v4441_v54 = vmax.f32 %v3799_v38, 0.0  ;;  %v6459_v38 = vld [vmem:[#allocation8 + $0x3f8] sm:$0xf0]  ;;  %4205 = vmatpush.bf16.msrb.mxu0 %v6078_v42 }
 0x42c   :  { %v3756_v15 = vpop.f32.mrf.mxu2  ;;  %v6315_v42 = vld [vmem:[#allocation8 + $0x2d8] sm:$0xf0] }
 0x42d   :  { %v3757_v8 = vadd.f32 %v3756_v15, %v3708_v24  ;;  %v3661_v33 = vpop.f32.mrf.mxu0  ;;  %v6462_v15 = vor.u32 %v6956_v48, %v6459_v38  ;;  %v6856_v38 = vld [vmem:[#allocation8 + $0xcc] sm:$0xf] }
 0x42e   :  { %v3662_v41 = vadd.f32 %v3661_v33, %v7928_v28  ;;  %v3710_v53 = vpop.f32.mrf.mxu1 }
 0x42f   :  { %4352 = vmatpush.bf16.msrb.mxu3 %v6462_v15 }
 0x430   :  { %v3711_v11 = vadd.f32 %v3710_v53, %v3662_v41  ;;  %v3800_v39 = vpop.f32.mrf.mxu3  ;;  %3856 = vmatmul.bf16.gmra.mxu0 %v8360_v50  ;;  %3905 = vmatmul.bf16.gmra.mxu1 %v8361_v23  ;;  %v6892_v53 = vld [vmem:[#allocation8 + $0x1ec] sm:$0xf] }
 0x431   :  { %v3801_v1 = vadd.f32 %v3800_v39, %v3752_v19  ;;  %3954 = vmatmul.bf16.gmra.mxu2 %v7850_v16 }
 0x433   :  { %v4445_v56 = vmax.f32 %v3801_v1, 0.0 }
 0x434   :  { %v3759_v14 = vpop.f32.mrf.mxu2 }
 0x435   :  { %v3760_v59 = vadd.f32 %v3759_v14, %v3711_v11  ;;  %3998 = vmatmul.bf16.gmra.mxu3 %v7920_v3  ;;  %v3663_v61 = vpop.f32.mrf.mxu0  ;;  %v7989_v10 = vpack.c.bf16 %v4445_v56, %v4441_v54  ;;  %v6203_v11 = vld [vmem:[#allocation8 + $0x1f8] sm:$0xf0] }
 0x436   :  { %v3664_v19 = vadd.f32 %v3663_v61, %v7928_v28  ;;  %v3712_v24 = vpop.f32.mrf.mxu1  ;;  %v6206_v1 = vor.u32 %v6892_v53, %v6203_v11  ;;  %v6059_v53 = vld [vmem:[#allocation8 + $0xd8] sm:$0xf0]  ;;  %v6952_v11 = vld [vmem:[#allocation8 + $0x3cc] sm:$0xf] }
 0x437   :  { %8364 = vst [vmem:[#allocation30_spill] sm:$0xff] %v7989_v10 }
 0x438   :  { %v3713_v33 = vadd.f32 %v3712_v24, %v3664_v19  ;;  %v3803_v41 = vpop.f32.mrf.mxu3  ;;  %4254 = vmatpush.bf16.msrb.mxu1 %v6206_v1  ;;  %v6920_v24 = vld [vmem:[#allocation8 + $0x2cc] sm:$0xf]  ;;  %v6443_v1 = vld [vmem:[#allocation8 + $0x3d8] sm:$0xf0] }
 0x439   :  { %v3804_v39 = vadd.f32 %v3803_v41, %v3755_v12 }
 0x43b   :  { %v4449_v12 = vmax.f32 %v3804_v39, 0.0  ;;  %v6446_v39 = vor.u32 %v6952_v11, %v6443_v1 }
 0x43c   :  { %v3761_v54 = vpop.f32.mrf.mxu2 }
 0x43d   :  { %v3762_v56 = vadd.f32 %v3761_v54, %v3713_v33  ;;  %v3822_v28 = vpop.f32.mrf.mxu0  ;;  %v6062_v54 = vor.u32 %v6856_v38, %v6059_v53  ;;  %4353 = vmatpush.bf16.msrb.mxu3 %v6446_v39  ;;  %v6852_v39 = vld [vmem:[#allocation8 + $0xac] sm:$0xf] }
 0x43e   :  { %v3823_v20 = vadd.f32 %v3822_v28, %v7993_v57  ;;  %v3871_v14 = vpop.f32.mrf.mxu1 }
 0x43f   :  { %4206 = vmatpush.bf16.msrb.mxu0 %v6062_v54 }
 0x440   :  { %v3872_v36 = vadd.f32 %v3871_v14, %v3823_v20  ;;  %v3805_v61 = vpop.f32.mrf.mxu3  ;;  %4017 = vmatmul.bf16.vlgmr.msra.gmra.mxu0 %v8346_v46  ;;  %4066 = vmatmul.bf16.vlgmr.msra.gmra.mxu1 %v8347_v37  ;;  %v6888_v14 = vld [vmem:[#allocation8 + $0x1cc] sm:$0xf] }
 0x441   :  { %v3806_v51 = vadd.f32 %v3805_v61, %v3757_v8  ;;  %4115 = vmatmul.bf16.vlgmr.msra.gmra.mxu2 %v7749_v6  ;;  %v6318_v8 = vor.u32 %v6920_v24, %v6315_v42 }
 0x443   :  { %v4453_v26 = vmax.f32 %v3806_v51, 0.0  ;;  %4304 = vmatpush.bf16.msrb.mxu2 %v6318_v8  ;;  %v6299_v8 = vld [vmem:[#allocation8 + $0x2b8] sm:$0xf0] }
 0x444   :  { %v3920_v27 = vpop.f32.mrf.mxu2 }
 0x445   :  { %v3921_v48 = vadd.f32 %v3920_v27, %v3872_v36  ;;  %4003 = vmatmul.bf16.gmra.mxu3 %v7934_v22  ;;  %v3824_v19 = vpop.f32.mrf.mxu0  ;;  %v8000_v15 = vpack.c.bf16 %v4453_v26, %v4449_v12  ;;  %v6187_v36 = vld [vmem:[#allocation8 + $0x1d8] sm:$0xf0] }
 0x446   :  { %v3825_v33 = vadd.f32 %v3824_v19, %v7993_v57  ;;  %v3873_v41 = vpop.f32.mrf.mxu1  ;;  %v6190_v51 = vor.u32 %v6888_v14, %v6187_v36 }
 0x447   :  { %8365 = vst [vmem:[#allocation31_spill] sm:$0xff] %v8000_v15 }
 0x448   :  { %v3874_v28 = vadd.f32 %v3873_v41, %v3825_v33  ;;  %v3808_v20 = vpop.f32.mrf.mxu3  ;;  %4255 = vmatpush.bf16.msrb.mxu1 %v6190_v51  ;;  %v6916_v41 = vld [vmem:[#allocation8 + $0x2ac] sm:$0xf] }
 0x449   :  { %v3809_v61 = vadd.f32 %v3808_v20, %v3760_v59  ;;  %v6302_v11 = vor.u32 %v6916_v41, %v6299_v8  ;;  %v6948_v20 = vld [vmem:[#allocation8 + $0x3ac] sm:$0xf] }
 0x44b   :  { %v4457_v59 = vmax.f32 %v3809_v61, 0.0  ;;  %4305 = vmatpush.bf16.msrb.mxu2 %v6302_v11  ;;  %v6427_v61 = vld [vmem:[#allocation8 + $0x3b8] sm:$0xf0] }
 0x44c   :  { %v3922_v12 = vpop.f32.mrf.mxu2  ;;  %v6430_v51 = vor.u32 %v6948_v20, %v6427_v61  ;;  %v6912_v20 = vld [vmem:[#allocation8 + $0x28c] sm:$0xf] }
 0x44d   :  { %v3923_v26 = vadd.f32 %v3922_v12, %v3874_v28  ;;  %v3827_v27 = vpop.f32.mrf.mxu0  ;;  %v6043_v28 = vld [vmem:[#allocation8 + $0xb8] sm:$0xf0] }
 0x44e   :  { %v3828_v19 = vadd.f32 %v3827_v27, %v7993_v57  ;;  %v3876_v24 = vpop.f32.mrf.mxu1  ;;  %v6046_v36 = vor.u32 %v6852_v39, %v6043_v28  ;;  %4354 = vmatpush.bf16.msrb.mxu3 %v6430_v51 }
 0x450   :  { %v3877_v42 = vadd.f32 %v3876_v24, %v3828_v19  ;;  %v3810_v15 = vpop.f32.mrf.mxu3  ;;  %4022 = vmatmul.bf16.gmra.mxu0 %v8348_v18  ;;  %4071 = vmatmul.bf16.gmra.mxu1 %v8349_v35  ;;  %v6884_v19 = vld [vmem:[#allocation8 + $0x1ac] sm:$0xf]  ;;  %v6171_v24 = vld [vmem:[#allocation8 + $0x1b8] sm:$0xf0] }
 0x451   :  { %v3811_v38 = vadd.f32 %v3810_v15, %v3762_v56  ;;  %4120 = vmatmul.bf16.gmra.mxu2 %v7763_v9  ;;  %4207 = vmatpush.bf16.msrb.mxu0 %v6046_v36 }
 0x453   :  { %v4461_v33 = vmax.f32 %v3811_v38, 0.0  ;;  %v6174_v38 = vor.u32 %v6884_v19, %v6171_v24  ;;  %v6027_v19 = vld [vmem:[#allocation8 + $0x98] sm:$0xf0]  ;;  %v6944_v24 = vld [vmem:[#allocation8 + $0x38c] sm:$0xf] }
 0x454   :  { %v3925_v53 = vpop.f32.mrf.mxu2 }
 0x455   :  { %v3926_v1 = vadd.f32 %v3925_v53, %v3877_v42  ;;  %4164 = vmatmul.bf16.vlgmr.msra.gmra.mxu3 %v7864_v17  ;;  %v3829_v54 = vpop.f32.mrf.mxu0  ;;  %v8008_v14 = vpack.c.bf16 %v4461_v33, %v4457_v59  ;;  %4256 = vmatpush.bf16.msrb.mxu1 %v6174_v38 }
 0x456   :  { %v3830_v56 = vadd.f32 %v3829_v54, %v7993_v57  ;;  %v3878_v15 = vpop.f32.mrf.mxu1 }
 0x457   :  { %8366 = vst [vmem:[#allocation32_spill] sm:$0xff] %v8008_v14 }
 0x458   :  { %v3879_v12 = vadd.f32 %v3878_v15, %v3830_v56  ;;  %v3969_v27 = vpop.f32.mrf.mxu3  ;;  %v6283_v56 = vld [vmem:[#allocation8 + $0x298] sm:$0xf0] }
 0x459   :  { %v3970_v42 = vadd.f32 %v3969_v27, %v3921_v48  ;;  %v6286_v36 = vor.u32 %v6912_v20, %v6283_v56  ;;  %v6848_v27 = vld [vmem:[#allocation8 + $0x8c] sm:$0xf] }
 0x45b   :  { %v4402_v28 = vmax.f32 %v3970_v42, 0.0  ;;  %4306 = vmatpush.bf16.msrb.mxu2 %v6286_v36  ;;  %v6411_v42 = vld [vmem:[#allocation8 + $0x398] sm:$0xf0] }
 0x45c   :  { %v3927_v41 = vpop.f32.mrf.mxu2 }
 0x45d   :  { %v3928_v8 = vadd.f32 %v3927_v41, %v3879_v12  ;;  %v3832_v59 = vpop.f32.mrf.mxu0  ;;  %v6030_v41 = vor.u32 %v6848_v27, %v6027_v19 }
 0x45e   :  { %v3833_v33 = vadd.f32 %v3832_v59, %v7993_v57  ;;  %v3881_v53 = vpop.f32.mrf.mxu1  ;;  %v6414_v59 = vor.u32 %v6944_v24, %v6411_v42  ;;  %v6908_v24 = vld [vmem:[#allocation8 + $0x26c] sm:$0xf] }
 0x45f   :  { %4208 = vmatpush.bf16.msrb.mxu0 %v6030_v41 }
 0x460   :  { %v3882_v54 = vadd.f32 %v3881_v53, %v3833_v33  ;;  %v3971_v11 = vpop.f32.mrf.mxu3  ;;  %4027 = vmatmul.bf16.gmra.mxu0 %v8350_v5  ;;  %4076 = vmatmul.bf16.gmra.mxu1 %v8351_v44 }
 0x461   :  { %v3972_v39 = vadd.f32 %v3971_v11, %v3923_v26  ;;  %4125 = vmatmul.bf16.gmra.mxu2 %v7777_v29  ;;  %v6880_v11 = vld [vmem:[#allocation8 + $0x18c] sm:$0xf]  ;;  %4355 = vmatpush.bf16.msrb.mxu3 %v6414_v59 }
 0x463   :  { %v4406_v48 = vmax.f32 %v3972_v39, 0.0  ;;  %v6155_v39 = vld [vmem:[#allocation8 + $0x198] sm:$0xf0] }
 0x464   :  { %v3930_v15 = vpop.f32.mrf.mxu2 }
 0x465   :  { %v8015_v61 = vpack.c.bf16 %v4406_v48, %v4402_v28  ;;  %v3931_v51 = vadd.f32 %v3930_v15, %v3882_v54  ;;  %4169 = vmatmul.bf16.gmra.mxu3 %v7872_v63  ;;  %v3834_v12 = vpop.f32.mrf.mxu0  ;;  %v6158_v54 = vor.u32 %v6880_v11, %v6155_v39  ;;  %v6940_v11 = vld [vmem:[#allocation8 + $0x36c] sm:$0xf] }
 0x466   :  { %v3835_v26 = vadd.f32 %v3834_v12, %v7993_v57  ;;  %v3883_v38 = vpop.f32.mrf.mxu1 }
 0x467   :  { %4257 = vmatpush.bf16.msrb.mxu1 %v6158_v54 }
 0x468   :  { %v3884_v33 = vadd.f32 %v3883_v38, %v3835_v26  ;;  %v3974_v53 = vpop.f32.mrf.mxu3  ;;  %v6267_v26 = vld [vmem:[#allocation8 + $0x278] sm:$0xf0] }
 0x469   :  { %v3975_v28 = vadd.f32 %v3974_v53, %v3926_v1  ;;  %v6270_v41 = vor.u32 %v6908_v24, %v6267_v26  ;;  %v6011_v53 = vld [vmem:[#allocation8 + $0x78] sm:$0xf0] }
 0x46b   :  { %v4410_v19 = vmax.f32 %v3975_v28, 0.0  ;;  %4307 = vmatpush.bf16.msrb.mxu2 %v6270_v41  ;;  %v6395_v28 = vld [vmem:[#allocation8 + $0x378] sm:$0xf0] }
 0x46c   :  { %v3932_v48 = vpop.f32.mrf.mxu2 }
 0x46d   :  { %v3933_v20 = vadd.f32 %v3932_v48, %v3884_v33  ;;  %v3837_v56 = vpop.f32.mrf.mxu0  ;;  %v6844_v33 = vld [vmem:[#allocation8 + $0x6c] sm:$0xf] }
 0x46e   :  { %v3838_v15 = vadd.f32 %v3837_v56, %v7993_v57  ;;  %v3886_v12 = vpop.f32.mrf.mxu1  ;;  %v6014_v48 = vor.u32 %v6844_v33, %v6011_v53  ;;  %v6398_v56 = vor.u32 %v6940_v11, %v6395_v28  ;;  %v6904_v11 = vld [vmem:[#allocation8 + $0x24c] sm:$0xf] }
 0x470   :  { %v3887_v14 = vadd.f32 %v3886_v12, %v3838_v15  ;;  %v3976_v36 = vpop.f32.mrf.mxu3  ;;  %4032 = vmatmul.bf16.gmra.mxu0 %v8352_v2  ;;  %4081 = vmatmul.bf16.gmra.mxu1 %v8353_v31 }
 0x471   :  { %v3977_v27 = vadd.f32 %v3976_v36, %v3928_v8  ;;  %4130 = vmatmul.bf16.gmra.mxu2 %v7791_v40  ;;  %4209 = vmatpush.bf16.msrb.mxu0 %v6014_v48  ;;  %v6876_v36 = vld [vmem:[#allocation8 + $0x16c] sm:$0xf] }
 0x472   :  { %4356 = vmatpush.bf16.msrb.mxu3 %v6398_v56 }
 0x473   :  { %v4414_v1 = vmax.f32 %v3977_v27, 0.0 }
 0x474   :  { %v3935_v38 = vpop.f32.mrf.mxu2 }
 0x475   :  { %v3936_v42 = vadd.f32 %v3935_v38, %v3887_v14  ;;  %4174 = vmatmul.bf16.gmra.mxu3 %v7880_v4  ;;  %v3839_v59 = vpop.f32.mrf.mxu0  ;;  %v8024_v39 = vpack.c.bf16 %v4414_v1, %v4410_v19  ;;  %v6139_v14 = vld [vmem:[#allocation8 + $0x178] sm:$0xf0] }
 0x476   :  { %v3840_v8 = vadd.f32 %v3839_v59, %v7993_v57  ;;  %v3888_v54 = vpop.f32.mrf.mxu1  ;;  %v6142_v24 = vor.u32 %v6876_v36, %v6139_v14  ;;  %v6936_v36 = vld [vmem:[#allocation8 + $0x34c] sm:$0xf] }
 0x478   :  { %v3889_v15 = vadd.f32 %v3888_v54, %v3840_v8  ;;  %v3979_v12 = vpop.f32.mrf.mxu3  ;;  %4258 = vmatpush.bf16.msrb.mxu1 %v6142_v24  ;;  %v6251_v8 = vld [vmem:[#allocation8 + $0x258] sm:$0xf0] }
 0x479   :  { %v3980_v27 = vadd.f32 %v3979_v12, %v3931_v51  ;;  %v6254_v48 = vor.u32 %v6904_v11, %v6251_v8  ;;  %v5995_v12 = vld [vmem:[#allocation8 + $0x58] sm:$0xf0] }
 0x47b   :  { %v4418_v53 = vmax.f32 %v3980_v27, 0.0  ;;  %4308 = vmatpush.bf16.msrb.mxu2 %v6254_v48  ;;  %v6379_v27 = vld [vmem:[#allocation8 + $0x358] sm:$0xf0] }
 0x47c   :  { %v3937_v26 = vpop.f32.mrf.mxu2 }
 0x47d   :  { %v3938_v38 = vadd.f32 %v3937_v26, %v3889_v15  ;;  %v3842_v19 = vpop.f32.mrf.mxu0  ;;  %v6840_v15 = vld [vmem:[#allocation8 + $0x4c] sm:$0xf] }
 0x47e   :  { %v3843_v1 = vadd.f32 %v3842_v19, %v7993_v57  ;;  %v3891_v59 = vpop.f32.mrf.mxu1  ;;  %v5998_v26 = vor.u32 %v6840_v15, %v5995_v12  ;;  %v6382_v19 = vor.u32 %v6936_v36, %v6379_v27  ;;  %v6900_v36 = vld [vmem:[#allocation8 + $0x22c] sm:$0xf] }
 0x480   :  { %v3892_v10 = vadd.f32 %v3891_v59, %v3843_v1  ;;  %v3981_v41 = vpop.f32.mrf.mxu3  ;;  %4037 = vmatmul.bf16.gmra.mxu0 %v8354_v52  ;;  %4086 = vmatmul.bf16.gmra.mxu1 %v8355_v32 }
 0x481   :  { %v3982_v33 = vadd.f32 %v3981_v41, %v3933_v20  ;;  %4135 = vmatmul.bf16.gmra.mxu2 %v7805_v58  ;;  %4210 = vmatpush.bf16.msrb.mxu0 %v5998_v26  ;;  %v6872_v41 = vld [vmem:[#allocation8 + $0x14c] sm:$0xf] }
 0x482   :  { %4357 = vmatpush.bf16.msrb.mxu3 %v6382_v19 }
 0x483   :  { %v4422_v51 = vmax.f32 %v3982_v33, 0.0 }
 0x484   :  { %v3940_v54 = vpop.f32.mrf.mxu2 }
 0x485   :  { %v3941_v28 = vadd.f32 %v3940_v54, %v3892_v10  ;;  %4179 = vmatmul.bf16.gmra.mxu3 %v7890_v55  ;;  %v3844_v56 = vpop.f32.mrf.mxu0  ;;  %v8032_v14 = vpack.c.bf16 %v4422_v51, %v4418_v53  ;;  %v6123_v10 = vld [vmem:[#allocation8 + $0x158] sm:$0xf0] }
 0x486   :  { %v3845_v20 = vadd.f32 %v3844_v56, %v7993_v57  ;;  %v3893_v24 = vpop.f32.mrf.mxu1  ;;  %v6126_v11 = vor.u32 %v6872_v41, %v6123_v10  ;;  %v6932_v41 = vld [vmem:[#allocation8 + $0x32c] sm:$0xf] }
 0x488   :  { %v3894_v1 = vadd.f32 %v3893_v24, %v3845_v20  ;;  %v3984_v59 = vpop.f32.mrf.mxu3  ;;  %4259 = vmatpush.bf16.msrb.mxu1 %v6126_v11  ;;  %v6235_v20 = vld [vmem:[#allocation8 + $0x238] sm:$0xf0] }
 0x489   :  { %v3985_v33 = vadd.f32 %v3984_v59, %v3936_v42  ;;  %v6238_v26 = vor.u32 %v6900_v36, %v6235_v20  ;;  %v5979_v59 = vld [vmem:[#allocation8 + $0x38] sm:$0xf0] }
 0x48b   :  { %v4426_v12 = vmax.f32 %v3985_v33, 0.0  ;;  %4309 = vmatpush.bf16.msrb.mxu2 %v6238_v26  ;;  %v6363_v33 = vld [vmem:[#allocation8 + $0x338] sm:$0xf0] }
 0x48c   :  { %v3942_v8 = vpop.f32.mrf.mxu2  ;;  %v6091_v26 = vld [vmem:[#allocation8 + $0x118] sm:$0xf0] }
 0x48d   :  { %v3943_v54 = vadd.f32 %v3942_v8, %v3894_v1  ;;  %v3847_v53 = vpop.f32.mrf.mxu0  ;;  %v6836_v1 = vld [vmem:[#allocation8 + $0x2c] sm:$0xf] }
 0x48e   :  { %v3848_v51 = vadd.f32 %v3847_v53, %v7993_v57  ;;  %v3896_v56 = vpop.f32.mrf.mxu1  ;;  %v5982_v8 = vor.u32 %v6836_v1, %v5979_v59  ;;  %v6366_v53 = vor.u32 %v6932_v41, %v6363_v33  ;;  %v6896_v1 = vld [vmem:[#allocation8 + $0x20c] sm:$0xf] }
 0x490   :  { %v3897_v34 = vadd.f32 %v3896_v56, %v3848_v51  ;;  %v3986_v48 = vpop.f32.mrf.mxu3  ;;  %4042 = vmatmul.bf16.gmra.mxu0 %v8356_v60  ;;  %4091 = vmatmul.bf16.gmra.mxu1 %v8357_v62 }
 0x491   :  { %v3987_v15 = vadd.f32 %v3986_v48, %v3938_v38  ;;  %4140 = vmatmul.bf16.gmra.mxu2 %v7820_v43  ;;  %4211 = vmatpush.bf16.msrb.mxu0 %v5982_v8  ;;  %v6868_v48 = vld [vmem:[#allocation8 + $0x12c] sm:$0xf] }
 0x492   :  { %4358 = vmatpush.bf16.msrb.mxu3 %v6366_v53 }
 0x493   :  { %v4430_v42 = vmax.f32 %v3987_v15, 0.0 }
 0x494   :  { %v3945_v24 = vpop.f32.mrf.mxu2 }
 0x495   :  { %v3946_v27 = vadd.f32 %v3945_v24, %v3897_v34  ;;  %4184 = vmatmul.bf16.gmra.mxu3 %v7900_v47  ;;  %v3849_v19 = vpop.f32.mrf.mxu0  ;;  %v8040_v10 = vpack.c.bf16 %v4430_v42, %v4426_v12  ;;  %v6107_v34 = vld [vmem:[#allocation8 + $0x138] sm:$0xf0]  ;;  %v6832_v24 = vld [vmem:[#allocation8 + $0xc] sm:$0xf] }
 0x496   :  { %v3850_v38 = vadd.f32 %v3849_v19, %v7993_v57  ;;  %v3898_v11 = vpop.f32.mrf.mxu1  ;;  %v6110_v36 = vor.u32 %v6868_v48, %v6107_v34  ;;  %v5963_v12 = vld [vmem:[#allocation8 + $0x18] sm:$0xf0]  ;;  %v6864_v42 = vld [vmem:[#allocation8 + $0x10c] sm:$0xf] }
 0x497   :  { %8367 = vst [vmem:[#allocation33_spill] sm:$0xff] %v8040_v10  ;;  %v5966_v45 = vor.u32 %v6832_v24, %v5963_v12 }
 0x498   :  { %v3899_v51 = vadd.f32 %v3898_v11, %v3850_v38  ;;  %v3989_v56 = vpop.f32.mrf.mxu3  ;;  %4260 = vmatpush.bf16.msrb.mxu1 %v6110_v36  ;;  %v6094_v38 = vor.u32 %v6864_v42, %v6091_v26  ;;  %v6219_v11 = vld [vmem:[#allocation8 + $0x218] sm:$0xf0] }
 0x499   :  { %v3990_v15 = vadd.f32 %v3989_v56, %v3941_v28  ;;  %4212 = vmatpush.bf16.msrb.mxu0 %v5966_v45  ;;  %v6222_v8 = vor.u32 %v6896_v1, %v6219_v11  ;;  %v6928_v45 = vld [vmem:[#allocation8 + $0x30c] sm:$0xf] }
 0x49b   :  { %4310 = vmatpush.bf16.msrb.mxu2 %v6222_v8 }
 0x49c   :  { %v3947_v20 = vpop.f32.mrf.mxu2  ;;  %4261 = vmatpush.bf16.msrb.mxu1 %v6094_v38 }
 0x49d   :  { %v3948_v10 = vadd.f32 %v3947_v20, %v3899_v51  ;;  %v3852_v19 = vpop.f32.mrf.mxu0  ;;  %v4434_v51 = vmax.f32 %v3990_v15, 0.0  ;;  %v6347_v20 = vld [vmem:[#allocation8 + $0x318] sm:$0xf0] }
 0x49e   :  { %v3853_v59 = vadd.f32 %v3852_v19, %v7993_v57  ;;  %v3901_v41 = vpop.f32.mrf.mxu1 }
 0x4a0   :  { %v3902_v28 = vadd.f32 %v3901_v41, %v3853_v59  ;;  %v3991_v33 = vpop.f32.mrf.mxu3  ;;  %4047 = vmatmul.bf16.gmra.mxu0 %v8358_v25  ;;  %4096 = vmatmul.bf16.gmra.mxu1 %v8359_v0 }
 0x4a1   :  { %v3992_v53 = vadd.f32 %v3991_v33, %v3943_v54  ;;  %4145 = vmatmul.bf16.gmra.mxu2 %v7835_v13  ;;  %v6350_v54 = vor.u32 %v6928_v45, %v6347_v20 }
 0x4a3   :  { %v4438_v56 = vmax.f32 %v3992_v53, 0.0  ;;  %4359 = vmatpush.bf16.msrb.mxu3 %v6350_v54 }
 0x4a4   :  { %v3950_v48 = vpop.f32.mrf.mxu2 }
 0x4a5   :  { %v3951_v34 = vadd.f32 %v3950_v48, %v3902_v28  ;;  %4189 = vmatmul.bf16.gmra.mxu3 %v7910_v7  ;;  %v3854_v36 = vpop.f32.mrf.mxu0  ;;  %v8048_v24 = vpack.c.bf16 %v4438_v56, %v4434_v51 }
 0x4a6   :  { %v3855_v12 = vadd.f32 %v3854_v36, %v7993_v57  ;;  %v3903_v42 = vpop.f32.mrf.mxu1 }
 0x4a8   :  { %v3904_v19 = vadd.f32 %v3903_v42, %v3855_v12  ;;  %v3994_v26 = vpop.f32.mrf.mxu3 }
 0x4a9   :  { %v3995_v1 = vadd.f32 %v3994_v26, %v3946_v27 }
 0x4ab   :  { %v4442_v53 = vmax.f32 %v3995_v1, 0.0 }
 0x4ac   :  { %v3952_v59 = vpop.f32.mrf.mxu2 }
 0x4ad   :  { %v3953_v15 = vadd.f32 %v3952_v59, %v3904_v19  ;;  %v3857_v41 = vpop.f32.mrf.mxu0 }
 0x4ae   :  { %v3858_v38 = vadd.f32 %v3857_v41, %v7993_v57  ;;  %v3906_v11 = vpop.f32.mrf.mxu1 }
 0x4b0   :  { %v3907_v8 = vadd.f32 %v3906_v11, %v3858_v38  ;;  %v3996_v28 = vpop.f32.mrf.mxu3  ;;  %4052 = vmatmul.bf16.gmra.mxu0 %v8360_v50  ;;  %4101 = vmatmul.bf16.gmra.mxu1 %v8361_v23 }
 0x4b1   :  { %v3997_v33 = vadd.f32 %v3996_v28, %v3948_v10  ;;  %4150 = vmatmul.bf16.gmra.mxu2 %v7850_v16  ;;  %v8059_v10 = vld [vmem:[#allocation10] sm:$0xf] }
 0x4b2   :  { %v8062_v19 = vperm.slane %v8059_v10, 2 }
 0x4b3   :  { %v4446_v51 = vmax.f32 %v3997_v33, 0.0 }
 0x4b4   :  { %v3955_v56 = vpop.f32.mrf.mxu2 }
 0x4b5   :  { %v3956_v48 = vadd.f32 %v3955_v56, %v3907_v8  ;;  %4194 = vmatmul.bf16.gmra.mxu3 %v7920_v3  ;;  %v3859_v27 = vpop.f32.mrf.mxu0  ;;  %v8056_v36 = vpack.c.bf16 %v4446_v51, %v4442_v53  ;;  %v6982_v56 = vld [vmem:[#allocation11 + $0xb8] sm:$0xff] }
 0x4b6   :  { %v3860_v45 = vadd.f32 %v3859_v27, %v7993_v57  ;;  %v3908_v20 = vpop.f32.mrf.mxu1  ;;  %4855 = vmatpush.bf16.msra.mxu2 %v6982_v56  ;;  %v6981_v56 = vld [vmem:[#allocation11 + $0xb0] sm:$0xff] }
 0x4b8   :  { %v3909_v12 = vadd.f32 %v3908_v20, %v3860_v45  ;;  %v3999_v42 = vpop.f32.mrf.mxu3 }
 0x4b9   :  { %v4000_v54 = vadd.f32 %v3999_v42, %v3951_v34 }
 0x4ba   :  { %4856 = vmatpush.bf16.msra.mxu2 %v6981_v56 }
 0x4bb   :  { %v4450_v34 = vmax.f32 %v4000_v54, 0.0 }
 0x4bc   :  { %v3957_v26 = vpop.f32.mrf.mxu2 }
 0x4bd   :  { %v3958_v1 = vadd.f32 %v3957_v26, %v3909_v12  ;;  %v4018_v59 = vpop.f32.mrf.mxu0  ;;  %v6966_v12 = vld [vmem:[#allocation11 + $0x38] sm:$0xff] }
 0x4be   :  { %v4019_v41 = vadd.f32 %v4018_v59, %v8062_v19  ;;  %v4067_v38 = vpop.f32.mrf.mxu1  ;;  %4757 = vmatpush.bf16.msra.mxu0 %v6966_v12 }
 0x4c0   :  { %v4068_v11 = vadd.f32 %v4067_v38, %v4019_v41  ;;  %v4001_v8 = vpop.f32.mrf.mxu3  ;;  %4213 = vmatmul.bf16.vlgmr.msrb.gmra.mxu0 %v8346_v46  ;;  %4262 = vmatmul.bf16.vlgmr.msrb.gmra.mxu1 %v8347_v37  ;;  %v6990_v37 = vld [vmem:[#allocation11 + $0xf8] sm:$0xff] }
 0x4c1   :  { %v4002_v57 = vadd.f32 %v4001_v8, %v3953_v15  ;;  %4311 = vmatmul.bf16.vlgmr.msrb.gmra.mxu2 %v7749_v6  ;;  %4904 = vmatpush.bf16.msra.mxu3 %v6990_v37  ;;  %v6974_v6 = vld [vmem:[#allocation11 + $0x78] sm:$0xff] }
 0x4c2   :  { %4806 = vmatpush.bf16.msra.mxu1 %v6974_v6 }
 0x4c3   :  { %v4454_v28 = vmax.f32 %v4002_v57, 0.0 }
 0x4c4   :  { %v4116_v33 = vpop.f32.mrf.mxu2 }
 0x4c5   :  { %v4117_v53 = vadd.f32 %v4116_v33, %v4068_v11  ;;  %4199 = vmatmul.bf16.gmra.mxu3 %v7934_v22  ;;  %v4020_v51 = vpop.f32.mrf.mxu0  ;;  %v8069_v27 = vpack.c.bf16 %v4454_v28, %v4450_v34 }
 0x4c6   :  { %v4021_v45 = vadd.f32 %v4020_v51, %v8062_v19  ;;  %v4069_v20 = vpop.f32.mrf.mxu1 }
 0x4c8   :  { %v4070_v46 = vadd.f32 %v4069_v20, %v4021_v45  ;;  %v4004_v15 = vpop.f32.mrf.mxu3 }
 0x4c9   :  { %v4005_v42 = vadd.f32 %v4004_v15, %v3956_v48  ;;  %v6965_v15 = vld [vmem:[#allocation11 + $0x30] sm:$0xff] }
 0x4ca   :  { %4758 = vmatpush.bf16.msra.mxu0 %v6965_v15 }
 0x4cb   :  { %v4458_v48 = vmax.f32 %v4005_v42, 0.0 }
 0x4cc   :  { %v4118_v54 = vpop.f32.mrf.mxu2 }
 0x4cd   :  { %v4119_v26 = vadd.f32 %v4118_v54, %v4070_v46  ;;  %v4023_v59 = vpop.f32.mrf.mxu0 }
 0x4ce   :  { %v4024_v41 = vadd.f32 %v4023_v59, %v8062_v19  ;;  %v4072_v38 = vpop.f32.mrf.mxu1 }
 0x4d0   :  { %v4073_v11 = vadd.f32 %v4072_v38, %v4024_v41  ;;  %v4006_v8 = vpop.f32.mrf.mxu3  ;;  %4218 = vmatmul.bf16.gmra.mxu0 %v8348_v18  ;;  %4267 = vmatmul.bf16.gmra.mxu1 %v8349_v35  ;;  %v6989_v35 = vld [vmem:[#allocation11 + $0xf0] sm:$0xff] }
 0x4d1   :  { %v4007_v57 = vadd.f32 %v4006_v8, %v3958_v1  ;;  %4316 = vmatmul.bf16.gmra.mxu2 %v7763_v9  ;;  %4905 = vmatpush.bf16.msra.mxu3 %v6989_v35  ;;  %v6973_v9 = vld [vmem:[#allocation11 + $0x70] sm:$0xff] }
 0x4d2   :  { %4807 = vmatpush.bf16.msra.mxu1 %v6973_v9 }
 0x4d3   :  { %v4462_v34 = vmax.f32 %v4007_v57, 0.0 }
 0x4d4   :  { %v4121_v28 = vpop.f32.mrf.mxu2 }
 0x4d5   :  { %v4122_v33 = vadd.f32 %v4121_v28, %v4073_v11  ;;  %4360 = vmatmul.bf16.vlgmr.msrb.gmra.mxu3 %v7864_v17  ;;  %v4025_v51 = vpop.f32.mrf.mxu0  ;;  %v8077_v45 = vpack.c.bf16 %v4462_v34, %v4458_v48  ;;  %v6980_v28 = vld [vmem:[#allocation11 + $0xa8] sm:$0xff] }
 0x4d6   :  { %v4026_v20 = vadd.f32 %v4025_v51, %v8062_v19  ;;  %v4074_v46 = vpop.f32.mrf.mxu1  ;;  %4857 = vmatpush.bf16.msra.mxu2 %v6980_v28 }
 0x4d8   :  { %v4075_v18 = vadd.f32 %v4074_v46, %v4026_v20  ;;  %v4165_v1 = vpop.f32.mrf.mxu3  ;;  %v6964_v20 = vld [vmem:[#allocation11 + $0x28] sm:$0xff] }
 0x4d9   :  { %v4166_v12 = vadd.f32 %v4165_v1, %v4117_v53  ;;  %4759 = vmatpush.bf16.msra.mxu0 %v6964_v20 }
 0x4db   :  { %v4403_v53 = vmax.f32 %v4166_v12, 0.0 }
 0x4dc   :  { %v4123_v37 = vpop.f32.mrf.mxu2 }
 0x4dd   :  { %v4124_v42 = vadd.f32 %v4123_v37, %v4075_v18  ;;  %v4028_v6 = vpop.f32.mrf.mxu0 }
 0x4de   :  { %v4029_v17 = vadd.f32 %v4028_v6, %v8062_v19  ;;  %v4077_v54 = vpop.f32.mrf.mxu1 }
 0x4e0   :  { %v4078_v59 = vadd.f32 %v4077_v54, %v4029_v17  ;;  %v4167_v41 = vpop.f32.mrf.mxu3  ;;  %4223 = vmatmul.bf16.gmra.mxu0 %v8350_v5  ;;  %4272 = vmatmul.bf16.gmra.mxu1 %v8351_v44  ;;  %v6988_v44 = vld [vmem:[#allocation11 + $0xe8] sm:$0xff] }
 0x4e1   :  { %v4168_v38 = vadd.f32 %v4167_v41, %v4119_v26  ;;  %4321 = vmatmul.bf16.gmra.mxu2 %v7777_v29  ;;  %4906 = vmatpush.bf16.msra.mxu3 %v6988_v44  ;;  %v6972_v29 = vld [vmem:[#allocation11 + $0x68] sm:$0xff]  ;;  %v6979_v41 = vld [vmem:[#allocation11 + $0xa0] sm:$0xff] }
 0x4e2   :  { %4808 = vmatpush.bf16.msra.mxu1 %v6972_v29  ;;  %4858 = vmatpush.bf16.msra.mxu2 %v6979_v41 }
 0x4e3   :  { %v4407_v11 = vmax.f32 %v4168_v38, 0.0 }
 0x4e4   :  { %v4126_v8 = vpop.f32.mrf.mxu2 }
 0x4e5   :  { %v8084_v57 = vpack.c.bf16 %v4407_v11, %v4403_v53  ;;  %v4127_v48 = vadd.f32 %v4126_v8, %v4078_v59  ;;  %4365 = vmatmul.bf16.gmra.mxu3 %v7872_v63  ;;  %v4030_v34 = vpop.f32.mrf.mxu0  ;;  %v6963_v8 = vld [vmem:[#allocation11 + $0x20] sm:$0xff] }
 0x4e6   :  { %v4031_v51 = vadd.f32 %v4030_v34, %v8062_v19  ;;  %v4079_v56 = vpop.f32.mrf.mxu1  ;;  %4760 = vmatpush.bf16.msra.mxu0 %v6963_v8 }
 0x4e8   :  { %v4080_v5 = vadd.f32 %v4079_v56, %v4031_v51  ;;  %v4170_v26 = vpop.f32.mrf.mxu3 }
 0x4e9   :  { %v4171_v46 = vadd.f32 %v4170_v26, %v4122_v33 }
 0x4eb   :  { %v4411_v33 = vmax.f32 %v4171_v46, 0.0 }
 0x4ec   :  { %v4128_v18 = vpop.f32.mrf.mxu2 }
 0x4ed   :  { %v4129_v1 = vadd.f32 %v4128_v18, %v4080_v5  ;;  %v4033_v15 = vpop.f32.mrf.mxu0 }
 0x4ee   :  { %v4034_v63 = vadd.f32 %v4033_v15, %v8062_v19  ;;  %v4082_v35 = vpop.f32.mrf.mxu1 }
 0x4f0   :  { %v4083_v12 = vadd.f32 %v4082_v35, %v4034_v63  ;;  %v4172_v9 = vpop.f32.mrf.mxu3  ;;  %4228 = vmatmul.bf16.gmra.mxu0 %v8352_v2  ;;  %4277 = vmatmul.bf16.gmra.mxu1 %v8353_v31  ;;  %v6987_v31 = vld [vmem:[#allocation11 + $0xe0] sm:$0xff]  ;;  %v6978_v63 = vld [vmem:[#allocation11 + $0x98] sm:$0xff] }
 0x4f1   :  { %v4173_v37 = vadd.f32 %v4172_v9, %v4124_v42  ;;  %4326 = vmatmul.bf16.gmra.mxu2 %v7791_v40  ;;  %4907 = vmatpush.bf16.msra.mxu3 %v6987_v31  ;;  %v6971_v40 = vld [vmem:[#allocation11 + $0x60] sm:$0xff] }
 0x4f2   :  { %4809 = vmatpush.bf16.msra.mxu1 %v6971_v40  ;;  %4859 = vmatpush.bf16.msra.mxu2 %v6978_v63  ;;  %v6977_v40 = vld [vmem:[#allocation11 + $0x90] sm:$0xff]  ;;  %v6967_v63 = vld [vmem:[#allocation11 + $0x40] sm:$0xff] }
 0x4f3   :  { %v4415_v6 = vmax.f32 %v4173_v37, 0.0  ;;  %v6962_v37 = vld [vmem:[#allocation11 + $0x18] sm:$0xff] }
 0x4f4   :  { %v4131_v17 = vpop.f32.mrf.mxu2  ;;  %4761 = vmatpush.bf16.msra.mxu0 %v6962_v37 }
 0x4f5   :  { %v4132_v54 = vadd.f32 %v4131_v17, %v4083_v12  ;;  %4370 = vmatmul.bf16.gmra.mxu3 %v7880_v4  ;;  %v4035_v59 = vpop.f32.mrf.mxu0  ;;  %v8093_v38 = vpack.c.bf16 %v4415_v6, %v4411_v33 }
 0x4f6   :  { %v4036_v53 = vadd.f32 %v4035_v59, %v8062_v19  ;;  %v4084_v11 = vpop.f32.mrf.mxu1  ;;  %4860 = vmatpush.bf16.msra.mxu2 %v6977_v40 }
 0x4f8   :  { %v4085_v2 = vadd.f32 %v4084_v11, %v4036_v53  ;;  %v4175_v42 = vpop.f32.mrf.mxu3 }
 0x4f9   :  { %v4176_v34 = vadd.f32 %v4175_v42, %v4127_v48 }
 0x4fb   :  { %v4419_v48 = vmax.f32 %v4176_v34, 0.0 }
 0x4fc   :  { %v4133_v28 = vpop.f32.mrf.mxu2 }
 0x4fd   :  { %v4134_v51 = vadd.f32 %v4133_v28, %v4085_v2  ;;  %v4038_v56 = vpop.f32.mrf.mxu0  ;;  %v6961_v28 = vld [vmem:[#allocation11 + $0x10] sm:$0xff] }
 0x4fe   :  { %v4039_v4 = vadd.f32 %v4038_v56, %v8062_v19  ;;  %v4087_v5 = vpop.f32.mrf.mxu1  ;;  %v6969_v56 = vld [vmem:[#allocation11 + $0x50] sm:$0xff]  ;;  %4762 = vmatpush.bf16.msra.mxu0 %v6961_v28 }
 0x500   :  { %v4088_v26 = vadd.f32 %v4087_v5, %v4039_v4  ;;  %v4177_v20 = vpop.f32.mrf.mxu3  ;;  %4233 = vmatmul.bf16.gmra.mxu0 %v8354_v52  ;;  %4282 = vmatmul.bf16.gmra.mxu1 %v8355_v32  ;;  %v6986_v32 = vld [vmem:[#allocation11 + $0xd8] sm:$0xff] }
 0x501   :  { %v4178_v44 = vadd.f32 %v4177_v20, %v4129_v1  ;;  %4331 = vmatmul.bf16.gmra.mxu2 %v7805_v58  ;;  %4908 = vmatpush.bf16.msra.mxu3 %v6986_v32  ;;  %v6970_v58 = vld [vmem:[#allocation11 + $0x58] sm:$0xff]  ;;  %v6960_v20 = vld [vmem:[#allocation11 + $0x8] sm:$0xff] }
 0x502   :  { %4810 = vmatpush.bf16.msra.mxu1 %v6970_v58  ;;  %4763 = vmatpush.bf16.msra.mxu0 %v6960_v20 }
 0x503   :  { %v4423_v46 = vmax.f32 %v4178_v44, 0.0  ;;  %v6968_v44 = vld [vmem:[#allocation11 + $0x48] sm:$0xff] }
 0x504   :  { %v4136_v29 = vpop.f32.mrf.mxu2 }
 0x505   :  { %v4137_v18 = vadd.f32 %v4136_v29, %v4088_v26  ;;  %4375 = vmatmul.bf16.gmra.mxu3 %v7890_v55  ;;  %v4040_v15 = vpop.f32.mrf.mxu0  ;;  %v8101_v35 = vpack.c.bf16 %v4423_v46, %v4419_v48  ;;  %v6976_v48 = vld [vmem:[#allocation11 + $0x88] sm:$0xff] }
 0x506   :  { %v4041_v12 = vadd.f32 %v4040_v15, %v8062_v19  ;;  %v4089_v9 = vpop.f32.mrf.mxu1  ;;  %4811 = vmatpush.bf16.msra.mxu1 %v6969_v56  ;;  %4861 = vmatpush.bf16.msra.mxu2 %v6976_v48  ;;  %v6959_v15 = vld [vmem:[#allocation11] sm:$0xff] }
 0x507   :  { %4764 = vmatpush.bf16.msra.mxu0 %v6959_v15 }
 0x508   :  { %v4090_v52 = vadd.f32 %v4089_v9, %v4041_v12  ;;  %v4180_v1 = vpop.f32.mrf.mxu3  ;;  %v6975_v12 = vld [vmem:[#allocation11 + $0x80] sm:$0xff] }
 0x509   :  { %v4181_v33 = vadd.f32 %v4180_v1, %v4132_v54 }
 0x50a   :  { %4812 = vmatpush.bf16.msra.mxu1 %v6968_v44  ;;  %4862 = vmatpush.bf16.msra.mxu2 %v6975_v12 }
 0x50b   :  { %v4427_v54 = vmax.f32 %v4181_v33, 0.0 }
 0x50c   :  { %v4138_v6 = vpop.f32.mrf.mxu2 }
 0x50d   :  { %v4139_v17 = vadd.f32 %v4138_v6, %v4090_v52  ;;  %v4043_v59 = vpop.f32.mrf.mxu0 }
 0x50e   :  { %v4044_v55 = vadd.f32 %v4043_v59, %v8062_v19  ;;  %v4092_v41 = vpop.f32.mrf.mxu1  ;;  %4813 = vmatpush.bf16.msra.mxu1 %v6967_v63 }
 0x510   :  { %v4093_v53 = vadd.f32 %v4092_v41, %v4044_v55  ;;  %v4182_v11 = vpop.f32.mrf.mxu3  ;;  %4238 = vmatmul.bf16.gmra.mxu0 %v8356_v60  ;;  %4287 = vmatmul.bf16.gmra.mxu1 %v8357_v62 }
 0x511   :  { %v4183_v2 = vadd.f32 %v4182_v11, %v4134_v51  ;;  %4336 = vmatmul.bf16.gmra.mxu2 %v7820_v43  ;;  %v6985_v43 = vld [vmem:[#allocation11 + $0xd0] sm:$0xff] }
 0x512   :  { %4909 = vmatpush.bf16.msra.mxu3 %v6985_v43 }
 0x513   :  { %v4431_v42 = vmax.f32 %v4183_v2, 0.0  ;;  %v6984_v2 = vld [vmem:[#allocation11 + $0xc8] sm:$0xff] }
 0x514   :  { %v4141_v8 = vpop.f32.mrf.mxu2 }
 0x515   :  { %v4142_v31 = vadd.f32 %v4141_v8, %v4093_v53  ;;  %4380 = vmatmul.bf16.gmra.mxu3 %v7900_v47  ;;  %v4045_v34 = vpop.f32.mrf.mxu0  ;;  %v8109_v4 = vpack.c.bf16 %v4431_v42, %v4427_v54 }
 0x516   :  { %v4046_v5 = vadd.f32 %v4045_v34, %v8062_v19  ;;  %v4094_v60 = vpop.f32.mrf.mxu1  ;;  %4910 = vmatpush.bf16.msra.mxu3 %v6984_v2 }
 0x518   :  { %v4095_v62 = vadd.f32 %v4094_v60, %v4046_v5  ;;  %v4185_v51 = vpop.f32.mrf.mxu3 }
 0x519   :  { %v4186_v26 = vadd.f32 %v4185_v51, %v4137_v18 }
 0x51b   :  { %v4435_v32 = vmax.f32 %v4186_v26, 0.0 }
 0x51c   :  { %v4143_v47 = vpop.f32.mrf.mxu2 }
 0x51d   :  { %v4144_v46 = vadd.f32 %v4143_v47, %v4095_v62  ;;  %v4048_v29 = vpop.f32.mrf.mxu0 }
 0x51e   :  { %v4049_v9 = vadd.f32 %v4048_v29, %v8062_v19  ;;  %v4097_v52 = vpop.f32.mrf.mxu1 }
 0x520   :  { %v4098_v1 = vadd.f32 %v4097_v52, %v4049_v9  ;;  %v4187_v18 = vpop.f32.mrf.mxu3  ;;  %4243 = vmatmul.bf16.gmra.mxu0 %v8358_v25  ;;  %4292 = vmatmul.bf16.gmra.mxu1 %v8359_v0 }
 0x521   :  { %v4188_v37 = vadd.f32 %v4187_v18, %v4139_v17  ;;  %4341 = vmatmul.bf16.gmra.mxu2 %v7835_v13 }
 0x523   :  { %v4439_v33 = vmax.f32 %v4188_v37, 0.0 }
 0x524   :  { %v4146_v58 = vpop.f32.mrf.mxu2 }
 0x525   :  { %v4147_v6 = vadd.f32 %v4146_v58, %v4098_v1  ;;  %4385 = vmatmul.bf16.gmra.mxu3 %v7910_v7  ;;  %v4050_v59 = vpop.f32.mrf.mxu0  ;;  %v8117_v55 = vpack.c.bf16 %v4439_v33, %v4435_v32 }
 0x526   :  { %v4051_v41 = vadd.f32 %v4050_v59, %v8062_v19  ;;  %v4099_v53 = vpop.f32.mrf.mxu1 }
 0x528   :  { %v4100_v11 = vadd.f32 %v4099_v53, %v4051_v41  ;;  %v4190_v25 = vpop.f32.mrf.mxu3 }
 0x529   :  { %v4191_v17 = vadd.f32 %v4190_v25, %v4142_v31 }
 0x52b   :  { %v4443_v28 = vmax.f32 %v4191_v17, 0.0 }
 0x52c   :  { %v4148_v0 = vpop.f32.mrf.mxu2 }
 0x52d   :  { %v4149_v54 = vadd.f32 %v4148_v0, %v4100_v11  ;;  %v4053_v13 = vpop.f32.mrf.mxu0 }
 0x52e   :  { %v4054_v42 = vadd.f32 %v4053_v13, %v8062_v19  ;;  %v4102_v8 = vpop.f32.mrf.mxu1 }
 0x530   :  { %v4103_v34 = vadd.f32 %v4102_v8, %v4054_v42  ;;  %v4192_v40 = vpop.f32.mrf.mxu3  ;;  %4248 = vmatmul.bf16.gmra.mxu0 %v8360_v50  ;;  %4297 = vmatmul.bf16.gmra.mxu1 %v8361_v23  ;;  %v6983_v50 = vld [vmem:[#allocation11 + $0xc0] sm:$0xff] }
 0x531   :  { %v4193_v7 = vadd.f32 %v4192_v40, %v4144_v46  ;;  %4346 = vmatmul.bf16.gmra.mxu2 %v7850_v16  ;;  %4911 = vmatpush.bf16.msra.mxu3 %v6983_v50 }
 0x533   :  { %v4447_v56 = vmax.f32 %v4193_v7, 0.0 }
 0x534   :  { %v4151_v5 = vpop.f32.mrf.mxu2 }
 0x535   :  { %v4152_v31 = vadd.f32 %v4151_v5, %v4103_v34  ;;  %4390 = vmatmul.bf16.gmra.mxu3 %v7920_v3  ;;  %v4055_v60 = vpop.f32.mrf.mxu0  ;;  %v8125_v62 = vpack.c.bf16 %v4447_v56, %v4443_v28 }
 0x536   :  { %v4056_v51 = vadd.f32 %v4055_v60, %v8062_v19  ;;  %v4104_v43 = vpop.f32.mrf.mxu1 }
 0x538   :  { %v4105_v26 = vadd.f32 %v4104_v43, %v4056_v51  ;;  %v4195_v20 = vpop.f32.mrf.mxu3 }
 0x539   :  { %v4196_v44 = vadd.f32 %v4195_v20, %v4147_v6 }
 0x53b   :  { %v4451_v3 = vmax.f32 %v4196_v44, 0.0 }
 0x53c   :  { %v4153_v23 = vpop.f32.mrf.mxu2 }
 0x53d   :  { %v4154_v48 = vadd.f32 %v4153_v23, %v4105_v26  ;;  %v4214_v16 = vpop.f32.mrf.mxu0  ;;  %v8368_v23 = vld [vmem:[#allocation28_spill] sm:$0xff] }
 0x53e   :  { %v4263_v47 = vpop.f32.mrf.mxu1 }
 0x540   :  { %v4197_v46 = vpop.f32.mrf.mxu3  ;;  %4765 = vmatmul.bf16.vlgmr.msra.gmra.mxu0 %v7948_v21  ;;  %4814 = vmatmul.bf16.vlgmr.msra.gmra.mxu1 %v8015_v61 }
 0x541   :  { %v4198_v29 = vadd.f32 %v4197_v46, %v4149_v54  ;;  %4863 = vmatmul.bf16.vlgmr.msra.gmra.mxu2 %v8084_v57  ;;  %v8138_v57 = vperm.slane %v8059_v10, 3 }
 0x543   :  { %v4455_v19 = vmax.f32 %v4198_v29, 0.0  ;;  %v4215_v53 = vadd.f32 %v4214_v16, %v8138_v57  ;;  %v8369_v16 = vld [vmem:[#allocation33_spill] sm:$0xff] }
 0x544   :  { %v4312_v15 = vpop.f32.mrf.mxu2 }
 0x545   :  { %4395 = vmatmul.bf16.gmra.mxu3 %v7934_v22  ;;  %v4216_v63 = vpop.f32.mrf.mxu0  ;;  %v8132_v12 = vpack.c.bf16 %v4455_v19, %v4451_v3  ;;  %v4264_v25 = vadd.f32 %v4263_v47, %v4215_v53 }
 0x546   :  { %v4265_v9 = vpop.f32.mrf.mxu1 }
 0x548   :  { %v4200_v52 = vpop.f32.mrf.mxu3 }
 0x549   :  { %v4201_v1 = vadd.f32 %v4200_v52, %v4152_v31 }
 0x54b   :  { %v4459_v22 = vmax.f32 %v4201_v1, 0.0 }
 0x54c   :  { %v4314_v18 = vpop.f32.mrf.mxu2 }
 0x54d   :  { %v4219_v37 = vpop.f32.mrf.mxu0 }
 0x54e   :  { %v4268_v32 = vpop.f32.mrf.mxu1  ;;  %v4220_v5 = vadd.f32 %v4219_v37, %v8138_v57 }
 0x550   :  { %v4202_v21 = vpop.f32.mrf.mxu3  ;;  %4770 = vmatmul.bf16.gmra.mxu0 %v7957_v30  ;;  %4819 = vmatmul.bf16.gmra.mxu1 %v8024_v39  ;;  %v4217_v30 = vadd.f32 %v4216_v63, %v8138_v57  ;;  %v4313_v39 = vadd.f32 %v4312_v15, %v4264_v25  ;;  %v4269_v51 = vadd.f32 %v4268_v32, %v4220_v5 }
 0x551   :  { %v4203_v61 = vadd.f32 %v4202_v21, %v4154_v48  ;;  %4868 = vmatmul.bf16.gmra.mxu2 %v8093_v38 }
 0x552   :  { %v4266_v17 = vadd.f32 %v4265_v9, %v4217_v30 }
 0x553   :  { %v4463_v33 = vmax.f32 %v4203_v61, 0.0 }
 0x554   :  { %v4317_v58 = vpop.f32.mrf.mxu2  ;;  %v4315_v10 = vadd.f32 %v4314_v18, %v4266_v17 }
 0x555   :  { %v4221_v6 = vpop.f32.mrf.mxu0  ;;  %v8140_v59 = vpack.c.bf16 %v4463_v33, %v4459_v22 }
 0x556   :  { %v4270_v41 = vpop.f32.mrf.mxu1  ;;  %v4222_v60 = vadd.f32 %v4221_v6, %v8138_v57 }
 0x558   :  { %v4361_v11 = vpop.f32.mrf.mxu3  ;;  %v4271_v26 = vadd.f32 %v4270_v41, %v4222_v60 }
 0x559   :  { %v4362_v54 = vadd.f32 %v4361_v11, %v4313_v39 }
 0x55b   :  { %v4404_v8 = vmax.f32 %v4362_v54, 0.0 }
 0x55c   :  { %v4319_v2 = vpop.f32.mrf.mxu2 }
 0x55d   :  { %v4224_v38 = vpop.f32.mrf.mxu0  ;;  %v4320_v50 = vadd.f32 %v4319_v2, %v4271_v26 }
 0x55e   :  { %v4273_v0 = vpop.f32.mrf.mxu1  ;;  %v4225_v63 = vadd.f32 %v4224_v38, %v8138_v57 }
 0x560   :  { %v4363_v13 = vpop.f32.mrf.mxu3  ;;  %4775 = vmatmul.bf16.gmra.mxu0 %v7965_v49  ;;  %4824 = vmatmul.bf16.gmra.mxu1 %v8032_v14  ;;  %v4318_v49 = vadd.f32 %v4317_v58, %v4269_v51  ;;  %v4274_v1 = vadd.f32 %v4273_v0, %v4225_v63  ;;  %v8370_v58 = vld [vmem:[#allocation29_spill] sm:$0xff] }
 0x561   :  { %v4364_v42 = vadd.f32 %v4363_v13, %v4315_v10  ;;  %4873 = vmatmul.bf16.gmra.mxu2 %v8101_v35 }
 0x563   :  { %v4408_v34 = vmax.f32 %v4364_v42, 0.0 }
 0x564   :  { %v4322_v40 = vpop.f32.mrf.mxu2 }
 0x565   :  { %v4468_v7 = vpack.c.bf16 %v4408_v34, %v4404_v8  ;;  %v4226_v28 = vpop.f32.mrf.mxu0  ;;  %v4323_v37 = vadd.f32 %v4322_v40, %v4274_v1  ;;  %v8371_v40 = vld [vmem:[#allocation30_spill] sm:$0xff] }
 0x566   :  { %v4275_v56 = vpop.f32.mrf.mxu1  ;;  %v4227_v52 = vadd.f32 %v4226_v28, %v8138_v57 }
 0x567   :  { %4912 = vmatmul.bf16.vlgmr.msra.gmra.mxu3 %v4468_v7 }
 0x568   :  { %v4366_v31 = vpop.f32.mrf.mxu3  ;;  %v4276_v32 = vadd.f32 %v4275_v56, %v4227_v52 }
 0x569   :  { %v4367_v35 = vadd.f32 %v4366_v31, %v4318_v49 }
 0x56b   :  { %v4412_v47 = vmax.f32 %v4367_v35, 0.0 }
 0x56c   :  { %v4324_v43 = vpop.f32.mrf.mxu2 }
 0x56d   :  { %v4229_v20 = vpop.f32.mrf.mxu0  ;;  %v4325_v22 = vadd.f32 %v4324_v43, %v4276_v32 }
 0x56e   :  { %v4278_v14 = vpop.f32.mrf.mxu1  ;;  %v4230_v39 = vadd.f32 %v4229_v20, %v8138_v57 }
 0x570   :  { %v4368_v44 = vpop.f32.mrf.mxu3  ;;  %4780 = vmatmul.bf16.gmra.mxu0 %v8368_v23  ;;  %4829 = vmatmul.bf16.gmra.mxu1 %v8369_v16  ;;  %v4279_v0 = vadd.f32 %v4278_v14, %v4230_v39  ;;  %v8372_v16 = vld [vmem:[#allocation31_spill] sm:$0xff] }
 0x571   :  { %v4369_v48 = vadd.f32 %v4368_v44, %v4320_v50  ;;  %4878 = vmatmul.bf16.gmra.mxu2 %v8109_v4 }
 0x573   :  { %v4416_v46 = vmax.f32 %v4369_v48, 0.0 }
 0x574   :  { %v4327_v29 = vpop.f32.mrf.mxu2 }
 0x575   :  { %v4231_v3 = vpop.f32.mrf.mxu0  ;;  %v4472_v19 = vpack.c.bf16 %v4416_v46, %v4412_v47  ;;  %v4328_v54 = vadd.f32 %v4327_v29, %v4279_v0 }
 0x576   :  { %v4280_v15 = vpop.f32.mrf.mxu1  ;;  %v4232_v38 = vadd.f32 %v4231_v3, %v8138_v57 }
 0x577   :  { %4917 = vmatmul.bf16.gmra.mxu3 %v4472_v19 }
 0x578   :  { %v4371_v9 = vpop.f32.mrf.mxu3  ;;  %v4281_v13 = vadd.f32 %v4280_v15, %v4232_v38 }
 0x579   :  { %v4372_v4 = vadd.f32 %v4371_v9, %v4323_v37 }
 0x57b   :  { %v4420_v41 = vmax.f32 %v4372_v4, 0.0  ;;  %v8373_v4 = vld [vmem:[#allocation32_spill] sm:$0xff] }
 0x57c   :  { %v4329_v18 = vpop.f32.mrf.mxu2 }
 0x57d   :  { %v4234_v21 = vpop.f32.mrf.mxu0  ;;  %v4330_v8 = vadd.f32 %v4329_v18, %v4281_v13 }
 0x57e   :  { %v4283_v61 = vpop.f32.mrf.mxu1  ;;  %v4235_v43 = vadd.f32 %v4234_v21, %v8138_v57 }
 0x580   :  { %v4373_v33 = vpop.f32.mrf.mxu3  ;;  %4785 = vmatmul.bf16.gmra.mxu0 %v8370_v58  ;;  %4834 = vmatmul.bf16.gmra.mxu1 %v8048_v24  ;;  %v4284_v20 = vadd.f32 %v4283_v61, %v4235_v43 }
 0x581   :  { %v4374_v6 = vadd.f32 %v4373_v33, %v4325_v22  ;;  %4883 = vmatmul.bf16.gmra.mxu2 %v8117_v55 }
 0x583   :  { %v4424_v53 = vmax.f32 %v4374_v6, 0.0 }
 0x584   :  { %v4332_v11 = vpop.f32.mrf.mxu2 }
 0x585   :  { %v4236_v30 = vpop.f32.mrf.mxu0  ;;  %v4476_v25 = vpack.c.bf16 %v4424_v53, %v4420_v41  ;;  %v4333_v50 = vadd.f32 %v4332_v11, %v4284_v20 }
 0x586   :  { %v4285_v2 = vpop.f32.mrf.mxu1  ;;  %v4237_v26 = vadd.f32 %v4236_v30, %v8138_v57 }
 0x587   :  { %4922 = vmatmul.bf16.gmra.mxu3 %v4476_v25 }
 0x588   :  { %v4376_v17 = vpop.f32.mrf.mxu3  ;;  %v4286_v35 = vadd.f32 %v4285_v2, %v4237_v26 }
 0x589   :  { %v4377_v55 = vadd.f32 %v4376_v17, %v4328_v54 }
 0x58b   :  { %v4428_v28 = vmax.f32 %v4377_v55, 0.0 }
 0x58c   :  { %v4334_v10 = vpop.f32.mrf.mxu2 }
 0x58d   :  { %v4239_v42 = vpop.f32.mrf.mxu0 }
 0x58e   :  { %v4288_v24 = vpop.f32.mrf.mxu1  ;;  %v4240_v63 = vadd.f32 %v4239_v42, %v8138_v57 }
 0x590   :  { %v4378_v34 = vpop.f32.mrf.mxu3  ;;  %4790 = vmatmul.bf16.gmra.mxu0 %v8371_v40  ;;  %4839 = vmatmul.bf16.gmra.mxu1 %v8056_v36  ;;  %v4335_v36 = vadd.f32 %v4334_v10, %v4286_v35  ;;  %v4289_v18 = vadd.f32 %v4288_v24, %v4240_v63 }
 0x591   :  { %v4379_v7 = vadd.f32 %v4378_v34, %v4330_v8  ;;  %4888 = vmatmul.bf16.gmra.mxu2 %v8125_v62 }
 0x593   :  { %v4432_v56 = vmax.f32 %v4379_v7, 0.0 }
 0x594   :  { %v4337_v5 = vpop.f32.mrf.mxu2 }
 0x595   :  { %v4241_v31 = vpop.f32.mrf.mxu0  ;;  %v4480_v60 = vpack.c.bf16 %v4432_v56, %v4428_v28  ;;  %v4338_v32 = vadd.f32 %v4337_v5, %v4289_v18 }
 0x596   :  { %v4290_v51 = vpop.f32.mrf.mxu1  ;;  %v4242_v52 = vadd.f32 %v4241_v31, %v8138_v57 }
 0x597   :  { %4927 = vmatmul.bf16.gmra.mxu3 %v4480_v60 }
 0x598   :  { %v4381_v49 = vpop.f32.mrf.mxu3  ;;  %v4291_v21 = vadd.f32 %v4290_v51, %v4242_v52 }
 0x599   :  { %v4382_v23 = vadd.f32 %v4381_v49, %v4333_v50 }
 0x59b   :  { %v4436_v46 = vmax.f32 %v4382_v23, 0.0 }
 0x59c   :  { %v4339_v14 = vpop.f32.mrf.mxu2 }
 0x59d   :  { %v4244_v44 = vpop.f32.mrf.mxu0 }
 0x59e   :  { %v4293_v62 = vpop.f32.mrf.mxu1  ;;  %v4245_v30 = vadd.f32 %v4244_v44, %v8138_v57 }
 0x5a0   :  { %v4383_v48 = vpop.f32.mrf.mxu3  ;;  %4795 = vmatmul.bf16.gmra.mxu0 %v8372_v16  ;;  %4844 = vmatmul.bf16.gmra.mxu1 %v8069_v27  ;;  %v4340_v27 = vadd.f32 %v4339_v14, %v4291_v21  ;;  %v4294_v17 = vadd.f32 %v4293_v62, %v4245_v30 }
 0x5a1   :  { %v4384_v47 = vadd.f32 %v4383_v48, %v4335_v36  ;;  %4893 = vmatmul.bf16.gmra.mxu2 %v8132_v12 }
 0x5a3   :  { %v4440_v29 = vmax.f32 %v4384_v47, 0.0 }
 0x5a4   :  { %v4342_v3 = vpop.f32.mrf.mxu2 }
 0x5a5   :  { %v4484_v19 = vpack.c.bf16 %v4440_v29, %v4436_v46  ;;  %v4246_v15 = vpop.f32.mrf.mxu0  ;;  %v4343_v38 = vadd.f32 %v4342_v3, %v4294_v17 }
 0x5a6   :  { %v4295_v1 = vpop.f32.mrf.mxu1  ;;  %v4247_v39 = vadd.f32 %v4246_v15, %v8138_v57 }
 0x5a7   :  { %4932 = vmatmul.bf16.gmra.mxu3 %v4484_v19 }
 0x5a8   :  { %v4386_v9 = vpop.f32.mrf.mxu3  ;;  %v4296_v0 = vadd.f32 %v4295_v1, %v4247_v39 }
 0x5a9   :  { %v4387_v22 = vadd.f32 %v4386_v9, %v4338_v32 }
 0x5ab   :  { %v4444_v58 = vmax.f32 %v4387_v22, 0.0 }
 0x5ac   :  { %v4344_v37 = vpop.f32.mrf.mxu2 }
 0x5ad   :  { %v4249_v61 = vpop.f32.mrf.mxu0 }
 0x5ae   :  { %v4298_v6 = vpop.f32.mrf.mxu1  ;;  %v4250_v40 = vadd.f32 %v4249_v61, %v8138_v57 }
 0x5b0   :  { %v4388_v12 = vpop.f32.mrf.mxu3  ;;  %4800 = vmatmul.bf16.gmra.mxu0 %v8373_v4  ;;  %4849 = vmatmul.bf16.gmra.mxu1 %v8077_v45  ;;  %v4345_v45 = vadd.f32 %v4344_v37, %v4296_v0  ;;  %v4299_v31 = vadd.f32 %v4298_v6, %v4250_v40 }
 0x5b1   :  { %v4389_v33 = vadd.f32 %v4388_v12, %v4340_v27  ;;  %4898 = vmatmul.bf16.gmra.mxu2 %v8140_v59 }
 0x5b3   :  { %v4448_v41 = vmax.f32 %v4389_v33, 0.0 }
 0x5b4   :  { %v4347_v53 = vpop.f32.mrf.mxu2 }
 0x5b5   :  { %v4488_v11 = vpack.c.bf16 %v4448_v41, %v4444_v58  ;;  %v4251_v25 = vpop.f32.mrf.mxu0  ;;  %v4348_v51 = vadd.f32 %v4347_v53, %v4299_v31 }
 0x5b6   :  { %v4300_v10 = vpop.f32.mrf.mxu1  ;;  %v4252_v5 = vadd.f32 %v4251_v25, %v8138_v57  ;;  %v8179_v57 = vld [vmem:[%s8206_s6] ss:$0 sm:$0xff]  ;;  %s7199_s6 = smov [#allocation13]  }
 0x5b7   :  { %4937 = vmatmul.bf16.gmra.mxu3 %v4488_v11  ;;  %s4973_s10 = sshll.u32 %s7199_s6, 4  ;;  %s4974_s10 = int_to_ptr.vmem [resolvable:$true] %s4973_s10 }
 0x5b8   :  { %v4391_v2 = vpop.f32.mrf.mxu3  ;;  %v4301_v43 = vadd.f32 %v4300_v10, %v4252_v5 }
 0x5b9   :  { %v4392_v13 = vadd.f32 %v4391_v2, %v4343_v38 }
 0x5bb   :  { %v4452_v8 = vmax.f32 %v4392_v13, 0.0 }
 0x5bc   :  { %v4349_v54 = vpop.f32.mrf.mxu2 }
 0x5bd   :  { %v4766_v24 = vpop.f32.mrf.mxu0  ;;  %v4350_v49 = vadd.f32 %v4349_v54, %v4301_v43 }
 0x5be   :  { %v4815_v7 = vpop.f32.mrf.mxu1  ;;  %v4767_v46 = vadd.f32 %v8179_v57, %v4766_v24 }
 0x5c0   :  { %v4393_v59 = vpop.f32.mrf.mxu3  ;;  %v4816_v19 = vadd.f32 %v4815_v7, %v4767_v46 }
 0x5c1   :  { %v4394_v42 = vadd.f32 %v4393_v59, %v4345_v45 }
 0x5c3   :  { %v4456_v55 = vmax.f32 %v4394_v42, 0.0 }
 0x5c4   :  { %v4864_v28 = vpop.f32.mrf.mxu2 }
 0x5c5   :  { %v4492_v34 = vpack.c.bf16 %v4456_v55, %v4452_v8  ;;  %v4768_v60 = vpop.f32.mrf.mxu0  ;;  %v4865_v15 = vadd.f32 %v4864_v28, %v4816_v19 }
 0x5c6   :  { %v4817_v14 = vpop.f32.mrf.mxu1  ;;  %v4769_v52 = vadd.f32 %v8179_v57, %v4768_v60 }
 0x5c7   :  { %4942 = vmatmul.bf16.gmra.mxu3 %v4492_v34 }
 0x5c8   :  { %v4396_v56 = vpop.f32.mrf.mxu3  ;;  %v4818_v18 = vadd.f32 %v4817_v14, %v4769_v52 }
 0x5c9   :  { %v4397_v26 = vadd.f32 %v4396_v56, %v4348_v51 }
 0x5cb   :  { %v4460_v44 = vmax.f32 %v4397_v26, 0.0 }
 0x5cc   :  { %v4866_v35 = vpop.f32.mrf.mxu2 }
 0x5cd   :  { %v4771_v62 = vpop.f32.mrf.mxu0  ;;  %v4867_v21 = vadd.f32 %v4866_v35, %v4818_v18 }
 0x5ce   :  { %v4820_v48 = vpop.f32.mrf.mxu1  ;;  %v4772_v27 = vadd.f32 %v8179_v57, %v4771_v62 }
 0x5d0   :  { %v4398_v20 = vpop.f32.mrf.mxu3  ;;  %v4821_v4 = vadd.f32 %v4820_v48, %v4772_v27 }
 0x5d1   :  { %v4399_v50 = vadd.f32 %v4398_v20, %v4350_v49 }
 0x5d3   :  { %v4464_v36 = vmax.f32 %v4399_v50, 0.0 }
 0x5d4   :  { %v4869_v16 = vpop.f32.mrf.mxu2 }
 0x5d5   :  { %v4496_v23 = vpack.c.bf16 %v4464_v36, %v4460_v44  ;;  %v4773_v47 = vpop.f32.mrf.mxu0  ;;  %v4870_v33 = vadd.f32 %v4869_v16, %v4821_v4 }
 0x5d6   :  { %v4822_v29 = vpop.f32.mrf.mxu1  ;;  %v4774_v53 = vadd.f32 %v8179_v57, %v4773_v47 }
 0x5d7   :  { %4947 = vmatmul.bf16.gmra.mxu3 %v4496_v23 }
 0x5d8   :  { %v4823_v25 = vadd.f32 %v4822_v29, %v4774_v53 }
 0x5dc   :  { %v4871_v3 = vpop.f32.mrf.mxu2 }
 0x5dd   :  { %v4776_v63 = vpop.f32.mrf.mxu0  ;;  %v4872_v2 = vadd.f32 %v4871_v3, %v4823_v25 }
 0x5de   :  { %v4825_v37 = vpop.f32.mrf.mxu1  ;;  %v4777_v17 = vadd.f32 %v8179_v57, %v4776_v63 }
 0x5e0   :  { %v4826_v54 = vadd.f32 %v4825_v37, %v4777_v17 }
 0x5e4   :  { %v4874_v32 = vpop.f32.mrf.mxu2 }
 0x5e5   :  { %v4778_v12 = vpop.f32.mrf.mxu0  ;;  %v4875_v13 = vadd.f32 %v4874_v32, %v4826_v54 }
 0x5e6   :  { %v4827_v58 = vpop.f32.mrf.mxu1  ;;  %v4779_v42 = vadd.f32 %v8179_v57, %v4778_v12 }
 0x5e8   :  { %v4828_v34 = vadd.f32 %v4827_v58, %v4779_v42 }
 0x5ea   :  { %v4913_v9 = vpop.f32.mrf.mxu3 }
 0x5eb   :  { %v4914_v1 = vadd.f32 %v4913_v9, %v4865_v15 }
 0x5ec   :  { %v4876_v6 = vpop.f32.mrf.mxu2 }
 0x5ed   :  { %4953 = vst [vmem:[#allocation13] sm:$0xff] %v4914_v1  ;;  %v4781_v30 = vpop.f32.mrf.mxu0  ;;  %v4877_v40 = vadd.f32 %v4876_v6, %v4828_v34 }
 0x5ee   :  { %v4830_v38 = vpop.f32.mrf.mxu1  ;;  %v4782_v56 = vadd.f32 %v8179_v57, %v4781_v30 }
 0x5f0   :  { %v4831_v31 = vadd.f32 %v4830_v38, %v4782_v56 }
 0x5f2   :  { %v4915_v61 = vpop.f32.mrf.mxu3 }
 0x5f3   :  { %v4916_v22 = vadd.f32 %v4915_v61, %v4867_v21 }
 0x5f4   :  { %v4879_v10 = vpop.f32.mrf.mxu2 }
 0x5f5   :  { %4954 = vst [vmem:[#allocation13 + $0x8] sm:$0xff] %v4916_v22  ;;  %v4783_v45 = vpop.f32.mrf.mxu0  ;;  %v4880_v43 = vadd.f32 %v4879_v10, %v4831_v31 }
 0x5f6   :  { %v4832_v8 = vpop.f32.mrf.mxu1  ;;  %v4784_v26 = vadd.f32 %v8179_v57, %v4783_v45 }
 0x5f8   :  { %v4833_v50 = vadd.f32 %v4832_v8, %v4784_v26 }
 0x5fa   :  { %v4918_v41 = vpop.f32.mrf.mxu3 }
 0x5fb   :  { %v4919_v11 = vadd.f32 %v4918_v41, %v4870_v33 }
 0x5fc   :  { %v4881_v55 = vpop.f32.mrf.mxu2 }
 0x5fd   :  { %4955 = vst [vmem:[#allocation13 + $0x10] sm:$0xff] %v4919_v11  ;;  %v4786_v7 = vpop.f32.mrf.mxu0  ;;  %v4882_v35 = vadd.f32 %v4881_v55, %v4833_v50 }
 0x5fe   :  { %v4835_v60 = vpop.f32.mrf.mxu1  ;;  %v4787_v62 = vadd.f32 %v8179_v57, %v4786_v7 }
 0x600   :  { %v4836_v47 = vadd.f32 %v4835_v60, %v4787_v62 }
 0x602   :  { %v4920_v39 = vpop.f32.mrf.mxu3 }
 0x603   :  { %v4921_v0 = vadd.f32 %v4920_v39, %v4872_v2 }
 0x604   :  { %v4884_v51 = vpop.f32.mrf.mxu2 }
 0x605   :  { %4956 = vst [vmem:[#allocation13 + $0x18] sm:$0xff] %v4921_v0  ;;  %v4788_v14 = vpop.f32.mrf.mxu0  ;;  %v4885_v46 = vadd.f32 %v4884_v51, %v4836_v47 }
 0x606   :  { %v4837_v44 = vpop.f32.mrf.mxu1  ;;  %v4789_v3 = vadd.f32 %v8179_v57, %v4788_v14 }
 0x608   :  { %v4838_v9 = vadd.f32 %v4837_v44, %v4789_v3 }
 0x60a   :  { %v4923_v59 = vpop.f32.mrf.mxu3 }
 0x60b   :  { %v4924_v24 = vadd.f32 %v4923_v59, %v4875_v13 }
 0x60c   :  { %v4886_v36 = vpop.f32.mrf.mxu2 }
 0x60d   :  { %4957 = vst [vmem:[#allocation13 + $0x20] sm:$0xff] %v4924_v24  ;;  %v4791_v16 = vpop.f32.mrf.mxu0  ;;  %v4887_v1 = vadd.f32 %v4886_v36, %v4838_v9 }
 0x60e   :  { %v4840_v19 = vpop.f32.mrf.mxu1  ;;  %v4792_v37 = vadd.f32 %v8179_v57, %v4791_v16 }
 0x610   :  { %v4841_v27 = vadd.f32 %v4840_v19, %v4792_v37 }
 0x612   :  { %v4925_v28 = vpop.f32.mrf.mxu3 }
 0x613   :  { %v4926_v5 = vadd.f32 %v4925_v28, %v4877_v40 }
 0x614   :  { %v4889_v63 = vpop.f32.mrf.mxu2 }
 0x615   :  { %4958 = vst [vmem:[#allocation13 + $0x28] sm:$0xff] %v4926_v5  ;;  %v4793_v52 = vpop.f32.mrf.mxu0  ;;  %v4890_v22 = vadd.f32 %v4889_v63, %v4841_v27 }
 0x616   :  { %v4842_v21 = vpop.f32.mrf.mxu1  ;;  %v4794_v33 = vadd.f32 %v8179_v57, %v4793_v52 }
 0x618   :  { %v4843_v6 = vadd.f32 %v4842_v21, %v4794_v33 }
 0x61a   :  { %v4928_v49 = vpop.f32.mrf.mxu3 }
 0x61b   :  { %v4929_v20 = vadd.f32 %v4928_v49, %v4880_v43 }
 0x61c   :  { %v4891_v61 = vpop.f32.mrf.mxu2 }
 0x61d   :  { %4959 = vst [vmem:[#allocation13 + $0x30] sm:$0xff] %v4929_v20  ;;  %v4796_v12 = vpop.f32.mrf.mxu0  ;;  %v4892_v11 = vadd.f32 %v4891_v61, %v4843_v6 }
 0x61e   :  { %v4845_v41 = vpop.f32.mrf.mxu1  ;;  %v4797_v25 = vadd.f32 %v8179_v57, %v4796_v12 }
 0x620   :  { %v4846_v17 = vadd.f32 %v4845_v41, %v4797_v25 }
 0x622   :  { %v4930_v23 = vpop.f32.mrf.mxu3 }
 0x623   :  { %v4931_v48 = vadd.f32 %v4930_v23, %v4882_v35 }
 0x624   :  { %v4894_v53 = vpop.f32.mrf.mxu2 }
 0x625   :  { %4960 = vst [vmem:[#allocation13 + $0x38] sm:$0xff] %v4931_v48  ;;  %v4798_v39 = vpop.f32.mrf.mxu0  ;;  %v4895_v38 = vadd.f32 %v4894_v53, %v4846_v17 }
 0x626   :  { %v4847_v0 = vpop.f32.mrf.mxu1  ;;  %v4799_v45 = vadd.f32 %v8179_v57, %v4798_v39 }
 0x628   :  { %v4848_v42 = vadd.f32 %v4847_v0, %v4799_v45 }
 0x62a   :  { %v4933_v29 = vpop.f32.mrf.mxu3 }
 0x62b   :  { %v4934_v15 = vadd.f32 %v4933_v29, %v4885_v46 }
 0x62c   :  { %v4896_v10 = vpop.f32.mrf.mxu2 }
 0x62d   :  { %4961 = vst [vmem:[#allocation13 + $0x40] sm:$0xff] %v4934_v15  ;;  %v4801_v59 = vpop.f32.mrf.mxu0  ;;  %v4897_v24 = vadd.f32 %v4896_v10, %v4848_v42 }
 0x62e   :  { %v4802_v55 = vadd.f32 %v8179_v57, %v4801_v59  ;;  %v4850_v40 = vpop.f32.mrf.mxu1 }
 0x630   :  { %v4851_v28 = vadd.f32 %v4850_v40, %v4802_v55 }
 0x632   :  { %v4935_v18 = vpop.f32.mrf.mxu3 }
 0x633   :  { %v4936_v32 = vadd.f32 %v4935_v18, %v4887_v1 }
 0x634   :  { %v4899_v7 = vpop.f32.mrf.mxu2 }
 0x635   :  { %4962 = vst [vmem:[#allocation13 + $0x48] sm:$0xff] %v4936_v32  ;;  %v4803_v56 = vpop.f32.mrf.mxu0  ;;  %v4900_v5 = vadd.f32 %v4899_v7, %v4851_v28 }
 0x636   :  { %v4804_v60 = vadd.f32 %v8179_v57, %v4803_v56  ;;  %v4852_v43 = vpop.f32.mrf.mxu1 }
 0x638   :  { %v4853_v26 = vadd.f32 %v4852_v43, %v4804_v60 }
 0x63a   :  { %v4938_v4 = vpop.f32.mrf.mxu3 }
 0x63b   :  { %v4939_v58 = vadd.f32 %v4938_v4, %v4890_v22 }
 0x63c   :  { %v4901_v49 = vpop.f32.mrf.mxu2 }
 0x63d   :  { %4963 = vst [vmem:[#allocation13 + $0x50] sm:$0xff] %v4939_v58  ;;  %v4902_v20 = vadd.f32 %v4901_v49, %v4853_v26 }
 0x642   :  { %v4940_v30 = vpop.f32.mrf.mxu3 }
 0x643   :  { %v4941_v2 = vadd.f32 %v4940_v30, %v4892_v11 }
 0x645   :  { %4964 = vst [vmem:[#allocation13 + $0x58] sm:$0xff] %v4941_v2 }
 0x64a   :  { %v4943_v54 = vpop.f32.mrf.mxu3 }
 0x64b   :  { %v4944_v13 = vadd.f32 %v4943_v54, %v4895_v38 }
 0x64d   :  { %4965 = vst [vmem:[#allocation13 + $0x60] sm:$0xff] %v4944_v13 }
 0x652   :  { %v4945_v8 = vpop.f32.mrf.mxu3 }
 0x653   :  { %v4946_v34 = vadd.f32 %v4945_v8, %v4897_v24 }
 0x655   :  { %4966 = vst [vmem:[#allocation13 + $0x68] sm:$0xff] %v4946_v34 }
 0x65a   :  { %v4948_v31 = vpop.f32.mrf.mxu3 }
 0x65b   :  { %v4949_v51 = vadd.f32 %v4948_v31, %v4900_v5 }
 0x65d   :  { %4967 = vst [vmem:[#allocation13 + $0x70] sm:$0xff] %v4949_v51 }
 0x662   :  { %v4950_v14 = vpop.f32.mrf.mxu3 }
 0x663   :  { %v4951_v50 = vadd.f32 %v4950_v14, %v4902_v20 }
 0x665   :  { %4968 = vst [vmem:[#allocation13 + $0x78] sm:$0xff] %v4951_v50 }
 0x666   :  { %4981 = dma.vmem_to_hbm [thread:$0]  %s4974_s10, 2048, %s4976_s13, [#allocation4], %s7200_s14, %s7200_s14, %s7201_s15  }
 0x667   :  { %7185 = dma.done.wait [#allocation4], 2048  }
 0x668   :  { %7186 = vsyncadd [#allocation4], 4294965248 }
 0x669   :  { %4986 = vsyncpa [#allocation3], 1 }
 0x66a   :  { %4987 = vsyncpa [#allocation6], 1 }
 0x66b   :  { %4988 = vsyncpa [#allocation9], 1 }
 0x66c   :  { %4989 = vsyncpa [#allocation12], 1 }
 0x66d   :  { %4990 = vsyncpa [#allocation4], 1 }

</bundles_post_ra>
